<compile_context>
chip_gen: v5e
topology: v5e:2x2
jax: 0.10.0
libtpu: 0.0.40
codegen_flags: <defaults>
</compile_context>

<pallas_src>
import functools

import jax
import jax.numpy as jnp
from jax import lax
from jax.experimental import pallas as pl
from jax.experimental.pallas import tpu as pltpu

N_LAYER_PARAMS = 10  # w_lin, b_lin, w1_i, w1_j, w1_e, b1, w2, b2, w3_t, b3


# ----------------------------------------------------------------------------
# Pallas kernel: ALL Edge_GATConv layers fused (small graph -> one VMEM block)
# ----------------------------------------------------------------------------
def fused_graph_conv_kernel(*refs):
    """refs = (x, src_oh, dst_oh, edge_attr, <n_layers*10 weight refs>, out)."""
    f32 = jnp.float32
    x_ref, src_ref, dst_ref, ea_ref = refs[:4]
    out_ref = refs[-1]
    w_refs = refs[4:-1]
    n_layers = len(w_refs) // N_LAYER_PARAMS

    # Graph structure / edge features: loaded once, resident across all layers.
    src = src_ref[...]                      # (E, N) one-hot of source node per edge
    dst = dst_ref[...]                      # (E, N) one-hot of destination node per edge
    ea = ea_ref[...]                        # (E, edge_dim)
    dst_mask = dst > 0.5                    # hoisted out of the layer loop
    neg_big = jnp.full(dst.shape, -1e30, f32)

    h = x_ref[...]                          # (N, F) running node features

    # Layers have different weight shapes -> unroll in Python at trace time.
    for l in range(n_layers):
        (wl, bl, w1i, w1j, w1e, b1, w2, b2, w3t, b3) = \
            w_refs[l * N_LAYER_PARAMS:(l + 1) * N_LAYER_PARAMS]

        # Node linear transform: (N, F_in) @ (F_in, F_out) + (1, F_out)
        hl = jnp.dot(h, wl[...], preferred_element_type=f32) + bl[...]

        # Gather endpoint features via one-hot matmuls (MXU-friendly "gather").
        x_j = jnp.dot(src, hl, preferred_element_type=f32)   # (E, F_out) source feats
        x_i = jnp.dot(dst, hl, preferred_element_type=f32)   # (E, F_out) dest feats

        # Attention MLP on concat([x_i, x_j, edge_attr]) — concat avoided by
        # splitting the first weight matrix into three row blocks.
        a = (jnp.dot(x_i, w1i[...], preferred_element_type=f32)
             + jnp.dot(x_j, w1j[...], preferred_element_type=f32)
             + jnp.dot(ea, w1e[...], preferred_element_type=f32)
             + b1[...])
        a = jnp.maximum(a, 0.0)
        a = jnp.maximum(jnp.dot(a, w2[...], preferred_element_type=f32) + b2[...], 0.0)

        # Final 1-column projection on the VPU/XLU (not a 1-lane MXU matmul):
        # score_e = sum_k a[e,k] * w3[k] + b3
        score = jnp.sum(a * w3t[...], axis=-1, keepdims=True) + b3[...]   # (E, 1)

        # GAT leaky_relu with negative slope 0.2.
        score = jnp.where(score > 0.0, score, 0.2 * score)

        # ---- Segment softmax over incoming edges of each destination node ----
        # Per-destination max (the only (E, N) temporary in the layer).
        smat = jnp.where(dst_mask, score, neg_big)                         # (E, N)
        mx = jnp.max(smat, axis=0, keepdims=True)                          # (1, N)
        # Gather the max back to edges: dst @ mx.T  (no explicit transpose).
        m_e = lax.dot_general(dst, mx, (((1,), (1,)), ((), ())),
                              preferred_element_type=f32)                  # (E, 1)
        ex_e = jnp.exp(score - m_e)                                        # (E, 1) EUP
        # Per-destination denominator: dst^T @ ex_e (dim-0 contraction).
        denom = lax.dot_general(dst, ex_e, (((0,), (0,)), ((), ())),
                                preferred_element_type=f32)                # (N, 1)
        r = pl.reciprocal(jnp.maximum(denom, 1e-16), approx=True)          # (N, 1) EUP

        # Weighted messages, scatter-add back to destination nodes, then apply
        # the softmax normalization on the NODE side (saves one (E,N) gather
        # and one (E,F) multiply per layer):
        #   out[n] = r[n] * sum_{e: dst(e)=n} exp_e * x_j[e]
        msg = ex_e * x_j                                                   # (E, F_out)
        h_agg = lax.dot_general(dst, msg, (((0,), (0,)), ((), ())),
                                preferred_element_type=f32)                # (N, F_out)
        h = r * h_agg                                                      # (N, F_out)

    out_ref[...] = h


def graph_conv_mmp(x, src_oh, dst_oh, edge_attr, layer_params):
    """All message-passing layers via a single single-block pallas_call."""
    n_nodes = x.shape[0]
    f_out = layer_params[-1]["w_lin"].shape[1]

    flat_weights = []
    for p in layer_params:
        flat_weights += [p["w_lin"], p["b_lin"],
                         p["w1_i"], p["w1_j"], p["w1_e"], p["b1"],
                         p["w2"], p["b2"], p["w3_t"], p["b3"]]

    args = (x, src_oh, dst_oh, edge_attr, *flat_weights)
    vmem_spec = pl.BlockSpec(memory_space=pltpu.MemorySpace.VMEM)
    return pl.pallas_call(
        fused_graph_conv_kernel,
        out_shape=jax.ShapeDtypeStruct((n_nodes, f_out), jnp.float32),
        in_specs=[vmem_spec] * len(args),
        out_specs=vmem_spec,
    )(*args)


# ----------------------------------------------------------------------------
# Parameter construction (deterministic) and the GraphConvMMP forward
# ----------------------------------------------------------------------------
def init_edge_gat_params(key, f_in, f_out, edge_dim, mlp):
    ks = jax.random.split(key, 6)

    def glorot(k, shape):
        fan_in, fan_out = shape
        scale = jnp.sqrt(2.0 / (fan_in + fan_out))
        return (scale * jax.random.normal(k, shape)).astype(jnp.float32)

    return {
        "w_lin": glorot(ks[0], (f_in, f_out)),
        "b_lin": jnp.zeros((1, f_out), jnp.float32),
        "w1_i": glorot(ks[1], (f_out, mlp)),
        "w1_j": glorot(ks[2], (f_out, mlp)),
        "w1_e": glorot(ks[3], (edge_dim, mlp)),
        "b1": jnp.zeros((1, mlp), jnp.float32),
        "w2": glorot(ks[4], (mlp, mlp)),
        "b2": jnp.zeros((1, mlp), jnp.float32),
        # Final projection stored pre-transposed as a (1, mlp) row so the
        # kernel can do a VPU broadcast-multiply + lane reduce.
        "w3_t": glorot(ks[5], (mlp, 1)).T,
        "b3": jnp.zeros((1, 1), jnp.float32),
    }


def init_graph_conv_mmp(key, in_features, out_features, edge_dims,
                        n_message_passing, hidden_features, mlp_features):
    hidden = hidden_features if n_message_passing > 1 else out_features
    dims = []
    dims.append((in_features, hidden))                      # 'in'
    for i in range(1, n_message_passing):
        if i + 1 != n_message_passing:
            dims.append((hidden, hidden))                   # 'hidden_i'
        else:
            dims.append((hidden, out_features))             # 'out'
    keys = jax.random.split(key, len(dims))
    return [init_edge_gat_params(k, fi, fo, edge_dims, mlp_features)
            for k, (fi, fo) in zip(keys, dims)]


@functools.partial(jax.jit, static_argnames=("n_nodes",))
def graph_conv_mmp_forward(x, edge_index, edge_attr, layer_params, *, n_nodes):
    # Glue: sparse edge_index (2, E) -> dense one-hot endpoint matrices (E, N),
    # built ONCE and passed to the single fused kernel (no per-layer re-DMA).
    node_ids = jnp.arange(n_nodes, dtype=jnp.int32)
    src_oh = (edge_index[0][:, None] == node_ids[None, :]).astype(jnp.float32)
    dst_oh = (edge_index[1][:, None] == node_ids[None, :]).astype(jnp.float32)
    return graph_conv_mmp(x, src_oh, dst_oh, edge_attr, layer_params)


# ----------------------------------------------------------------------------
if __name__ == "__main__":
    # Small, module-consistent problem sizes.
    N_NODES = 16
    N_EDGES = 48
    IN_FEATURES = 8
    OUT_FEATURES = 4
    EDGE_DIMS = 1
    N_MESSAGE_PASSING = 4
    HIDDEN_FEATURES = 32
    MLP_FEATURES = 32

    root = jax.random.PRNGKey(0)
    k_x, k_src, k_dst, k_ea, k_par = jax.random.split(root, 5)

    x = jax.random.normal(k_x, (N_NODES, IN_FEATURES), dtype=jnp.float32)
    edge_index = jnp.stack([
        jax.random.randint(k_src, (N_EDGES,), 0, N_NODES, dtype=jnp.int32),
        jax.random.randint(k_dst, (N_EDGES,), 0, N_NODES, dtype=jnp.int32),
    ], axis=0)
    edge_attr = jax.random.normal(k_ea, (N_EDGES, EDGE_DIMS), dtype=jnp.float32)

    layer_params = init_graph_conv_mmp(
        k_par, IN_FEATURES, OUT_FEATURES, EDGE_DIMS,
        N_MESSAGE_PASSING, HIDDEN_FEATURES, MLP_FEATURES)

    out = graph_conv_mmp_forward(x, edge_index, edge_attr, layer_params,
                                 n_nodes=N_NODES)
    out = jax.block_until_ready(out)
    assert out.shape == (N_NODES, OUT_FEATURES)
    assert bool(jnp.all(jnp.isfinite(out)))
    print("KERNEL_OK")
</pallas_src>

<mosaic_0001>
module attributes {stable_mosaic.version = 11 : i64} {
  func.func @fused_graph_conv_kernel(%arg0: memref<16x8xf32, #tpu.memory_space<vmem>>, %arg1: memref<48x16xf32, #tpu.memory_space<vmem>>, %arg2: memref<48x16xf32, #tpu.memory_space<vmem>>, %arg3: memref<48x1xf32, #tpu.memory_space<vmem>>, %arg4: memref<8x32xf32, #tpu.memory_space<vmem>>, %arg5: memref<1x32xf32, #tpu.memory_space<vmem>>, %arg6: memref<32x32xf32, #tpu.memory_space<vmem>>, %arg7: memref<32x32xf32, #tpu.memory_space<vmem>>, %arg8: memref<1x32xf32, #tpu.memory_space<vmem>>, %arg9: memref<1x32xf32, #tpu.memory_space<vmem>>, %arg10: memref<32x32xf32, #tpu.memory_space<vmem>>, %arg11: memref<1x32xf32, #tpu.memory_space<vmem>>, %arg12: memref<1x32xf32, #tpu.memory_space<vmem>>, %arg13: memref<1x1xf32, #tpu.memory_space<vmem>>, %arg14: memref<32x32xf32, #tpu.memory_space<vmem>>, %arg15: memref<1x32xf32, #tpu.memory_space<vmem>>, %arg16: memref<32x32xf32, #tpu.memory_space<vmem>>, %arg17: memref<32x32xf32, #tpu.memory_space<vmem>>, %arg18: memref<1x32xf32, #tpu.memory_space<vmem>>, %arg19: memref<1x32xf32, #tpu.memory_space<vmem>>, %arg20: memref<32x32xf32, #tpu.memory_space<vmem>>, %arg21: memref<1x32xf32, #tpu.memory_space<vmem>>, %arg22: memref<1x32xf32, #tpu.memory_space<vmem>>, %arg23: memref<1x1xf32, #tpu.memory_space<vmem>>, %arg24: memref<32x32xf32, #tpu.memory_space<vmem>>, %arg25: memref<1x32xf32, #tpu.memory_space<vmem>>, %arg26: memref<32x32xf32, #tpu.memory_space<vmem>>, %arg27: memref<32x32xf32, #tpu.memory_space<vmem>>, %arg28: memref<1x32xf32, #tpu.memory_space<vmem>>, %arg29: memref<1x32xf32, #tpu.memory_space<vmem>>, %arg30: memref<32x32xf32, #tpu.memory_space<vmem>>, %arg31: memref<1x32xf32, #tpu.memory_space<vmem>>, %arg32: memref<1x32xf32, #tpu.memory_space<vmem>>, %arg33: memref<1x1xf32, #tpu.memory_space<vmem>>, %arg34: memref<32x4xf32, #tpu.memory_space<vmem>>, %arg35: memref<1x4xf32, #tpu.memory_space<vmem>>, %arg36: memref<4x32xf32, #tpu.memory_space<vmem>>, %arg37: memref<4x32xf32, #tpu.memory_space<vmem>>, %arg38: memref<1x32xf32, #tpu.memory_space<vmem>>, %arg39: memref<1x32xf32, #tpu.memory_space<vmem>>, %arg40: memref<32x32xf32, #tpu.memory_space<vmem>>, %arg41: memref<1x32xf32, #tpu.memory_space<vmem>>, %arg42: memref<1x32xf32, #tpu.memory_space<vmem>>, %arg43: memref<1x1xf32, #tpu.memory_space<vmem>>, %arg44: memref<16x4xf32, #tpu.memory_space<vmem>>) attributes {dimension_semantics = [], scalar_prefetch = 0 : i64, scratch_operands = 0 : i64, tpu.core_type = #tpu.core_type<tc>} {
    %c0 = arith.constant 0 : index
    %c0_0 = arith.constant 0 : index
    %0 = vector.load %arg1[%c0, %c0_0] : memref<48x16xf32, #tpu.memory_space<vmem>>, vector<48x16xf32>
    %c0_1 = arith.constant 0 : index
    %c0_2 = arith.constant 0 : index
    %1 = vector.load %arg2[%c0_1, %c0_2] : memref<48x16xf32, #tpu.memory_space<vmem>>, vector<48x16xf32>
    %c0_3 = arith.constant 0 : index
    %c0_4 = arith.constant 0 : index
    %2 = vector.load %arg3[%c0_3, %c0_4] : memref<48x1xf32, #tpu.memory_space<vmem>>, vector<48x1xf32>
    %cst = arith.constant 5.000000e-01 : f32
    %3 = vector.broadcast %cst : f32 to vector<48x16xf32>
    %4 = arith.cmpf ogt, %1, %3 : vector<48x16xf32>
    %cst_5 = arith.constant -1.000000e+30 : f32
    %5 = vector.broadcast %cst_5 : f32 to vector<48x16xf32>
    %c0_6 = arith.constant 0 : index
    %c0_7 = arith.constant 0 : index
    %6 = vector.load %arg0[%c0_6, %c0_7] : memref<16x8xf32, #tpu.memory_space<vmem>>, vector<16x8xf32>
    %c0_8 = arith.constant 0 : index
    %c0_9 = arith.constant 0 : index
    %7 = vector.load %arg4[%c0_8, %c0_9] : memref<8x32xf32, #tpu.memory_space<vmem>>, vector<8x32xf32>
    %cst_10 = arith.constant dense<0.000000e+00> : vector<16x32xf32>
    %8 = tpu.matmul %6, %7, %cst_10 {dimension_numbers = #tpu.dot_dimension_numbers<[1], [0], [0], [1], [0, 0, 1, 1], [], []>} : vector<16x8xf32>, vector<8x32xf32>, vector<16x32xf32> -> vector<16x32xf32>
    %c0_11 = arith.constant 0 : index
    %c0_12 = arith.constant 0 : index
    %9 = vector.load %arg5[%c0_11, %c0_12] : memref<1x32xf32, #tpu.memory_space<vmem>>, vector<1x32xf32>
    %10 = vector.broadcast %9 : vector<1x32xf32> to vector<16x32xf32>
    %11 = arith.addf %8, %10 : vector<16x32xf32>
    %cst_13 = arith.constant dense<0.000000e+00> : vector<48x32xf32>
    %12 = tpu.matmul %0, %11, %cst_13 {dimension_numbers = #tpu.dot_dimension_numbers<[1], [0], [0], [1], [0, 0, 1, 1], [], []>} : vector<48x16xf32>, vector<16x32xf32>, vector<48x32xf32> -> vector<48x32xf32>
    %cst_14 = arith.constant dense<0.000000e+00> : vector<48x32xf32>
    %13 = tpu.matmul %1, %11, %cst_14 {dimension_numbers = #tpu.dot_dimension_numbers<[1], [0], [0], [1], [0, 0, 1, 1], [], []>} : vector<48x16xf32>, vector<16x32xf32>, vector<48x32xf32> -> vector<48x32xf32>
    %c0_15 = arith.constant 0 : index
    %c0_16 = arith.constant 0 : index
    %14 = vector.load %arg6[%c0_15, %c0_16] : memref<32x32xf32, #tpu.memory_space<vmem>>, vector<32x32xf32>
    %cst_17 = arith.constant dense<0.000000e+00> : vector<48x32xf32>
    %15 = tpu.matmul %13, %14, %cst_17 {dimension_numbers = #tpu.dot_dimension_numbers<[1], [0], [0], [1], [0, 0, 1, 1], [], []>} : vector<48x32xf32>, vector<32x32xf32>, vector<48x32xf32> -> vector<48x32xf32>
    %c0_18 = arith.constant 0 : index
    %c0_19 = arith.constant 0 : index
    %16 = vector.load %arg7[%c0_18, %c0_19] : memref<32x32xf32, #tpu.memory_space<vmem>>, vector<32x32xf32>
    %cst_20 = arith.constant dense<0.000000e+00> : vector<48x32xf32>
    %17 = tpu.matmul %12, %16, %cst_20 {dimension_numbers = #tpu.dot_dimension_numbers<[1], [0], [0], [1], [0, 0, 1, 1], [], []>} : vector<48x32xf32>, vector<32x32xf32>, vector<48x32xf32> -> vector<48x32xf32>
    %18 = arith.addf %15, %17 : vector<48x32xf32>
    %c0_21 = arith.constant 0 : index
    %c0_22 = arith.constant 0 : index
    %19 = vector.load %arg8[%c0_21, %c0_22] : memref<1x32xf32, #tpu.memory_space<vmem>>, vector<1x32xf32>
    %cst_23 = arith.constant dense<0.000000e+00> : vector<48x32xf32>
    %20 = tpu.matmul %2, %19, %cst_23 {dimension_numbers = #tpu.dot_dimension_numbers<[1], [0], [0], [1], [0, 0, 1, 1], [], []>} : vector<48x1xf32>, vector<1x32xf32>, vector<48x32xf32> -> vector<48x32xf32>
    %21 = arith.addf %18, %20 : vector<48x32xf32>
    %c0_24 = arith.constant 0 : index
    %c0_25 = arith.constant 0 : index
    %22 = vector.load %arg9[%c0_24, %c0_25] : memref<1x32xf32, #tpu.memory_space<vmem>>, vector<1x32xf32>
    %23 = vector.broadcast %22 : vector<1x32xf32> to vector<48x32xf32>
    %24 = arith.addf %21, %23 : vector<48x32xf32>
    %cst_26 = arith.constant 0.000000e+00 : f32
    %25 = vector.broadcast %cst_26 : f32 to vector<48x32xf32>
    %26 = arith.maximumf %24, %25 : vector<48x32xf32>
    %c0_27 = arith.constant 0 : index
    %c0_28 = arith.constant 0 : index
    %27 = vector.load %arg10[%c0_27, %c0_28] : memref<32x32xf32, #tpu.memory_space<vmem>>, vector<32x32xf32>
    %cst_29 = arith.constant dense<0.000000e+00> : vector<48x32xf32>
    %28 = tpu.matmul %26, %27, %cst_29 {dimension_numbers = #tpu.dot_dimension_numbers<[1], [0], [0], [1], [0, 0, 1, 1], [], []>} : vector<48x32xf32>, vector<32x32xf32>, vector<48x32xf32> -> vector<48x32xf32>
    %c0_30 = arith.constant 0 : index
    %c0_31 = arith.constant 0 : index
    %29 = vector.load %arg11[%c0_30, %c0_31] : memref<1x32xf32, #tpu.memory_space<vmem>>, vector<1x32xf32>
    %30 = vector.broadcast %29 : vector<1x32xf32> to vector<48x32xf32>
    %31 = arith.addf %28, %30 : vector<48x32xf32>
    %cst_32 = arith.constant 0.000000e+00 : f32
    %32 = vector.broadcast %cst_32 : f32 to vector<48x32xf32>
    %33 = arith.maximumf %31, %32 : vector<48x32xf32>
    %c0_33 = arith.constant 0 : index
    %c0_34 = arith.constant 0 : index
    %34 = vector.load %arg12[%c0_33, %c0_34] : memref<1x32xf32, #tpu.memory_space<vmem>>, vector<1x32xf32>
    %35 = vector.broadcast %34 : vector<1x32xf32> to vector<48x32xf32>
    %36 = arith.mulf %33, %35 : vector<48x32xf32>
    %cst_35 = arith.constant dense<0.000000e+00> : vector<48xf32>
    %37 = vector.multi_reduction <add>, %36, %cst_35 [1] : vector<48x32xf32> to vector<48xf32>
    %38 = vector.shape_cast %37 : vector<48xf32> to vector<48x1xf32>
    %c0_36 = arith.constant 0 : index
    %c0_37 = arith.constant 0 : index
    %39 = vector.load %arg13[%c0_36, %c0_37] : memref<1x1xf32, #tpu.memory_space<vmem>>, vector<1x1xf32>
    %40 = vector.broadcast %39 : vector<1x1xf32> to vector<48x1xf32>
    %41 = arith.addf %38, %40 : vector<48x1xf32>
    %cst_38 = arith.constant 0.000000e+00 : f32
    %42 = vector.broadcast %cst_38 : f32 to vector<48x1xf32>
    %43 = arith.cmpf ogt, %41, %42 : vector<48x1xf32>
    %cst_39 = arith.constant 2.000000e-01 : f32
    %44 = vector.broadcast %cst_39 : f32 to vector<48x1xf32>
    %45 = arith.mulf %44, %41 : vector<48x1xf32>
    %46 = arith.select %43, %41, %45 : vector<48x1xi1>, vector<48x1xf32>
    %47 = vector.shape_cast %46 : vector<48x1xf32> to vector<48x1xf32>
    %48 = vector.broadcast %47 : vector<48x1xf32> to vector<48x16xf32>
    %49 = arith.select %4, %48, %5 : vector<48x16xi1>, vector<48x16xf32>
    %cst_40 = arith.constant dense<0xFF800000> : vector<16xf32>
    %50 = vector.multi_reduction <maximumf>, %49, %cst_40 [0] : vector<48x16xf32> to vector<16xf32>
    %51 = vector.shape_cast %50 : vector<16xf32> to vector<1x16xf32>
    %cst_41 = arith.constant dense<0.000000e+00> : vector<48x1xf32>
    %52 = tpu.matmul %1, %51, %cst_41 {dimension_numbers = #tpu.dot_dimension_numbers<[1], [1], [0], [0], [0, 0, 1, 0], [], []>} : vector<48x16xf32>, vector<1x16xf32>, vector<48x1xf32> -> vector<48x1xf32>
    %53 = arith.subf %46, %52 : vector<48x1xf32>
    %54 = math.exp %53 : vector<48x1xf32>
    %cst_42 = arith.constant dense<0.000000e+00> : vector<16x1xf32>
    %55 = tpu.matmul %1, %54, %cst_42 {dimension_numbers = #tpu.dot_dimension_numbers<[0], [0], [1], [1], [0, 1, 1, 1], [], []>} : vector<48x16xf32>, vector<48x1xf32>, vector<16x1xf32> -> vector<16x1xf32>
    %cst_43 = arith.constant 1.000000e-16 : f32
    %56 = vector.broadcast %cst_43 : f32 to vector<16x1xf32>
    %57 = arith.maximumf %55, %56 : vector<16x1xf32>
    %58 = tpu.reciprocal %57 {approx = true} : vector<16x1xf32> -> vector<16x1xf32>
    %59 = vector.broadcast %54 : vector<48x1xf32> to vector<48x32xf32>
    %60 = arith.mulf %59, %12 : vector<48x32xf32>
    %cst_44 = arith.constant dense<0.000000e+00> : vector<16x32xf32>
    %61 = tpu.matmul %1, %60, %cst_44 {dimension_numbers = #tpu.dot_dimension_numbers<[0], [0], [1], [1], [0, 1, 1, 1], [], []>} : vector<48x16xf32>, vector<48x32xf32>, vector<16x32xf32> -> vector<16x32xf32>
    %62 = vector.broadcast %58 : vector<16x1xf32> to vector<16x32xf32>
    %63 = arith.mulf %62, %61 : vector<16x32xf32>
    %c0_45 = arith.constant 0 : index
    %c0_46 = arith.constant 0 : index
    %64 = vector.load %arg14[%c0_45, %c0_46] : memref<32x32xf32, #tpu.memory_space<vmem>>, vector<32x32xf32>
    %cst_47 = arith.constant dense<0.000000e+00> : vector<16x32xf32>
    %65 = tpu.matmul %63, %64, %cst_47 {dimension_numbers = #tpu.dot_dimension_numbers<[1], [0], [0], [1], [0, 0, 1, 1], [], []>} : vector<16x32xf32>, vector<32x32xf32>, vector<16x32xf32> -> vector<16x32xf32>
    %c0_48 = arith.constant 0 : index
    %c0_49 = arith.constant 0 : index
    %66 = vector.load %arg15[%c0_48, %c0_49] : memref<1x32xf32, #tpu.memory_space<vmem>>, vector<1x32xf32>
    %67 = vector.broadcast %66 : vector<1x32xf32> to vector<16x32xf32>
    %68 = arith.addf %65, %67 : vector<16x32xf32>
    %cst_50 = arith.constant dense<0.000000e+00> : vector<48x32xf32>
    %69 = tpu.matmul %0, %68, %cst_50 {dimension_numbers = #tpu.dot_dimension_numbers<[1], [0], [0], [1], [0, 0, 1, 1], [], []>} : vector<48x16xf32>, vector<16x32xf32>, vector<48x32xf32> -> vector<48x32xf32>
    %cst_51 = arith.constant dense<0.000000e+00> : vector<48x32xf32>
    %70 = tpu.matmul %1, %68, %cst_51 {dimension_numbers = #tpu.dot_dimension_numbers<[1], [0], [0], [1], [0, 0, 1, 1], [], []>} : vector<48x16xf32>, vector<16x32xf32>, vector<48x32xf32> -> vector<48x32xf32>
    %c0_52 = arith.constant 0 : index
    %c0_53 = arith.constant 0 : index
    %71 = vector.load %arg16[%c0_52, %c0_53] : memref<32x32xf32, #tpu.memory_space<vmem>>, vector<32x32xf32>
    %cst_54 = arith.constant dense<0.000000e+00> : vector<48x32xf32>
    %72 = tpu.matmul %70, %71, %cst_54 {dimension_numbers = #tpu.dot_dimension_numbers<[1], [0], [0], [1], [0, 0, 1, 1], [], []>} : vector<48x32xf32>, vector<32x32xf32>, vector<48x32xf32> -> vector<48x32xf32>
    %c0_55 = arith.constant 0 : index
    %c0_56 = arith.constant 0 : index
    %73 = vector.load %arg17[%c0_55, %c0_56] : memref<32x32xf32, #tpu.memory_space<vmem>>, vector<32x32xf32>
    %cst_57 = arith.constant dense<0.000000e+00> : vector<48x32xf32>
    %74 = tpu.matmul %69, %73, %cst_57 {dimension_numbers = #tpu.dot_dimension_numbers<[1], [0], [0], [1], [0, 0, 1, 1], [], []>} : vector<48x32xf32>, vector<32x32xf32>, vector<48x32xf32> -> vector<48x32xf32>
    %75 = arith.addf %72, %74 : vector<48x32xf32>
    %c0_58 = arith.constant 0 : index
    %c0_59 = arith.constant 0 : index
    %76 = vector.load %arg18[%c0_58, %c0_59] : memref<1x32xf32, #tpu.memory_space<vmem>>, vector<1x32xf32>
    %cst_60 = arith.constant dense<0.000000e+00> : vector<48x32xf32>
    %77 = tpu.matmul %2, %76, %cst_60 {dimension_numbers = #tpu.dot_dimension_numbers<[1], [0], [0], [1], [0, 0, 1, 1], [], []>} : vector<48x1xf32>, vector<1x32xf32>, vector<48x32xf32> -> vector<48x32xf32>
    %78 = arith.addf %75, %77 : vector<48x32xf32>
    %c0_61 = arith.constant 0 : index
    %c0_62 = arith.constant 0 : index
    %79 = vector.load %arg19[%c0_61, %c0_62] : memref<1x32xf32, #tpu.memory_space<vmem>>, vector<1x32xf32>
    %80 = vector.broadcast %79 : vector<1x32xf32> to vector<48x32xf32>
    %81 = arith.addf %78, %80 : vector<48x32xf32>
    %cst_63 = arith.constant 0.000000e+00 : f32
    %82 = vector.broadcast %cst_63 : f32 to vector<48x32xf32>
    %83 = arith.maximumf %81, %82 : vector<48x32xf32>
    %c0_64 = arith.constant 0 : index
    %c0_65 = arith.constant 0 : index
    %84 = vector.load %arg20[%c0_64, %c0_65] : memref<32x32xf32, #tpu.memory_space<vmem>>, vector<32x32xf32>
    %cst_66 = arith.constant dense<0.000000e+00> : vector<48x32xf32>
    %85 = tpu.matmul %83, %84, %cst_66 {dimension_numbers = #tpu.dot_dimension_numbers<[1], [0], [0], [1], [0, 0, 1, 1], [], []>} : vector<48x32xf32>, vector<32x32xf32>, vector<48x32xf32> -> vector<48x32xf32>
    %c0_67 = arith.constant 0 : index
    %c0_68 = arith.constant 0 : index
    %86 = vector.load %arg21[%c0_67, %c0_68] : memref<1x32xf32, #tpu.memory_space<vmem>>, vector<1x32xf32>
    %87 = vector.broadcast %86 : vector<1x32xf32> to vector<48x32xf32>
    %88 = arith.addf %85, %87 : vector<48x32xf32>
    %cst_69 = arith.constant 0.000000e+00 : f32
    %89 = vector.broadcast %cst_69 : f32 to vector<48x32xf32>
    %90 = arith.maximumf %88, %89 : vector<48x32xf32>
    %c0_70 = arith.constant 0 : index
    %c0_71 = arith.constant 0 : index
    %91 = vector.load %arg22[%c0_70, %c0_71] : memref<1x32xf32, #tpu.memory_space<vmem>>, vector<1x32xf32>
    %92 = vector.broadcast %91 : vector<1x32xf32> to vector<48x32xf32>
    %93 = arith.mulf %90, %92 : vector<48x32xf32>
    %cst_72 = arith.constant dense<0.000000e+00> : vector<48xf32>
    %94 = vector.multi_reduction <add>, %93, %cst_72 [1] : vector<48x32xf32> to vector<48xf32>
    %95 = vector.shape_cast %94 : vector<48xf32> to vector<48x1xf32>
    %c0_73 = arith.constant 0 : index
    %c0_74 = arith.constant 0 : index
    %96 = vector.load %arg23[%c0_73, %c0_74] : memref<1x1xf32, #tpu.memory_space<vmem>>, vector<1x1xf32>
    %97 = vector.broadcast %96 : vector<1x1xf32> to vector<48x1xf32>
    %98 = arith.addf %95, %97 : vector<48x1xf32>
    %cst_75 = arith.constant 0.000000e+00 : f32
    %99 = vector.broadcast %cst_75 : f32 to vector<48x1xf32>
    %100 = arith.cmpf ogt, %98, %99 : vector<48x1xf32>
    %cst_76 = arith.constant 2.000000e-01 : f32
    %101 = vector.broadcast %cst_76 : f32 to vector<48x1xf32>
    %102 = arith.mulf %101, %98 : vector<48x1xf32>
    %103 = arith.select %100, %98, %102 : vector<48x1xi1>, vector<48x1xf32>
    %104 = vector.shape_cast %103 : vector<48x1xf32> to vector<48x1xf32>
    %105 = vector.broadcast %104 : vector<48x1xf32> to vector<48x16xf32>
    %106 = arith.select %4, %105, %5 : vector<48x16xi1>, vector<48x16xf32>
    %cst_77 = arith.constant dense<0xFF800000> : vector<16xf32>
    %107 = vector.multi_reduction <maximumf>, %106, %cst_77 [0] : vector<48x16xf32> to vector<16xf32>
    %108 = vector.shape_cast %107 : vector<16xf32> to vector<1x16xf32>
    %cst_78 = arith.constant dense<0.000000e+00> : vector<48x1xf32>
    %109 = tpu.matmul %1, %108, %cst_78 {dimension_numbers = #tpu.dot_dimension_numbers<[1], [1], [0], [0], [0, 0, 1, 0], [], []>} : vector<48x16xf32>, vector<1x16xf32>, vector<48x1xf32> -> vector<48x1xf32>
    %110 = arith.subf %103, %109 : vector<48x1xf32>
    %111 = math.exp %110 : vector<48x1xf32>
    %cst_79 = arith.constant dense<0.000000e+00> : vector<16x1xf32>
    %112 = tpu.matmul %1, %111, %cst_79 {dimension_numbers = #tpu.dot_dimension_numbers<[0], [0], [1], [1], [0, 1, 1, 1], [], []>} : vector<48x16xf32>, vector<48x1xf32>, vector<16x1xf32> -> vector<16x1xf32>
    %cst_80 = arith.constant 1.000000e-16 : f32
    %113 = vector.broadcast %cst_80 : f32 to vector<16x1xf32>
    %114 = arith.maximumf %112, %113 : vector<16x1xf32>
    %115 = tpu.reciprocal %114 {approx = true} : vector<16x1xf32> -> vector<16x1xf32>
    %116 = vector.broadcast %111 : vector<48x1xf32> to vector<48x32xf32>
    %117 = arith.mulf %116, %69 : vector<48x32xf32>
    %cst_81 = arith.constant dense<0.000000e+00> : vector<16x32xf32>
    %118 = tpu.matmul %1, %117, %cst_81 {dimension_numbers = #tpu.dot_dimension_numbers<[0], [0], [1], [1], [0, 1, 1, 1], [], []>} : vector<48x16xf32>, vector<48x32xf32>, vector<16x32xf32> -> vector<16x32xf32>
    %119 = vector.broadcast %115 : vector<16x1xf32> to vector<16x32xf32>
    %120 = arith.mulf %119, %118 : vector<16x32xf32>
    %c0_82 = arith.constant 0 : index
    %c0_83 = arith.constant 0 : index
    %121 = vector.load %arg24[%c0_82, %c0_83] : memref<32x32xf32, #tpu.memory_space<vmem>>, vector<32x32xf32>
    %cst_84 = arith.constant dense<0.000000e+00> : vector<16x32xf32>
    %122 = tpu.matmul %120, %121, %cst_84 {dimension_numbers = #tpu.dot_dimension_numbers<[1], [0], [0], [1], [0, 0, 1, 1], [], []>} : vector<16x32xf32>, vector<32x32xf32>, vector<16x32xf32> -> vector<16x32xf32>
    %c0_85 = arith.constant 0 : index
    %c0_86 = arith.constant 0 : index
    %123 = vector.load %arg25[%c0_85, %c0_86] : memref<1x32xf32, #tpu.memory_space<vmem>>, vector<1x32xf32>
    %124 = vector.broadcast %123 : vector<1x32xf32> to vector<16x32xf32>
    %125 = arith.addf %122, %124 : vector<16x32xf32>
    %cst_87 = arith.constant dense<0.000000e+00> : vector<48x32xf32>
    %126 = tpu.matmul %0, %125, %cst_87 {dimension_numbers = #tpu.dot_dimension_numbers<[1], [0], [0], [1], [0, 0, 1, 1], [], []>} : vector<48x16xf32>, vector<16x32xf32>, vector<48x32xf32> -> vector<48x32xf32>
    %cst_88 = arith.constant dense<0.000000e+00> : vector<48x32xf32>
    %127 = tpu.matmul %1, %125, %cst_88 {dimension_numbers = #tpu.dot_dimension_numbers<[1], [0], [0], [1], [0, 0, 1, 1], [], []>} : vector<48x16xf32>, vector<16x32xf32>, vector<48x32xf32> -> vector<48x32xf32>
    %c0_89 = arith.constant 0 : index
    %c0_90 = arith.constant 0 : index
    %128 = vector.load %arg26[%c0_89, %c0_90] : memref<32x32xf32, #tpu.memory_space<vmem>>, vector<32x32xf32>
    %cst_91 = arith.constant dense<0.000000e+00> : vector<48x32xf32>
    %129 = tpu.matmul %127, %128, %cst_91 {dimension_numbers = #tpu.dot_dimension_numbers<[1], [0], [0], [1], [0, 0, 1, 1], [], []>} : vector<48x32xf32>, vector<32x32xf32>, vector<48x32xf32> -> vector<48x32xf32>
    %c0_92 = arith.constant 0 : index
    %c0_93 = arith.constant 0 : index
    %130 = vector.load %arg27[%c0_92, %c0_93] : memref<32x32xf32, #tpu.memory_space<vmem>>, vector<32x32xf32>
    %cst_94 = arith.constant dense<0.000000e+00> : vector<48x32xf32>
    %131 = tpu.matmul %126, %130, %cst_94 {dimension_numbers = #tpu.dot_dimension_numbers<[1], [0], [0], [1], [0, 0, 1, 1], [], []>} : vector<48x32xf32>, vector<32x32xf32>, vector<48x32xf32> -> vector<48x32xf32>
    %132 = arith.addf %129, %131 : vector<48x32xf32>
    %c0_95 = arith.constant 0 : index
    %c0_96 = arith.constant 0 : index
    %133 = vector.load %arg28[%c0_95, %c0_96] : memref<1x32xf32, #tpu.memory_space<vmem>>, vector<1x32xf32>
    %cst_97 = arith.constant dense<0.000000e+00> : vector<48x32xf32>
    %134 = tpu.matmul %2, %133, %cst_97 {dimension_numbers = #tpu.dot_dimension_numbers<[1], [0], [0], [1], [0, 0, 1, 1], [], []>} : vector<48x1xf32>, vector<1x32xf32>, vector<48x32xf32> -> vector<48x32xf32>
    %135 = arith.addf %132, %134 : vector<48x32xf32>
    %c0_98 = arith.constant 0 : index
    %c0_99 = arith.constant 0 : index
    %136 = vector.load %arg29[%c0_98, %c0_99] : memref<1x32xf32, #tpu.memory_space<vmem>>, vector<1x32xf32>
    %137 = vector.broadcast %136 : vector<1x32xf32> to vector<48x32xf32>
    %138 = arith.addf %135, %137 : vector<48x32xf32>
    %cst_100 = arith.constant 0.000000e+00 : f32
    %139 = vector.broadcast %cst_100 : f32 to vector<48x32xf32>
    %140 = arith.maximumf %138, %139 : vector<48x32xf32>
    %c0_101 = arith.constant 0 : index
    %c0_102 = arith.constant 0 : index
    %141 = vector.load %arg30[%c0_101, %c0_102] : memref<32x32xf32, #tpu.memory_space<vmem>>, vector<32x32xf32>
    %cst_103 = arith.constant dense<0.000000e+00> : vector<48x32xf32>
    %142 = tpu.matmul %140, %141, %cst_103 {dimension_numbers = #tpu.dot_dimension_numbers<[1], [0], [0], [1], [0, 0, 1, 1], [], []>} : vector<48x32xf32>, vector<32x32xf32>, vector<48x32xf32> -> vector<48x32xf32>
    %c0_104 = arith.constant 0 : index
    %c0_105 = arith.constant 0 : index
    %143 = vector.load %arg31[%c0_104, %c0_105] : memref<1x32xf32, #tpu.memory_space<vmem>>, vector<1x32xf32>
    %144 = vector.broadcast %143 : vector<1x32xf32> to vector<48x32xf32>
    %145 = arith.addf %142, %144 : vector<48x32xf32>
    %cst_106 = arith.constant 0.000000e+00 : f32
    %146 = vector.broadcast %cst_106 : f32 to vector<48x32xf32>
    %147 = arith.maximumf %145, %146 : vector<48x32xf32>
    %c0_107 = arith.constant 0 : index
    %c0_108 = arith.constant 0 : index
    %148 = vector.load %arg32[%c0_107, %c0_108] : memref<1x32xf32, #tpu.memory_space<vmem>>, vector<1x32xf32>
    %149 = vector.broadcast %148 : vector<1x32xf32> to vector<48x32xf32>
    %150 = arith.mulf %147, %149 : vector<48x32xf32>
    %cst_109 = arith.constant dense<0.000000e+00> : vector<48xf32>
    %151 = vector.multi_reduction <add>, %150, %cst_109 [1] : vector<48x32xf32> to vector<48xf32>
    %152 = vector.shape_cast %151 : vector<48xf32> to vector<48x1xf32>
    %c0_110 = arith.constant 0 : index
    %c0_111 = arith.constant 0 : index
    %153 = vector.load %arg33[%c0_110, %c0_111] : memref<1x1xf32, #tpu.memory_space<vmem>>, vector<1x1xf32>
    %154 = vector.broadcast %153 : vector<1x1xf32> to vector<48x1xf32>
    %155 = arith.addf %152, %154 : vector<48x1xf32>
    %cst_112 = arith.constant 0.000000e+00 : f32
    %156 = vector.broadcast %cst_112 : f32 to vector<48x1xf32>
    %157 = arith.cmpf ogt, %155, %156 : vector<48x1xf32>
    %cst_113 = arith.constant 2.000000e-01 : f32
    %158 = vector.broadcast %cst_113 : f32 to vector<48x1xf32>
    %159 = arith.mulf %158, %155 : vector<48x1xf32>
    %160 = arith.select %157, %155, %159 : vector<48x1xi1>, vector<48x1xf32>
    %161 = vector.shape_cast %160 : vector<48x1xf32> to vector<48x1xf32>
    %162 = vector.broadcast %161 : vector<48x1xf32> to vector<48x16xf32>
    %163 = arith.select %4, %162, %5 : vector<48x16xi1>, vector<48x16xf32>
    %cst_114 = arith.constant dense<0xFF800000> : vector<16xf32>
    %164 = vector.multi_reduction <maximumf>, %163, %cst_114 [0] : vector<48x16xf32> to vector<16xf32>
    %165 = vector.shape_cast %164 : vector<16xf32> to vector<1x16xf32>
    %cst_115 = arith.constant dense<0.000000e+00> : vector<48x1xf32>
    %166 = tpu.matmul %1, %165, %cst_115 {dimension_numbers = #tpu.dot_dimension_numbers<[1], [1], [0], [0], [0, 0, 1, 0], [], []>} : vector<48x16xf32>, vector<1x16xf32>, vector<48x1xf32> -> vector<48x1xf32>
    %167 = arith.subf %160, %166 : vector<48x1xf32>
    %168 = math.exp %167 : vector<48x1xf32>
    %cst_116 = arith.constant dense<0.000000e+00> : vector<16x1xf32>
    %169 = tpu.matmul %1, %168, %cst_116 {dimension_numbers = #tpu.dot_dimension_numbers<[0], [0], [1], [1], [0, 1, 1, 1], [], []>} : vector<48x16xf32>, vector<48x1xf32>, vector<16x1xf32> -> vector<16x1xf32>
    %cst_117 = arith.constant 1.000000e-16 : f32
    %170 = vector.broadcast %cst_117 : f32 to vector<16x1xf32>
    %171 = arith.maximumf %169, %170 : vector<16x1xf32>
    %172 = tpu.reciprocal %171 {approx = true} : vector<16x1xf32> -> vector<16x1xf32>
    %173 = vector.broadcast %168 : vector<48x1xf32> to vector<48x32xf32>
    %174 = arith.mulf %173, %126 : vector<48x32xf32>
    %cst_118 = arith.constant dense<0.000000e+00> : vector<16x32xf32>
    %175 = tpu.matmul %1, %174, %cst_118 {dimension_numbers = #tpu.dot_dimension_numbers<[0], [0], [1], [1], [0, 1, 1, 1], [], []>} : vector<48x16xf32>, vector<48x32xf32>, vector<16x32xf32> -> vector<16x32xf32>
    %176 = vector.broadcast %172 : vector<16x1xf32> to vector<16x32xf32>
    %177 = arith.mulf %176, %175 : vector<16x32xf32>
    %c0_119 = arith.constant 0 : index
    %c0_120 = arith.constant 0 : index
    %178 = vector.load %arg34[%c0_119, %c0_120] : memref<32x4xf32, #tpu.memory_space<vmem>>, vector<32x4xf32>
    %cst_121 = arith.constant dense<0.000000e+00> : vector<16x4xf32>
    %179 = tpu.matmul %177, %178, %cst_121 {dimension_numbers = #tpu.dot_dimension_numbers<[1], [0], [0], [1], [0, 0, 1, 1], [], []>} : vector<16x32xf32>, vector<32x4xf32>, vector<16x4xf32> -> vector<16x4xf32>
    %c0_122 = arith.constant 0 : index
    %c0_123 = arith.constant 0 : index
    %180 = vector.load %arg35[%c0_122, %c0_123] : memref<1x4xf32, #tpu.memory_space<vmem>>, vector<1x4xf32>
    %181 = vector.broadcast %180 : vector<1x4xf32> to vector<16x4xf32>
    %182 = arith.addf %179, %181 : vector<16x4xf32>
    %cst_124 = arith.constant dense<0.000000e+00> : vector<48x4xf32>
    %183 = tpu.matmul %0, %182, %cst_124 {dimension_numbers = #tpu.dot_dimension_numbers<[1], [0], [0], [1], [0, 0, 1, 1], [], []>} : vector<48x16xf32>, vector<16x4xf32>, vector<48x4xf32> -> vector<48x4xf32>
    %cst_125 = arith.constant dense<0.000000e+00> : vector<48x4xf32>
    %184 = tpu.matmul %1, %182, %cst_125 {dimension_numbers = #tpu.dot_dimension_numbers<[1], [0], [0], [1], [0, 0, 1, 1], [], []>} : vector<48x16xf32>, vector<16x4xf32>, vector<48x4xf32> -> vector<48x4xf32>
    %c0_126 = arith.constant 0 : index
    %c0_127 = arith.constant 0 : index
    %185 = vector.load %arg36[%c0_126, %c0_127] : memref<4x32xf32, #tpu.memory_space<vmem>>, vector<4x32xf32>
    %cst_128 = arith.constant dense<0.000000e+00> : vector<48x32xf32>
    %186 = tpu.matmul %184, %185, %cst_128 {dimension_numbers = #tpu.dot_dimension_numbers<[1], [0], [0], [1], [0, 0, 1, 1], [], []>} : vector<48x4xf32>, vector<4x32xf32>, vector<48x32xf32> -> vector<48x32xf32>
    %c0_129 = arith.constant 0 : index
    %c0_130 = arith.constant 0 : index
    %187 = vector.load %arg37[%c0_129, %c0_130] : memref<4x32xf32, #tpu.memory_space<vmem>>, vector<4x32xf32>
    %cst_131 = arith.constant dense<0.000000e+00> : vector<48x32xf32>
    %188 = tpu.matmul %183, %187, %cst_131 {dimension_numbers = #tpu.dot_dimension_numbers<[1], [0], [0], [1], [0, 0, 1, 1], [], []>} : vector<48x4xf32>, vector<4x32xf32>, vector<48x32xf32> -> vector<48x32xf32>
    %189 = arith.addf %186, %188 : vector<48x32xf32>
    %c0_132 = arith.constant 0 : index
    %c0_133 = arith.constant 0 : index
    %190 = vector.load %arg38[%c0_132, %c0_133] : memref<1x32xf32, #tpu.memory_space<vmem>>, vector<1x32xf32>
    %cst_134 = arith.constant dense<0.000000e+00> : vector<48x32xf32>
    %191 = tpu.matmul %2, %190, %cst_134 {dimension_numbers = #tpu.dot_dimension_numbers<[1], [0], [0], [1], [0, 0, 1, 1], [], []>} : vector<48x1xf32>, vector<1x32xf32>, vector<48x32xf32> -> vector<48x32xf32>
    %192 = arith.addf %189, %191 : vector<48x32xf32>
    %c0_135 = arith.constant 0 : index
    %c0_136 = arith.constant 0 : index
    %193 = vector.load %arg39[%c0_135, %c0_136] : memref<1x32xf32, #tpu.memory_space<vmem>>, vector<1x32xf32>
    %194 = vector.broadcast %193 : vector<1x32xf32> to vector<48x32xf32>
    %195 = arith.addf %192, %194 : vector<48x32xf32>
    %cst_137 = arith.constant 0.000000e+00 : f32
    %196 = vector.broadcast %cst_137 : f32 to vector<48x32xf32>
    %197 = arith.maximumf %195, %196 : vector<48x32xf32>
    %c0_138 = arith.constant 0 : index
    %c0_139 = arith.constant 0 : index
    %198 = vector.load %arg40[%c0_138, %c0_139] : memref<32x32xf32, #tpu.memory_space<vmem>>, vector<32x32xf32>
    %cst_140 = arith.constant dense<0.000000e+00> : vector<48x32xf32>
    %199 = tpu.matmul %197, %198, %cst_140 {dimension_numbers = #tpu.dot_dimension_numbers<[1], [0], [0], [1], [0, 0, 1, 1], [], []>} : vector<48x32xf32>, vector<32x32xf32>, vector<48x32xf32> -> vector<48x32xf32>
    %c0_141 = arith.constant 0 : index
    %c0_142 = arith.constant 0 : index
    %200 = vector.load %arg41[%c0_141, %c0_142] : memref<1x32xf32, #tpu.memory_space<vmem>>, vector<1x32xf32>
    %201 = vector.broadcast %200 : vector<1x32xf32> to vector<48x32xf32>
    %202 = arith.addf %199, %201 : vector<48x32xf32>
    %cst_143 = arith.constant 0.000000e+00 : f32
    %203 = vector.broadcast %cst_143 : f32 to vector<48x32xf32>
    %204 = arith.maximumf %202, %203 : vector<48x32xf32>
    %c0_144 = arith.constant 0 : index
    %c0_145 = arith.constant 0 : index
    %205 = vector.load %arg42[%c0_144, %c0_145] : memref<1x32xf32, #tpu.memory_space<vmem>>, vector<1x32xf32>
    %206 = vector.broadcast %205 : vector<1x32xf32> to vector<48x32xf32>
    %207 = arith.mulf %204, %206 : vector<48x32xf32>
    %cst_146 = arith.constant dense<0.000000e+00> : vector<48xf32>
    %208 = vector.multi_reduction <add>, %207, %cst_146 [1] : vector<48x32xf32> to vector<48xf32>
    %209 = vector.shape_cast %208 : vector<48xf32> to vector<48x1xf32>
    %c0_147 = arith.constant 0 : index
    %c0_148 = arith.constant 0 : index
    %210 = vector.load %arg43[%c0_147, %c0_148] : memref<1x1xf32, #tpu.memory_space<vmem>>, vector<1x1xf32>
    %211 = vector.broadcast %210 : vector<1x1xf32> to vector<48x1xf32>
    %212 = arith.addf %209, %211 : vector<48x1xf32>
    %cst_149 = arith.constant 0.000000e+00 : f32
    %213 = vector.broadcast %cst_149 : f32 to vector<48x1xf32>
    %214 = arith.cmpf ogt, %212, %213 : vector<48x1xf32>
    %cst_150 = arith.constant 2.000000e-01 : f32
    %215 = vector.broadcast %cst_150 : f32 to vector<48x1xf32>
    %216 = arith.mulf %215, %212 : vector<48x1xf32>
    %217 = arith.select %214, %212, %216 : vector<48x1xi1>, vector<48x1xf32>
    %218 = vector.shape_cast %217 : vector<48x1xf32> to vector<48x1xf32>
    %219 = vector.broadcast %218 : vector<48x1xf32> to vector<48x16xf32>
    %220 = arith.select %4, %219, %5 : vector<48x16xi1>, vector<48x16xf32>
    %cst_151 = arith.constant dense<0xFF800000> : vector<16xf32>
    %221 = vector.multi_reduction <maximumf>, %220, %cst_151 [0] : vector<48x16xf32> to vector<16xf32>
    %222 = vector.shape_cast %221 : vector<16xf32> to vector<1x16xf32>
    %cst_152 = arith.constant dense<0.000000e+00> : vector<48x1xf32>
    %223 = tpu.matmul %1, %222, %cst_152 {dimension_numbers = #tpu.dot_dimension_numbers<[1], [1], [0], [0], [0, 0, 1, 0], [], []>} : vector<48x16xf32>, vector<1x16xf32>, vector<48x1xf32> -> vector<48x1xf32>
    %224 = arith.subf %217, %223 : vector<48x1xf32>
    %225 = math.exp %224 : vector<48x1xf32>
    %cst_153 = arith.constant dense<0.000000e+00> : vector<16x1xf32>
    %226 = tpu.matmul %1, %225, %cst_153 {dimension_numbers = #tpu.dot_dimension_numbers<[0], [0], [1], [1], [0, 1, 1, 1], [], []>} : vector<48x16xf32>, vector<48x1xf32>, vector<16x1xf32> -> vector<16x1xf32>
    %cst_154 = arith.constant 1.000000e-16 : f32
    %227 = vector.broadcast %cst_154 : f32 to vector<16x1xf32>
    %228 = arith.maximumf %226, %227 : vector<16x1xf32>
    %229 = tpu.reciprocal %228 {approx = true} : vector<16x1xf32> -> vector<16x1xf32>
    %230 = vector.broadcast %225 : vector<48x1xf32> to vector<48x4xf32>
    %231 = arith.mulf %230, %183 : vector<48x4xf32>
    %cst_155 = arith.constant dense<0.000000e+00> : vector<16x4xf32>
    %232 = tpu.matmul %1, %231, %cst_155 {dimension_numbers = #tpu.dot_dimension_numbers<[0], [0], [1], [1], [0, 1, 1, 1], [], []>} : vector<48x16xf32>, vector<48x4xf32>, vector<16x4xf32> -> vector<16x4xf32>
    %233 = vector.broadcast %229 : vector<16x1xf32> to vector<16x4xf32>
    %234 = arith.mulf %233, %232 : vector<16x4xf32>
    %c0_156 = arith.constant 0 : index
    %c0_157 = arith.constant 0 : index
    %235 = vector.load %arg44[%c0_156, %c0_157] : memref<16x4xf32, #tpu.memory_space<vmem>>, vector<16x4xf32>
    tpu.vector_store %arg44[%c0_156, %c0_157], %234 {strides = array<i32>} : memref<16x4xf32, #tpu.memory_space<vmem>>, vector<16x4xf32>,
    return
  }
}

</mosaic_0001>

<bundles_post_ra>
// kernel: graph_conv_mmp_forward.1
= control target key start
LH: loop header
LB: loop body
LE: loop exit
PB: predicated region body
PF: predicated region fallthrough
CT: control target
= control target key end

     0   :  { %s4022_s6 = smov 1   ;;  %s4023_s10 = smov 2   ;;  %s5163_s0 = inlined_call_operand.smem [shape: u32[45], index: -1, kind: input, shape index: {}] }
   0x1   :  { %s4100_s5 = sld [smem:[%s5163_s0]]   ;;  %s4024_s14 = smov 3  }
   0x2   :  { %s4105_s9 = sld [smem:[%s5163_s0 + %s4022_s6]]   ;;  %s4025_s18 = smov 4  }
   0x3   :  { %s4110_s13 = sld [smem:[%s5163_s0 + %s4023_s10]]   ;;  %s4026_s22 = smov 5  }
   0x4   :  { %s4115_s17 = sld [smem:[%s5163_s0 + %s4024_s14]]   ;;  %s4027_s26 = smov 6  }
   0x5   :  { %s4120_s21 = sld [smem:[%s5163_s0 + %s4025_s18]]   ;;  %s4028_s30 = smov 7  }
   0x6   :  { %s4125_s25 = sld [smem:[%s5163_s0 + %s4026_s22]]   ;;  %s4029_s4 = smov 8  }
   0x7   :  { %5186 = sst [smem:[#allocation53_spill]] %s4100_s5  ;;  %s4030_s10 = smov 9  }
   0x8   :  { %5187 = sst [smem:[#allocation54_spill]] %s4105_s9  ;;  %s4031_s15 = smov 10  }
   0x9   :  { %5188 = sst [smem:[#allocation55_spill]] %s4110_s13  ;;  %s4032_s20 = smov 11  }
   0xa   :  { %5189 = sst [smem:[#allocation56_spill]] %s4115_s17  ;;  %s4034_s1 = smov 13  }
   0xb   :  { %5190 = sst [smem:[#allocation57_spill]] %s4120_s21  ;;  %s4035_s7 = smov 14  }
   0xc   :  { %5191 = sst [smem:[#allocation58_spill]] %s4125_s25  ;;  %s4037_s22 = smov 16  }
   0xd   :  { %s4130_s29 = sld [smem:[%s5163_s0 + %s4027_s26]]   ;;  %s4033_s26 = smov 12  }
   0xe   :  { %s4135_s3 = sld [smem:[%s5163_s0 + %s4028_s30]]   ;;  %s4038_s28 = smov 17  }
   0xf   :  { %s4140_s8 = sld [smem:[%s5163_s0 + %s4029_s4]]   ;;  %s4049_s17 = smov 29  }
  0x10   :  { %s4145_s14 = sld [smem:[%s5163_s0 + %s4030_s10]]   ;;  %s4043_s10 = smov 22  }
  0x11   :  { %s4150_s19 = sld [smem:[%s5163_s0 + %s4031_s15]]   ;;  %s4036_s15 = smov 15  }
  0x12   :  { %s4155_s24 = sld [smem:[%s5163_s0 + %s4032_s20]]   ;;  %s4064_s16 = smov 33  }
  0x13   :  { %5192 = sst [smem:[#allocation59_spill]] %s4130_s29 }
  0x14   :  { %5193 = sst [smem:[#allocation60_spill]] %s4135_s3 }
  0x15   :  { %5194 = sst [smem:[#allocation61_spill]] %s4140_s8 }
  0x16   :  { %s4160_s30 = sld [smem:[%s5163_s0 + %s4033_s26]]  }
  0x17   :  { %5195 = sst [smem:[#allocation62_spill]] %s4150_s19 }
  0x18   :  { %s3056_s6 = sld [smem:[%s5163_s0 + %s4034_s1]]  }
  0x19   :  { %s4168_s12 = sld [smem:[%s5163_s0 + %s4035_s7]]   ;;  %s4039_s7 = smov 18  }
  0x1a   :  { %s4173_s20 = sld [smem:[%s5163_s0 + %s4036_s15]]   ;;  %s4040_s15 = smov 19  }
  0x1b   :  { %s4178_s27 = sld [smem:[%s5163_s0 + %s4037_s22]]   ;;  %s4041_s22 = smov 20  }
  0x1c   :  { %s4183_s4 = sld [smem:[%s5163_s0 + %s4038_s28]]   ;;  %s4042_s28 = smov 21  }
  0x1d   :  { %s4193_s19 = sld [smem:[%s5163_s0 + %s4040_s15]]  }
  0x1e   :  { %v94_v0 = vstv %s3056_s6  ;;  %s4198_s1 = sld [smem:[%s5163_s0 + %s4041_s22]]   ;;  %s4044_s6 = smov 24  }
  0x1f   :  { %5196 = sst [smem:[#allocation63_spill]] %s4168_s12  ;;  %95 = vst [vmem:[#allocation2] sm:$0x1] %v94_v0  ;;  %s4045_s22 = smov 25  }
  0x20   :  { %s4188_s12 = sld [smem:[%s5163_s0 + %s4039_s7]]  }
  0x21   :  { %5197 = sst [smem:[#allocation64_spill]] %s4178_s27  ;;  %s4047_s27 = smov 27  }
  0x22   :  { %5198 = sst [smem:[#allocation65_spill]] %s4183_s4  ;;  %s4046_s4 = smov 26  }
  0x23   :  { %s4203_s7 = sld [smem:[%s5163_s0 + %s4042_s28]]  }
  0x24   :  { %5200 = sst [smem:[#allocation67_spill]] %s4198_s1 }
  0x25   :  { %s4208_s15 = sld [smem:[%s5163_s0 + %s4043_s10]]  }
  0x26   :  { %5199 = sst [smem:[#allocation66_spill]] %s4188_s12  ;;  %s4065_s12 = smov 43  }
  0x27   :  { %s4213_s23 = sld [smem:[%s5163_s0 + %s4044_s6]]   ;;  %s4048_s6 = smov 28  }
  0x28   :  { %s4218_s8 = sld [smem:[%s5163_s0 + %s4045_s22]]  }
  0x29   :  { %s4223_s29 = sld [smem:[%s5163_s0 + %s4046_s4]]   ;;  %s4050_s4 = smov 30  }
  0x2a   :  { %s4228_s3 = sld [smem:[%s5163_s0 + %s4047_s27]]   ;;  %s4051_s27 = smov 31  }
  0x2b   :  { %5201 = sst [smem:[#allocation68_spill]] %s4208_s15 }
  0x2c   :  { %s4233_s13 = sld [smem:[%s5163_s0 + %s4048_s6]]   ;;  %s4052_s6 = smov 32  }
  0x2d   :  { %s4238_s9 = sld [smem:[%s5163_s0 + %s4049_s17]]   ;;  %s4053_s17 = smov 34  }
  0x2e   :  { %5202 = sst [smem:[#allocation69_spill]] %s4218_s8 }
  0x2f   :  { %s4243_s25 = sld [smem:[%s5163_s0 + %s4050_s4]]   ;;  %s4054_s4 = smov 35  }
  0x30   :  { %5203 = sst [smem:[#allocation70_spill]] %s4228_s3 }
  0x31   :  { %s4248_s5 = sld [smem:[%s5163_s0 + %s4051_s27]]   ;;  %s4055_s27 = smov 36  }
  0x32   :  { %s4253_s21 = sld [smem:[%s5163_s0 + %s4052_s6]]   ;;  %s4056_s6 = smov 37  }
  0x33   :  { %5204 = sst [smem:[#allocation71_spill]] %s4238_s9 }
  0x34   :  { %s4258_s9 = sld [smem:[%s5163_s0 + %s4053_s17]]   ;;  %s4057_s17 = smov 38  }
  0x35   :  { %s4263_s3 = sld [smem:[%s5163_s0 + %s4054_s4]]   ;;  %s4058_s4 = smov 39  }
  0x36   :  { %s4273_s8 = sld [smem:[%s5163_s0 + %s4056_s6]]   ;;  %s4060_s6 = smov 41  }
  0x37   :  { %5205 = sst [smem:[#allocation72_spill]] %s4248_s5 }
  0x38   :  { %s4268_s5 = sld [smem:[%s5163_s0 + %s4055_s27]]   ;;  %s4059_s27 = smov 40  }
  0x39   :  { %s4288_s15 = sld [smem:[%s5163_s0 + %s4059_s27]]   ;;  %s4063_s27 = smov 23  }
  0x3a   :  { %5206 = sst [smem:[#allocation73_spill]] %s4258_s9 }
  0x3b   :  { %5207 = sst [smem:[#allocation74_spill]] %s4263_s3 }
  0x3c   :  { %5208 = sst [smem:[#allocation75_spill]] %s4273_s8 }
  0x3d   :  { %s4278_s9 = sld [smem:[%s5163_s0 + %s4057_s17]]   ;;  %s4061_s17 = smov 42  }
  0x3e   :  { %s4283_s3 = sld [smem:[%s5163_s0 + %s4058_s4]]   ;;  %s4062_s4 = smov 44  }
  0x3f   :  { %5210 = sst [smem:[#allocation77_spill]] %s4288_s15 }
  0x40   :  { %s4293_s8 = sld [smem:[%s5163_s0 + %s4060_s6]]  }
  0x41   :  { %s4303_s1 = sld [smem:[%s5163_s0 + %s4062_s4]]  }
  0x42   :  { %s3066_s15 = sld [smem:[%s5163_s0 + %s4063_s27]]  }
  0x43   :  { %5209 = sst [smem:[#allocation76_spill]] %s4278_s9 }
  0x44   :  { %s4298_s9 = sld [smem:[%s5163_s0 + %s4061_s17]]  }
  0x45   :  { %s3086_s26 = sld [smem:[%s5163_s0 + %s4065_s12]]  }
  0x46   :  { %5211 = sst [smem:[#allocation78_spill]] %s4293_s8 }
  0x47   :  { %s3076_s8 = sld [smem:[%s5163_s0 + %s4064_s16]]  }
  0x48   :  { %v96_v1 = vstv %s3066_s15 }
  0x49   :  { %97 = vst [vmem:[#allocation3] sm:$0x1] %v96_v1 }
  0x4b   :  { %v100_v3 = vstv %s3086_s26 }
  0x4c   :  { %101 = vst [vmem:[#allocation5] sm:$0x1] %v100_v3 }
  0x4d   :  { %v98_v2 = vstv %s3076_s8 }
  0x4e   :  { %99 = vst [vmem:[#allocation4] sm:$0x1] %v98_v2 }
  0x4f   :  { %102 = vsyncpa [#allocation7], 0 }
  0x50   :  { %103 = vsyncpa [#allocation9], 0 }
  0x51   :  { %104 = vsyncpa [#allocation12], 0 }
  0x52   :  { %105 = vsyncpa [#allocation15], 0 }
  0x53   :  { %106 = vsyncpa [#allocation18], 0 }
  0x54   :  { %107 = vsyncpa [#allocation21], 0 }
  0x55   :  { %108 = vsyncpa [#allocation24], 0 }
  0x56   :  { %109 = vsyncpa [#allocation27], 0 }
  0x57   :  { %110 = vsyncpa [#allocation30], 0 }
  0x58   :  { %111 = vsyncpa [#allocation33], 0 }
  0x59   :  { %112 = vsyncpa [#allocation36], 0  ;;  %s150_s4 = sshll.u32 %s4155_s24, 4  ;;  %s151_s4 = int_to_ptr.hbm [resolvable:$true] %s150_s4 }
  0x5a   :  { %113 = vsyncpa [#allocation39], 0  ;;  %s4066_s0 = smov [#allocation8]   ;;  %s176_s12 = sshll.u32 %s4173_s20, 4  ;;  %s177_s12 = int_to_ptr.hbm [resolvable:$true] %s176_s12 }
  0x5b   :  { %s152_s8 = sshll.u32 %s4066_s0, 4  ;;  %s3446_s15 = sshra.s32 %s151_s4, 4  ;;  %s153_s8 = int_to_ptr.vmem [resolvable:$true] %s152_s8  ;;  %s3447_s15 = int_to_ptr.hbm [resolvable:$true] %s3446_s15 }
  0x5c   :  { %s3448_s28 = scalar_lea.hbm %s3447_s15, 1  ;;  %s3450_s2 = scalar_lea.hbm %s4155_s24, 1 }
  0x5d   :  { %p3449_p0 = scmp.ne.s32.totalorder %s3447_s15, %s3448_s28  ;;  %p3451_p1 = scmp.lt.s32.totalorder %s3447_s15, %s4155_s24 }
  0x5e   :  { %p3452_p2 = scmp.lt.s32.totalorder %s3450_s2, %s3448_s28 }
  0x60   :  { %p3453_p3 = por %p3452_p2, %p3451_p1 }
  0x62   :  { %p3454_p4 = pnand %p3453_p3, %p3449_p0 }
  0x64   :  { %3457 = shalt.err (!%p3454_p4)
}
  0x65   :  { %155 = dma.hbm_to_vmem [thread:$0]  %s151_s4, 16, %s153_s8, [#allocation9]  }
  0x66   :  { %s4067_s27 = smov [#allocation11]   ;;  %s202_s11 = sshll.u32 %s4193_s19, 4  ;;  %s203_s11 = int_to_ptr.hbm [resolvable:$true] %s202_s11 }
  0x67   :  { %s178_s10 = sshll.u32 %s4067_s27, 4  ;;  %s3470_s16 = sshra.s32 %s177_s12, 4  ;;  %s179_s10 = int_to_ptr.vmem [resolvable:$true] %s178_s10  ;;  %s3471_s16 = int_to_ptr.hbm [resolvable:$true] %s3470_s16 }
  0x68   :  { %s3472_s6 = scalar_lea.hbm %s3471_s16, 1  ;;  %s3474_s18 = scalar_lea.hbm %s4173_s20, 1 }
  0x69   :  { %p3473_p5 = scmp.ne.s32.totalorder %s3471_s16, %s3472_s6  ;;  %p3475_p6 = scmp.lt.s32.totalorder %s3471_s16, %s4173_s20 }
  0x6a   :  { %p3476_p7 = scmp.lt.s32.totalorder %s3474_s18, %s3472_s6 }
  0x6c   :  { %p3477_p8 = por %p3476_p7, %p3475_p6 }
  0x6e   :  { %p3478_p9 = pnand %p3477_p8, %p3473_p5 }
  0x70   :  { %3481 = shalt.err (!%p3478_p9)
}
  0x71   :  { %181 = dma.hbm_to_vmem [thread:$0]  %s177_s12, 16, %s179_s10, [#allocation12]  }
  0x72   :  { %s226_s24 = sshll.u32 %s4203_s7, 4  ;;  %s4068_s22 = smov [#allocation14]   ;;  %s227_s24 = int_to_ptr.hbm [resolvable:$true] %s226_s24 }
  0x73   :  { %s204_s17 = sshll.u32 %s4068_s22, 4  ;;  %s3494_s26 = sshra.s32 %s203_s11, 4  ;;  %s205_s17 = int_to_ptr.vmem [resolvable:$true] %s204_s17  ;;  %s3495_s26 = int_to_ptr.hbm [resolvable:$true] %s3494_s26 }
  0x74   :  { %s3496_s4 = scalar_lea.hbm %s3495_s26, 1  ;;  %s3498_s0 = scalar_lea.hbm %s4193_s19, 1 }
  0x75   :  { %p3497_p10 = scmp.ne.s32.totalorder %s3495_s26, %s3496_s4  ;;  %p3499_p11 = scmp.lt.s32.totalorder %s3495_s26, %s4193_s19 }
  0x76   :  { %p3500_p12 = scmp.lt.s32.totalorder %s3498_s0, %s3496_s4 }
  0x78   :  { %p3501_p13 = por %p3500_p12, %p3499_p11 }
  0x7a   :  { %p3502_p0 = pnand %p3501_p13, %p3497_p10 }
  0x7c   :  { %3505 = shalt.err (!%p3502_p0)
}
  0x7d   :  { %207 = dma.hbm_to_vmem [thread:$0]  %s203_s11, 16, %s205_s17, [#allocation15]  }
  0x7e   :  { %s4069_s20 = smov [#allocation17]   ;;  %s3518_s12 = sshra.s32 %s227_s24, 4  ;;  %s3519_s12 = int_to_ptr.hbm [resolvable:$true] %s3518_s12 }
  0x7f   :  { %s228_s8 = sshll.u32 %s4069_s20, 4  ;;  %s3520_s15 = scalar_lea.hbm %s3519_s12, 1  ;;  %s229_s8 = int_to_ptr.vmem [resolvable:$true] %s228_s8 }
  0x80   :  { %p3521_p1 = scmp.ne.s32.totalorder %s3519_s12, %s3520_s15  ;;  %s3522_s28 = scalar_lea.hbm %s4203_s7, 1 }
  0x81   :  { %p3523_p2 = scmp.lt.s32.totalorder %s3519_s12, %s4203_s7  ;;  %p3524_p3 = scmp.lt.s32.totalorder %s3522_s28, %s3520_s15 }
  0x83   :  { %p3525_p4 = por %p3524_p3, %p3523_p2 }
  0x85   :  { %p3526_p5 = pnand %p3525_p4, %p3521_p1 }
  0x87   :  { %3529 = shalt.err (!%p3526_p5)
}
  0x88   :  { %231 = dma.hbm_to_vmem [thread:$0]  %s227_s24, 16, %s229_s8, [#allocation18]  }
  0x89   :  { %s249_s19 = sshll.u32 %s4213_s23, 4  ;;  %s4070_s2 = smov [#allocation20]   ;;  %s250_s19 = int_to_ptr.hbm [resolvable:$true] %s249_s19 }
  0x8a   :  { %s251_s27 = sshll.u32 %s4070_s2, 4  ;;  %s273_s10 = sshll.u32 %s4223_s29, 4  ;;  %s252_s27 = int_to_ptr.vmem [resolvable:$true] %s251_s27  ;;  %s274_s10 = int_to_ptr.hbm [resolvable:$true] %s273_s10 }
  0x8b   :  { %s3542_s11 = sshra.s32 %s250_s19, 4  ;;  %s3546_s7 = scalar_lea.hbm %s4213_s23, 32  ;;  %s3543_s11 = int_to_ptr.hbm [resolvable:$true] %s3542_s11 }
  0x8c   :  { %s3544_s16 = scalar_lea.hbm %s3543_s11, 32  ;;  %p3547_p7 = scmp.lt.s32.totalorder %s3543_s11, %s4213_s23 }
  0x8d   :  { %p3545_p6 = scmp.ne.s32.totalorder %s3543_s11, %s3544_s16  ;;  %p3548_p8 = scmp.lt.s32.totalorder %s3546_s7, %s3544_s16 }
  0x8f   :  { %p3549_p9 = por %p3548_p8, %p3547_p7 }
  0x91   :  { %p3550_p10 = pnand %p3549_p9, %p3545_p6 }
  0x93   :  { %3553 = shalt.err (!%p3550_p10)
}
  0x94   :  { %s4071_s6 = smov 128   ;;  %s4072_s18 = smov 8  }
  0x95   :  { %257 = dma.hbm_to_vmem [thread:$0]  %s250_s19, 512, %s252_s27, [#allocation21], %s4071_s6, %s4071_s6, %s4072_s18  }
  0x96   :  { %s4073_s24 = smov [#allocation23]   ;;  %s300_s17 = sshll.u32 %s4233_s13, 4  ;;  %s301_s17 = int_to_ptr.hbm [resolvable:$true] %s300_s17 }
  0x97   :  { %s275_s22 = sshll.u32 %s4073_s24, 4  ;;  %s3566_s23 = sshra.s32 %s274_s10, 4  ;;  %s276_s22 = int_to_ptr.vmem [resolvable:$true] %s275_s22  ;;  %s3567_s23 = int_to_ptr.hbm [resolvable:$true] %s3566_s23 }
  0x98   :  { %s3568_s26 = scalar_lea.hbm %s3567_s23, 32  ;;  %s3570_s4 = scalar_lea.hbm %s4223_s29, 32 }
  0x99   :  { %p3569_p11 = scmp.ne.s32.totalorder %s3567_s23, %s3568_s26  ;;  %p3571_p12 = scmp.lt.s32.totalorder %s3567_s23, %s4223_s29 }
  0x9a   :  { %p3572_p13 = scmp.lt.s32.totalorder %s3570_s4, %s3568_s26 }
  0x9c   :  { %p3573_p0 = por %p3572_p13, %p3571_p12 }
  0x9e   :  { %p3574_p1 = pnand %p3573_p0, %p3569_p11 }
  0xa0   :  { %3577 = shalt.err (!%p3574_p1)
}
  0xa1   :  { %281 = dma.hbm_to_vmem [thread:$0]  %s274_s10, 512, %s276_s22, [#allocation24], %s4071_s6, %s4071_s6, %s4072_s18  }
  0xa2   :  { %s321_s0 = sshll.u32 %s4243_s25, 4  ;;  %s4074_s20 = smov [#allocation26]   ;;  %s4340_s0 = int_to_ptr.hbm [resolvable:$true] %s321_s0 }
  0xa3   :  { %s302_s8 = sshll.u32 %s4074_s20, 4  ;;  %s3590_s12 = sshra.s32 %s301_s17, 4  ;;  %s303_s8 = int_to_ptr.vmem [resolvable:$true] %s302_s8  ;;  %s3591_s12 = int_to_ptr.hbm [resolvable:$true] %s3590_s12 }
  0xa4   :  { %s3592_s29 = scalar_lea.hbm %s3591_s12, 1  ;;  %s3594_s15 = scalar_lea.hbm %s4233_s13, 1 }
  0xa5   :  { %p3593_p2 = scmp.ne.s32.totalorder %s3591_s12, %s3592_s29  ;;  %p3595_p3 = scmp.lt.s32.totalorder %s3591_s12, %s4233_s13 }
  0xa6   :  { %p3596_p4 = scmp.lt.s32.totalorder %s3594_s15, %s3592_s29 }
  0xa8   :  { %p3597_p5 = por %p3596_p4, %p3595_p3 }
  0xaa   :  { %p3598_p6 = pnand %p3597_p5, %p3593_p2 }
  0xac   :  { %3601 = shalt.err (!%p3598_p6)
}
  0xad   :  { %305 = dma.hbm_to_vmem [thread:$0]  %s301_s17, 16, %s303_s8, [#allocation27]  }
  0xae   :  { %s4075_s28 = smov [#allocation29]   ;;  %s346_s2 = sshll.u32 %s4253_s21, 4  ;;  %s347_s2 = int_to_ptr.hbm [resolvable:$true] %s346_s2 }
  0xaf   :  { %s323_s19 = sshll.u32 %s4075_s28, 4  ;;  %s3614_s27 = sshra.s32 %s4340_s0, 4  ;;  %s324_s19 = int_to_ptr.vmem [resolvable:$true] %s323_s19  ;;  %s3615_s27 = int_to_ptr.hbm [resolvable:$true] %s3614_s27 }
  0xb0   :  { %s3616_s10 = scalar_lea.hbm %s3615_s27, 32  ;;  %s3618_s11 = scalar_lea.hbm %s4243_s25, 32 }
  0xb1   :  { %p3617_p7 = scmp.ne.s32.totalorder %s3615_s27, %s3616_s10  ;;  %p3619_p8 = scmp.lt.s32.totalorder %s3615_s27, %s4243_s25 }
  0xb2   :  { %p3620_p9 = scmp.lt.s32.totalorder %s3618_s11, %s3616_s10 }
  0xb4   :  { %p3621_p10 = por %p3620_p9, %p3619_p8 }
  0xb6   :  { %p3622_p11 = pnand %p3621_p10, %p3617_p7 }
  0xb8   :  { %3625 = shalt.err (!%p3622_p11)
}
  0xb9   :  { %329 = dma.hbm_to_vmem [thread:$0]  %s4340_s0, 512, %s324_s19, [#allocation30], %s4071_s6, %s4071_s6, %s4072_s18  }
  0xba   :  { %s372_s13 = sshll.u32 %s4268_s5, 4  ;;  %s4076_s16 = smov [#allocation32]   ;;  %s373_s13 = int_to_ptr.hbm [resolvable:$true] %s372_s13 }
  0xbb   :  { %s348_s7 = sshll.u32 %s4076_s16, 4  ;;  %s3638_s24 = sshra.s32 %s347_s2, 4  ;;  %s349_s7 = int_to_ptr.vmem [resolvable:$true] %s348_s7  ;;  %s3639_s24 = int_to_ptr.hbm [resolvable:$true] %s3638_s24 }
  0xbc   :  { %s3640_s25 = scalar_lea.hbm %s3639_s24, 1  ;;  %s3642_s22 = scalar_lea.hbm %s4253_s21, 1 }
  0xbd   :  { %p3641_p12 = scmp.ne.s32.totalorder %s3639_s24, %s3640_s25  ;;  %p3643_p13 = scmp.lt.s32.totalorder %s3639_s24, %s4253_s21 }
  0xbe   :  { %p3644_p0 = scmp.lt.s32.totalorder %s3642_s22, %s3640_s25 }
  0xc0   :  { %p3645_p1 = por %p3644_p0, %p3643_p13 }
  0xc2   :  { %p3646_p2 = pnand %p3645_p1, %p3641_p12 }
  0xc4   :  { %3649 = shalt.err (!%p3646_p2)
}
  0xc5   :  { %351 = dma.hbm_to_vmem [thread:$0]  %s347_s2, 16, %s349_s7, [#allocation33]  }
  0xc6   :  { %s4077_s17 = smov [#allocation35]   ;;  %s396_s26 = sshll.u32 %s4283_s3, 4  ;;  %s397_s26 = int_to_ptr.hbm [resolvable:$true] %s396_s26 }
  0xc7   :  { %s374_s23 = sshll.u32 %s4077_s17, 4  ;;  %s3662_s4 = sshra.s32 %s373_s13, 4  ;;  %s375_s23 = int_to_ptr.vmem [resolvable:$true] %s374_s23  ;;  %s3663_s4 = int_to_ptr.hbm [resolvable:$true] %s3662_s4 }
  0xc8   :  { %s3664_s0 = scalar_lea.hbm %s3663_s4, 4  ;;  %s3666_s20 = scalar_lea.hbm %s4268_s5, 4 }
  0xc9   :  { %p3665_p3 = scmp.ne.s32.totalorder %s3663_s4, %s3664_s0  ;;  %p3667_p4 = scmp.lt.s32.totalorder %s3663_s4, %s4268_s5 }
  0xca   :  { %p3668_p5 = scmp.lt.s32.totalorder %s3666_s20, %s3664_s0 }
  0xcc   :  { %p3669_p6 = por %p3668_p5, %p3667_p4 }
  0xce   :  { %p3670_p7 = pnand %p3669_p6, %p3665_p3 }
  0xd0   :  { %3673 = shalt.err (!%p3670_p7)
}
  0xd1   :  { %377 = dma.hbm_to_vmem [thread:$0]  %s373_s13, 64, %s375_s23, [#allocation36]  }
  0xd2   :  { %s137_s21 = sshll.u32 %s4145_s14, 4  ;;  %s4078_s8 = smov [#allocation38]   ;;  %s138_s21 = int_to_ptr.hbm [resolvable:$true] %s137_s21 }
  0xd3   :  { %s398_s12 = sshll.u32 %s4078_s8, 4  ;;  %s3686_s29 = sshra.s32 %s397_s26, 4  ;;  %s399_s12 = int_to_ptr.vmem [resolvable:$true] %s398_s12  ;;  %s3687_s29 = int_to_ptr.hbm [resolvable:$true] %s3686_s29 }
  0xd4   :  { %s3688_s15 = scalar_lea.hbm %s3687_s29, 1  ;;  %s3690_s28 = scalar_lea.hbm %s4283_s3, 1 }
  0xd5   :  { %p3689_p8 = scmp.ne.s32.totalorder %s3687_s29, %s3688_s15  ;;  %p3691_p9 = scmp.lt.s32.totalorder %s3687_s29, %s4283_s3 }
  0xd6   :  { %p3692_p10 = scmp.lt.s32.totalorder %s3690_s28, %s3688_s15 }
  0xd8   :  { %p3693_p11 = por %p3692_p10, %p3691_p9 }
  0xda   :  { %p3694_p12 = pnand %p3693_p11, %p3689_p8 }
  0xdc   :  { %3697 = shalt.err (!%p3694_p12)
}
  0xdd   :  { %401 = dma.hbm_to_vmem [thread:$0]  %s397_s26, 16, %s399_s12, [#allocation39]  }
  0xde   :  { %s4079_s5 = smov [#allocation6]   ;;  %s161_s2 = sshll.u32 %s4160_s30, 4  ;;  %s162_s2 = int_to_ptr.hbm [resolvable:$true] %s161_s2 }
  0xdf   :  { %s139_s19 = sshll.u32 %s4079_s5, 4  ;;  %s3710_s27 = sshra.s32 %s138_s21, 4  ;;  %s140_s19 = int_to_ptr.vmem [resolvable:$true] %s139_s19  ;;  %s3711_s27 = int_to_ptr.hbm [resolvable:$true] %s3710_s27 }
  0xe0   :  { %s3712_s10 = scalar_lea.hbm %s3711_s27, 1  ;;  %s3714_s11 = scalar_lea.hbm %s4145_s14, 1 }
  0xe1   :  { %p3713_p13 = scmp.ne.s32.totalorder %s3711_s27, %s3712_s10  ;;  %p3715_p0 = scmp.lt.s32.totalorder %s3711_s27, %s4145_s14 }
  0xe2   :  { %p3716_p1 = scmp.lt.s32.totalorder %s3714_s11, %s3712_s10 }
  0xe4   :  { %p3717_p2 = por %p3716_p1, %p3715_p0 }
  0xe6   :  { %p3718_p3 = pnand %p3717_p2, %p3713_p13 }
  0xe8   :  { %3721 = shalt.err (!%p3718_p3)
}
  0xe9   :  { %142 = dma.hbm_to_vmem [thread:$0]  %s138_s21, 16, %s140_s19, [#allocation7]  }
  0xea   :  { %s5212_s3 = sld [smem:[#allocation66_spill]]  ;;  %s4080_s16 = smov [#allocation10]  }
  0xeb   :  { %s163_s7 = sshll.u32 %s4080_s16, 4  ;;  %s3734_s24 = sshra.s32 %s162_s2, 4  ;;  %s164_s7 = int_to_ptr.vmem [resolvable:$true] %s163_s7  ;;  %s3735_s24 = int_to_ptr.hbm [resolvable:$true] %s3734_s24 }
  0xec   :  { %s3736_s25 = scalar_lea.hbm %s3735_s24, 1  ;;  %s3738_s22 = scalar_lea.hbm %s4160_s30, 1 }
  0xed   :  { %p3737_p4 = scmp.ne.s32.totalorder %s3735_s24, %s3736_s25  ;;  %p3739_p5 = scmp.lt.s32.totalorder %s3735_s24, %s4160_s30 }
  0xee   :  { %p3740_p6 = scmp.lt.s32.totalorder %s3738_s22, %s3736_s25 }
  0xf0   :  { %s191_s13 = sshll.u32 %s5212_s3, 4  ;;  %p3741_p7 = por %p3740_p6, %p3739_p5  ;;  %s192_s13 = int_to_ptr.hbm [resolvable:$true] %s191_s13 }
  0xf2   :  { %p3742_p8 = pnand %p3741_p7, %p3737_p4 }
  0xf4   :  { %3745 = shalt.err (!%p3742_p8)
}
  0xf5   :  { %166 = dma.hbm_to_vmem [thread:$0]  %s162_s2, 16, %s164_s7, [#allocation9]  }
  0xf6   :  { %s5213_s14 = sld [smem:[#allocation67_spill]]  ;;  %s4081_s17 = smov [#allocation13]  }
  0xf7   :  { %s193_s23 = sshll.u32 %s4081_s17, 4  ;;  %s3758_s4 = sshra.s32 %s192_s13, 4  ;;  %s194_s23 = int_to_ptr.vmem [resolvable:$true] %s193_s23  ;;  %s3759_s4 = int_to_ptr.hbm [resolvable:$true] %s3758_s4 }
  0xf8   :  { %s3760_s0 = scalar_lea.hbm %s3759_s4, 1  ;;  %s3762_s20 = scalar_lea.hbm %s5212_s3, 1 }
  0xf9   :  { %p3761_p9 = scmp.ne.s32.totalorder %s3759_s4, %s3760_s0  ;;  %p3763_p10 = scmp.lt.s32.totalorder %s3759_s4, %s5212_s3 }
  0xfa   :  { %p3764_p11 = scmp.lt.s32.totalorder %s3762_s20, %s3760_s0 }
  0xfc   :  { %s212_s26 = sshll.u32 %s5213_s14, 4  ;;  %p3765_p12 = por %p3764_p11, %p3763_p10  ;;  %s4368_s26 = int_to_ptr.hbm [resolvable:$true] %s212_s26 }
  0xfe   :  { %p3766_p13 = pnand %p3765_p12, %p3761_p9 }
 0x100   :  { %3769 = shalt.err (!%p3766_p13)
}
 0x101   :  { %196 = dma.hbm_to_vmem [thread:$0]  %s192_s13, 16, %s194_s23, [#allocation12]  }
 0x102   :  { %s5214_s30 = sld [smem:[#allocation68_spill]]  ;;  %s4082_s8 = smov [#allocation16]  }
 0x103   :  { %s214_s12 = sshll.u32 %s4082_s8, 4  ;;  %s3782_s29 = sshra.s32 %s4368_s26, 4  ;;  %s215_s12 = int_to_ptr.vmem [resolvable:$true] %s214_s12  ;;  %s3783_s29 = int_to_ptr.hbm [resolvable:$true] %s3782_s29 }
 0x104   :  { %s3784_s15 = scalar_lea.hbm %s3783_s29, 32  ;;  %s3786_s28 = scalar_lea.hbm %s5213_s14, 32 }
 0x105   :  { %p3785_p0 = scmp.ne.s32.totalorder %s3783_s29, %s3784_s15  ;;  %p3787_p1 = scmp.lt.s32.totalorder %s3783_s29, %s5213_s14 }
 0x106   :  { %p3788_p2 = scmp.lt.s32.totalorder %s3786_s28, %s3784_s15 }
 0x108   :  { %s237_s21 = sshll.u32 %s5214_s30, 4  ;;  %p3789_p3 = por %p3788_p2, %p3787_p1  ;;  %s238_s21 = int_to_ptr.hbm [resolvable:$true] %s237_s21 }
 0x10a   :  { %p3790_p4 = pnand %p3789_p3, %p3785_p0 }
 0x10c   :  { %3793 = shalt.err (!%p3790_p4)
}
 0x10d   :  { %s5215_s5 = sld [smem:[#allocation69_spill]]  ;;  %s4083_s19 = smov [#allocation19]  }
 0x10e   :  { %220 = dma.hbm_to_vmem [thread:$0]  %s4368_s26, 512, %s215_s12, [#allocation15], %s4071_s6, %s4071_s6, %s4072_s18  }
 0x10f   :  { %s239_s2 = sshll.u32 %s4083_s19, 4  ;;  %s3806_s10 = sshra.s32 %s238_s21, 4  ;;  %s240_s2 = int_to_ptr.vmem [resolvable:$true] %s239_s2  ;;  %s3807_s10 = int_to_ptr.hbm [resolvable:$true] %s3806_s10 }
 0x110   :  { %s3808_s11 = scalar_lea.hbm %s3807_s10, 1  ;;  %s3810_s3 = scalar_lea.hbm %s5214_s30, 1 }
 0x111   :  { %p3809_p5 = scmp.ne.s32.totalorder %s3807_s10, %s3808_s11  ;;  %p3811_p6 = scmp.lt.s32.totalorder %s3807_s10, %s5214_s30 }
 0x112   :  { %p3812_p7 = scmp.lt.s32.totalorder %s3810_s3, %s3808_s11 }
 0x113   :  { %s263_s27 = sshll.u32 %s5215_s5, 4  ;;  %s264_s27 = int_to_ptr.hbm [resolvable:$true] %s263_s27 }
 0x114   :  { %p3813_p8 = por %p3812_p7, %p3811_p6 }
 0x116   :  { %p3814_p9 = pnand %p3813_p8, %p3809_p5 }
 0x118   :  { %3817 = shalt.err (!%p3814_p9)
}
 0x119   :  { %242 = dma.hbm_to_vmem [thread:$0]  %s238_s21, 16, %s240_s2, [#allocation18]  }
 0x11a   :  { %s5216_s13 = sld [smem:[#allocation70_spill]]  ;;  %s4084_s7 = smov [#allocation22]  }
 0x11b   :  { %s265_s24 = sshll.u32 %s4084_s7, 4  ;;  %s3830_s25 = sshra.s32 %s264_s27, 4  ;;  %s266_s24 = int_to_ptr.vmem [resolvable:$true] %s265_s24  ;;  %s3831_s25 = int_to_ptr.hbm [resolvable:$true] %s3830_s25 }
 0x11c   :  { %s3832_s22 = scalar_lea.hbm %s3831_s25, 1  ;;  %s3834_s14 = scalar_lea.hbm %s5215_s5, 1 }
 0x11d   :  { %p3833_p10 = scmp.ne.s32.totalorder %s3831_s25, %s3832_s22  ;;  %p3835_p11 = scmp.lt.s32.totalorder %s3831_s25, %s5215_s5 }
 0x11e   :  { %p3836_p12 = scmp.lt.s32.totalorder %s3834_s14, %s3832_s22 }
 0x120   :  { %s286_s16 = sshll.u32 %s5216_s13, 4  ;;  %p3837_p13 = por %p3836_p12, %p3835_p11  ;;  %s4384_s16 = int_to_ptr.hbm [resolvable:$true] %s286_s16 }
 0x122   :  { %p3838_p0 = pnand %p3837_p13, %p3833_p10 }
 0x124   :  { %3841 = shalt.err (!%p3838_p0)
}
 0x125   :  { %268 = dma.hbm_to_vmem [thread:$0]  %s264_s27, 16, %s266_s24, [#allocation21]  }
 0x126   :  { %s5217_s17 = sld [smem:[#allocation71_spill]]  ;;  %s4085_s23 = smov [#allocation25]  }
 0x127   :  { %s288_s26 = sshll.u32 %s4085_s23, 4  ;;  %s3854_s0 = sshra.s32 %s4384_s16, 4  ;;  %s289_s26 = int_to_ptr.vmem [resolvable:$true] %s288_s26  ;;  %s3855_s0 = int_to_ptr.hbm [resolvable:$true] %s3854_s0 }
 0x128   :  { %s3856_s20 = scalar_lea.hbm %s3855_s0, 32  ;;  %s3858_s30 = scalar_lea.hbm %s5216_s13, 32 }
 0x129   :  { %p3857_p1 = scmp.ne.s32.totalorder %s3855_s0, %s3856_s20  ;;  %p3859_p2 = scmp.lt.s32.totalorder %s3855_s0, %s5216_s13 }
 0x12a   :  { %p3860_p3 = scmp.lt.s32.totalorder %s3858_s30, %s3856_s20 }
 0x12c   :  { %s311_s4 = sshll.u32 %s5217_s17, 4  ;;  %p3861_p4 = por %p3860_p3, %p3859_p2  ;;  %s312_s4 = int_to_ptr.hbm [resolvable:$true] %s311_s4 }
 0x12e   :  { %p3862_p5 = pnand %p3861_p4, %p3857_p1 }
 0x130   :  { %3865 = shalt.err (!%p3862_p5)
}
 0x131   :  { %s5218_s21 = sld [smem:[#allocation72_spill]]  ;;  %s4086_s12 = smov [#allocation28]  }
 0x132   :  { %294 = dma.hbm_to_vmem [thread:$0]  %s4384_s16, 512, %s289_s26, [#allocation24], %s4071_s6, %s4071_s6, %s4072_s18  }
 0x133   :  { %s313_s29 = sshll.u32 %s4086_s12, 4  ;;  %s3878_s15 = sshra.s32 %s312_s4, 4  ;;  %s314_s29 = int_to_ptr.vmem [resolvable:$true] %s313_s29  ;;  %s3879_s15 = int_to_ptr.hbm [resolvable:$true] %s3878_s15 }
 0x134   :  { %s3880_s28 = scalar_lea.hbm %s3879_s15, 1  ;;  %s3882_s5 = scalar_lea.hbm %s5217_s17, 1 }
 0x135   :  { %p3881_p6 = scmp.ne.s32.totalorder %s3879_s15, %s3880_s28  ;;  %p3883_p7 = scmp.lt.s32.totalorder %s3879_s15, %s5217_s17 }
 0x136   :  { %p3884_p8 = scmp.lt.s32.totalorder %s3882_s5, %s3880_s28 }
 0x137   :  { %s335_s8 = sshll.u32 %s5218_s21, 4  ;;  %s336_s8 = int_to_ptr.hbm [resolvable:$true] %s335_s8 }
 0x138   :  { %p3885_p9 = por %p3884_p8, %p3883_p7 }
 0x13a   :  { %p3886_p10 = pnand %p3885_p9, %p3881_p6 }
 0x13c   :  { %3889 = shalt.err (!%p3886_p10)
}
 0x13d   :  { %316 = dma.hbm_to_vmem [thread:$0]  %s312_s4, 16, %s314_s29, [#allocation27]  }
 0x13e   :  { %s5219_s19 = sld [smem:[#allocation74_spill]]  ;;  %s4087_s6 = smov [#allocation31]  }
 0x13f   :  { %s337_s18 = sshll.u32 %s4087_s6, 4  ;;  %s3902_s27 = sshra.s32 %s336_s8, 4  ;;  %s338_s18 = int_to_ptr.vmem [resolvable:$true] %s337_s18  ;;  %s3903_s27 = int_to_ptr.hbm [resolvable:$true] %s3902_s27 }
 0x140   :  { %s3904_s10 = scalar_lea.hbm %s3903_s27, 1  ;;  %s3906_s11 = scalar_lea.hbm %s5218_s21, 1 }
 0x141   :  { %p3905_p11 = scmp.ne.s32.totalorder %s3903_s27, %s3904_s10  ;;  %p3907_p12 = scmp.lt.s32.totalorder %s3903_s27, %s5218_s21 }
 0x142   :  { %p3908_p13 = scmp.lt.s32.totalorder %s3906_s11, %s3904_s10 }
 0x144   :  { %s361_s2 = sshll.u32 %s5219_s19, 4  ;;  %p3909_p0 = por %p3908_p13, %p3907_p12  ;;  %s362_s2 = int_to_ptr.hbm [resolvable:$true] %s361_s2 }
 0x146   :  { %p3910_p1 = pnand %p3909_p0, %p3905_p11 }
 0x148   :  { %3913 = shalt.err (!%p3910_p1)
}
 0x149   :  { %340 = dma.hbm_to_vmem [thread:$0]  %s336_s8, 16, %s338_s18, [#allocation30]  }
 0x14a   :  { %s5220_s3 = sld [smem:[#allocation75_spill]]  ;;  %s4088_s16 = smov [#allocation34]  }
 0x14b   :  { %s363_s7 = sshll.u32 %s4088_s16, 4  ;;  %s3926_s24 = sshra.s32 %s362_s2, 4  ;;  %s364_s7 = int_to_ptr.vmem [resolvable:$true] %s363_s7  ;;  %s3927_s24 = int_to_ptr.hbm [resolvable:$true] %s3926_s24 }
 0x14c   :  { %s3928_s25 = scalar_lea.hbm %s3927_s24, 1  ;;  %s3930_s22 = scalar_lea.hbm %s5219_s19, 1 }
 0x14d   :  { %p3929_p2 = scmp.ne.s32.totalorder %s3927_s24, %s3928_s25  ;;  %p3931_p3 = scmp.lt.s32.totalorder %s3927_s24, %s5219_s19 }
 0x14e   :  { %p3932_p4 = scmp.lt.s32.totalorder %s3930_s22, %s3928_s25 }
 0x150   :  { %s383_s13 = sshll.u32 %s5220_s3, 4  ;;  %p3933_p5 = por %p3932_p4, %p3931_p3  ;;  %s384_s13 = int_to_ptr.hbm [resolvable:$true] %s383_s13 }
 0x152   :  { %p3934_p6 = pnand %p3933_p5, %p3929_p2 }
 0x154   :  { %3937 = shalt.err (!%p3934_p6)
}
 0x155   :  { %366 = dma.hbm_to_vmem [thread:$0]  %s362_s2, 16, %s364_s7, [#allocation33]  }
 0x156   :  { %s5221_s14 = sld [smem:[#allocation78_spill]]  ;;  %s4089_s17 = smov [#allocation37]  }
 0x157   :  { %s385_s23 = sshll.u32 %s4089_s17, 4  ;;  %s3950_s4 = sshra.s32 %s384_s13, 4  ;;  %s386_s23 = int_to_ptr.vmem [resolvable:$true] %s385_s23  ;;  %s3951_s4 = int_to_ptr.hbm [resolvable:$true] %s3950_s4 }
 0x158   :  { %s3952_s0 = scalar_lea.hbm %s3951_s4, 4  ;;  %s3954_s20 = scalar_lea.hbm %s5220_s3, 4 }
 0x159   :  { %p3953_p7 = scmp.ne.s32.totalorder %s3951_s4, %s3952_s0  ;;  %p3955_p8 = scmp.lt.s32.totalorder %s3951_s4, %s5220_s3 }
 0x15a   :  { %p3956_p9 = scmp.lt.s32.totalorder %s3954_s20, %s3952_s0 }
 0x15c   :  { %s409_s26 = sshll.u32 %s5221_s14, 4  ;;  %p3957_p10 = por %p3956_p9, %p3955_p8  ;;  %s410_s26 = int_to_ptr.hbm [resolvable:$true] %s409_s26 }
 0x15e   :  { %p3958_p11 = pnand %p3957_p10, %p3953_p7 }
 0x160   :  { %3961 = shalt.err (!%p3958_p11)
}
 0x161   :  { %388 = dma.hbm_to_vmem [thread:$0]  %s384_s13, 64, %s386_s23, [#allocation36]  }
 0x162   :  { %s4090_s30 = smov [#allocation40]   ;;  %s3974_s8 = sshra.s32 %s410_s26, 4  ;;  %s3975_s8 = int_to_ptr.hbm [resolvable:$true] %s3974_s8 }
 0x163   :  { %s411_s21 = sshll.u32 %s4090_s30, 4  ;;  %s3976_s12 = scalar_lea.hbm %s3975_s8, 1  ;;  %s412_s21 = int_to_ptr.vmem [resolvable:$true] %s411_s21 }
 0x164   :  { %p3977_p12 = scmp.ne.s32.totalorder %s3975_s8, %s3976_s12  ;;  %s3978_s29 = scalar_lea.hbm %s5221_s14, 1 }
 0x165   :  { %p3979_p13 = scmp.lt.s32.totalorder %s3975_s8, %s5221_s14  ;;  %p3980_p0 = scmp.lt.s32.totalorder %s3978_s29, %s3976_s12 }
 0x167   :  { %p3981_p1 = por %p3980_p0, %p3979_p13 }
 0x169   :  { %p3982_p2 = pnand %p3981_p1, %p3977_p12 }
 0x16b   :  { %3985 = shalt.err (!%p3982_p2)
}
 0x16c   :  { %414 = dma.hbm_to_vmem [thread:$0]  %s410_s26, 16, %s412_s21, [#allocation39]  }
 0x16d   :  { %3998 = dma.done.wait [#allocation7], 16  }
 0x16e   :  { %3999 = vsyncadd [#allocation7], 4294967280 }
 0x16f   :  { %4000 = dma.done.wait [#allocation9], 32  }
 0x170   :  { %4001 = vsyncadd [#allocation9], 4294967264 }
 0x171   :  { %4002 = dma.done.wait [#allocation12], 32  }
 0x172   :  { %4003 = vsyncadd [#allocation12], 4294967264 }
 0x173   :  { %4004 = dma.done.wait [#allocation15], 528  }
 0x174   :  { %4005 = vsyncadd [#allocation15], 4294966768 }
 0x175   :  { %4006 = dma.done.wait [#allocation18], 32  }
 0x176   :  { %4007 = vsyncadd [#allocation18], 4294967264 }
 0x177   :  { %4008 = dma.done.wait [#allocation21], 528  }
 0x178   :  { %4009 = vsyncadd [#allocation21], 4294966768 }
 0x179   :  { %4010 = dma.done.wait [#allocation24], 1024  }
 0x17a   :  { %4011 = vsyncadd [#allocation24], 4294966272 }
 0x17b   :  { %4012 = dma.done.wait [#allocation27], 32  }
 0x17c   :  { %4013 = vsyncadd [#allocation27], 4294967264 }
 0x17d   :  { %4014 = dma.done.wait [#allocation30], 528  }
 0x17e   :  { %4015 = vsyncadd [#allocation30], 4294966768 }
 0x17f   :  { %4016 = dma.done.wait [#allocation33], 32  }
 0x180   :  { %4017 = vsyncadd [#allocation33], 4294967264 }
 0x181   :  { %4018 = dma.done.wait [#allocation36], 128  }
 0x182   :  { %4019 = vsyncadd [#allocation36], 4294967168 }
 0x183   :  { %4020 = dma.done.wait [#allocation39], 32  }
 0x184   :  { %4021 = vsyncadd [#allocation39], 4294967264  ;;  %s5222_s15 = sld [smem:[#allocation57_spill]]  ;;  %vm542_vm0 = vcmask 64512   ;;  %vm572_vm1 = vcmask 130048   ;;  %vm814_vm2 = vcmask 1040384  }
 0x185   :  { %s5223_s28 = sld [smem:[#allocation53_spill]]  ;;  %vm795_vm3 = vcmask 7168   ;;  %vm687_vm4 = vcmask 261120   ;;  %v3339_v61 = vld [vmem:[#allocation6] ss:$0 sm:$0xff] }
 0x186   :  { %s5224_s5 = sld [smem:[#allocation58_spill]] }
 0x187   :  { %s5225_s19 = sld [smem:[#allocation54_spill]] }
 0x188   :  { %s5226_s6 = sld [smem:[#allocation55_spill]] }
 0x189   :  { %s5227_s18 = sld [smem:[#allocation60_spill]] }
 0x18a   :  { %v537_v4 = vld [vmem:[%s5222_s15] sm:$0xff]  ;;  %s5228_s2 = sld [smem:[#allocation59_spill]] }
 0x18b   :  { %v535_v5 = vld [vmem:[%s5223_s28] sm:$0xff]  ;;  %564 = vmatpush.msra.mxu0 %v537_v4  ;;  %v536_v6 = vld [vmem:[%s5223_s28 + $0x8] sm:$0xff]  ;;  %s5229_s27 = sld [smem:[#allocation61_spill]] }
 0x18c   :  { %3088 = vmatmul.msk.f32.vlgmr.msra.gmra.mxu0 %vm542_vm0, %v535_v5  ;;  %v3338_v8 = vld [vmem:[%s5224_s5] ss:$0 sm:$0xff]  ;;  %s5230_s10 = sld [smem:[#allocation56_spill]] }
 0x18d   :  { %v4415_v12 = vld [vmem:[%s5225_s19] sm:$0xff]  ;;  %v4425_v14 = vld [vmem:[%s5225_s19 + $0x8] sm:$0xff]  ;;  %v4435_v16 = vld [vmem:[%s5225_s19 + $0x10] sm:$0xff]  ;;  %s5231_s11 = sld [smem:[#allocation62_spill]] }
 0x18e   :  { %v4418_v13 = vld [vmem:[%s5225_s19 + $0x20] sm:$0xff]  ;;  %v4428_v15 = vld [vmem:[%s5225_s19 + $0x28] sm:$0xff]  ;;  %v4445_v18 = vld [vmem:[%s5225_s19 + $0x18] sm:$0xff]  ;;  %s5232_s3 = sld [smem:[#allocation63_spill]] }
 0x18f   :  { %v4438_v17 = vld [vmem:[%s5226_s6] sm:$0xff]  ;;  %v4448_v19 = vld [vmem:[%s5226_s6 + $0x8] sm:$0xff]  ;;  %v686_v20 = vld [vmem:[%s5227_s18 + $0x18] sm:$0xff]  ;;  %s5233_s13 = sld [smem:[#allocation64_spill]] }
 0x190   :  { %v685_v21 = vld [vmem:[%s5227_s18 + $0x10] sm:$0xff]  ;;  %718 = vmatpush.msra.mxu3 %v686_v20  ;;  %v684_v22 = vld [vmem:[%s5227_s18 + $0x8] sm:$0xff]  ;;  %v4463_v24 = vld [vmem:[%s5226_s6 + $0x18] sm:$0xff]  ;;  %vm530_vm13 = vcmp.gt.f32.partialorder %v4448_v19, 0.5  ;;  %vm529_vm14 = vcmp.gt.f32.partialorder %v4438_v17, 0.5  ;;  %s5234_s16 = sld [smem:[#allocation65_spill]] }
 0x191   :  { %v4458_v23 = vld [vmem:[%s5226_s6 + $0x10] sm:$0xff]  ;;  %v4468_v25 = vld [vmem:[%s5226_s6 + $0x20] sm:$0xff]  ;;  %v4473_v26 = vld [vmem:[%s5226_s6 + $0x28] sm:$0xff]  ;;  %s5235_s7 = sld [smem:[#allocation73_spill]] }
 0x192   :  { %719 = vmatpush.msra.mxu3 %v685_v21  ;;  %v683_v27 = vld [vmem:[%s5227_s18] sm:$0xff]  ;;  %v682_v28 = vld [vmem:[%s5228_s2 + $0x18] sm:$0xff]  ;;  %v681_v29 = vld [vmem:[%s5228_s2 + $0x10] sm:$0xff]  ;;  %vm534_vm11 = vcmp.gt.f32.partialorder %v4473_v26, 0.5  ;;  %vm533_vm12 = vcmp.gt.f32.partialorder %v4468_v25, 0.5  ;;  %vm531_vm15 = vcmp.gt.f32.partialorder %v4458_v23, 0.5 }
 0x193   :  { %771 = vmatpush.msrb.mxu0 %v682_v28  ;;  %v680_v30 = vld [vmem:[%s5228_s2 + $0x8] sm:$0xff]  ;;  %v679_v31 = vld [vmem:[%s5228_s2] sm:$0xff]  ;;  %v4505_v38 = vld [vmem:[%s5230_s10 + $0x10] sm:$0xff]  ;;  %s5236_s24 = sld [smem:[#allocation76_spill]] }
 0x194   :  { %3089 = vmatmul.msk.f32.gmra.mxu0 %vm542_vm0, %v536_v6  ;;  %720 = vmatpush.msra.mxu3 %v684_v22  ;;  %v794_v32 = vld [vmem:[%s5229_s27] sm:$0x1]  ;;  %v4494_v35 = vld [vmem:[%s5230_s10 + $0x8] sm:$0xff]  ;;  %v4512_v40 = vld [vmem:[%s5230_s10 + $0x18] sm:$0xff]  ;;  %vm532_vm0 = vcmp.gt.f32.partialorder %v4463_v24, 0.5  ;;  %s5237_s25 = sld [smem:[#allocation77_spill]] }
 0x195   :  { %772 = vmatpush.msrb.mxu0 %v681_v29  ;;  %v4485_v33 = vld [vmem:[%s5230_s10] sm:$0xff]  ;;  %v4532_v46 = vld [vmem:[%s5230_s10 + $0x28] sm:$0xff]  ;;  %v878_v51 = vld [vmem:[%s5231_s11 + $0x18] sm:$0xff] }
 0x196   :  { %721 = vmatpush.msra.mxu3 %v683_v27  ;;  %v4522_v43 = vld [vmem:[%s5230_s10 + $0x20] sm:$0xff]  ;;  %v877_v52 = vld [vmem:[%s5231_s11 + $0x10] sm:$0xff]  ;;  %v876_v53 = vld [vmem:[%s5231_s11 + $0x8] sm:$0xff] }
 0x197   :  { %773 = vmatpush.msrb.mxu0 %v680_v30  ;;  %v875_v54 = vld [vmem:[%s5231_s11] sm:$0xff] }
 0x199   :  { %774 = vmatpush.msrb.mxu0 %v679_v31 }
 0x209   :  { %v566_v7 = vpop.f32.mrf.mxu0 }
 0x20a   :  { %v567_v11 = vadd.f32 %v3338_v8, %v566_v7 }
 0x211   :  { %v569_v9 = vpop.f32.mrf.mxu0 }
 0x212   :  { %v570_v10 = vadd.f32 %v3338_v8, %v569_v9 }
 0x214   :  { %605 = vmatpush.msra.mxu1 %v570_v10  ;;  %3262 = vmatpush.msra.mxu2 %v570_v10 }
 0x216   :  { %606 = vmatpush.msra.mxu1 %v567_v11  ;;  %3263 = vmatpush.msra.mxu2 %v567_v11 }
 0x217   :  { %3090 = vmatmul.msk.f32.vlgmr.msra.gmra.mxu1 %vm572_vm1, %v4415_v12  ;;  %3094 = vmatmul.msk.f32.vlgmr.msra.gmra.mxu2 %vm572_vm1, %v4418_v13 }
 0x218   :  { %658 = vmatpush.msrb.mxu2 %v570_v10  ;;  %3114 = vmatpush.msk.msrb.mxu1 %vm814_vm2, %v794_v32 }
 0x21a   :  { %659 = vmatpush.msrb.mxu2 %v567_v11 }
 0x21c   :  { %913 = vmatpush.msra.mxu2 %v878_v51 }
 0x21e   :  { %914 = vmatpush.msra.mxu2 %v877_v52 }
 0x21f   :  { %3091 = vmatmul.msk.f32.gmra.mxu1 %vm572_vm1, %v4425_v14  ;;  %3095 = vmatmul.msk.f32.gmra.mxu2 %vm572_vm1, %v4428_v15 }
 0x220   :  { %915 = vmatpush.msra.mxu2 %v876_v53 }
 0x222   :  { %916 = vmatpush.msra.mxu2 %v875_v54 }
 0x227   :  { %3092 = vmatmul.msk.f32.gmra.mxu1 %vm572_vm1, %v4435_v16  ;;  %3096 = vmatmul.msk.f32.vlgmr.msrb.gmra.mxu2 %vm572_vm1, %v4438_v17 }
 0x22f   :  { %3093 = vmatmul.msk.f32.gmra.mxu1 %vm572_vm1, %v4445_v18  ;;  %3097 = vmatmul.msk.f32.gmra.mxu2 %vm572_vm1, %v4448_v19 }
 0x237   :  { %3098 = vmatmul.msk.f32.gmra.mxu2 %vm572_vm1, %v4458_v23  ;;  %3115 = vmatmul.msk.f32.vlgmr.msrb.gmra.mxu1 %vm795_vm3, %v4485_v33 }
 0x23f   :  { %3099 = vmatmul.msk.f32.gmra.mxu2 %vm572_vm1, %v4463_v24  ;;  %3116 = vmatmul.msk.f32.gmra.mxu1 %vm795_vm3, %v4494_v35 }
 0x247   :  { %3100 = vmatmul.msk.f32.gmra.mxu2 %vm572_vm1, %v4468_v25  ;;  %3117 = vmatmul.msk.f32.gmra.mxu1 %vm795_vm3, %v4505_v38 }
 0x24f   :  { %3101 = vmatmul.msk.f32.gmra.mxu2 %vm572_vm1, %v4473_v26  ;;  %3118 = vmatmul.msk.f32.gmra.mxu1 %vm795_vm3, %v4512_v40 }
 0x257   :  { %3119 = vmatmul.msk.f32.gmra.mxu1 %vm795_vm3, %v4522_v43 }
 0x25f   :  { %3120 = vmatmul.msk.f32.gmra.mxu1 %vm795_vm3, %v4532_v46 }
 0x294   :  { %v4489_v34 = vpop.f32.mrf.mxu1 }
 0x295   :  { %3102 = vmatmul.msk.f32.vlgmr.msra.gmra.mxu3 %vm687_vm4, %v4489_v34 }
 0x29a   :  { %v4498_v36 = vpop.f32.mrf.mxu2 }
 0x29c   :  { %v4500_v37 = vpop.f32.mrf.mxu1 }
 0x29d   :  { %3103 = vmatmul.msk.f32.gmra.mxu3 %vm687_vm4, %v4500_v37 }
 0x2a2   :  { %v4509_v39 = vpop.f32.mrf.mxu2 }
 0x2a4   :  { %v4514_v41 = vpop.f32.mrf.mxu1 }
 0x2a5   :  { %3104 = vmatmul.msk.f32.gmra.mxu3 %vm687_vm4, %v4514_v41 }
 0x2aa   :  { %v661_v42 = vpop.f32.mrf.mxu2 }
 0x2ab   :  { %3108 = vmatmul.msk.f32.vlgmr.msrb.gmra.mxu0 %vm687_vm4, %v661_v42 }
 0x2ac   :  { %v4524_v44 = vpop.f32.mrf.mxu1 }
 0x2ad   :  { %3105 = vmatmul.msk.f32.gmra.mxu3 %vm687_vm4, %v4524_v44 }
 0x2b2   :  { %v664_v45 = vpop.f32.mrf.mxu2 }
 0x2b3   :  { %3109 = vmatmul.msk.f32.gmra.mxu0 %vm687_vm4, %v664_v45 }
 0x2b4   :  { %v835_v55 = vpop.f32.mrf.mxu1 }
 0x2b5   :  { %3106 = vmatmul.msk.f32.gmra.mxu3 %vm687_vm4, %v4498_v36 }
 0x2ba   :  { %v667_v47 = vpop.f32.mrf.mxu2 }
 0x2bb   :  { %3110 = vmatmul.msk.f32.gmra.mxu0 %vm687_vm4, %v667_v47 }
 0x2bc   :  { %v838_v57 = vpop.f32.mrf.mxu1 }
 0x2bd   :  { %3107 = vmatmul.msk.f32.gmra.mxu3 %vm687_vm4, %v4509_v39 }
 0x2c2   :  { %v670_v48 = vpop.f32.mrf.mxu2 }
 0x2c3   :  { %3111 = vmatmul.msk.f32.gmra.mxu0 %vm687_vm4, %v670_v48 }
 0x2c4   :  { %v841_v3 = vpop.f32.mrf.mxu1 }
 0x2ca   :  { %v673_v49 = vpop.f32.mrf.mxu2 }
 0x2cb   :  { %3112 = vmatmul.msk.f32.gmra.mxu0 %vm687_vm4, %v673_v49 }
 0x2cc   :  { %v844_v11 = vpop.f32.mrf.mxu1 }
 0x2d2   :  { %v676_v50 = vpop.f32.mrf.mxu2 }
 0x2d3   :  { %3113 = vmatmul.msk.f32.gmra.mxu0 %vm687_vm4, %v676_v50 }
 0x2d4   :  { %v847_v31 = vpop.f32.mrf.mxu1 }
 0x2dc   :  { %v850_v51 = vpop.f32.mrf.mxu1 }
 0x318   :  { %v723_v56 = vpop.f32.mrf.mxu3 }
 0x320   :  { %v726_v58 = vpop.f32.mrf.mxu3 }
 0x328   :  { %v776_v59 = vpop.f32.mrf.mxu0  ;;  %v729_v4 = vpop.f32.mrf.mxu3 }
 0x329   :  { %v777_v60 = vadd.f32 %v776_v59, %v723_v56 }
 0x32b   :  { %v853_v62 = vadd.f32 %v835_v55, %v777_v60 }
 0x32d   :  { %v863_v63 = vadd.f32 %v3339_v61, %v853_v62  ;;  %v3341_v62 = vld [vmem:[#allocation10] ss:$0 sm:$0xff] }
 0x32f   :  { %v869_v0 = vmax.f32 %v863_v63, 0.0 }
 0x330   :  { %v779_v1 = vpop.f32.mrf.mxu0  ;;  %v732_v20 = vpop.f32.mrf.mxu3 }
 0x331   :  { %v780_v2 = vadd.f32 %v779_v1, %v726_v58  ;;  %3121 = vmatmul.msk.f32.vlgmr.msra.gmra.mxu2 %vm687_vm4, %v869_v0  ;;  %v3340_v58 = vld [vmem:[#allocation8] ss:$0 sm:$0xff] }
 0x333   :  { %v854_v5 = vadd.f32 %v838_v57, %v780_v2 }
 0x335   :  { %v864_v6 = vadd.f32 %v3339_v61, %v854_v5 }
 0x337   :  { %v870_v7 = vmax.f32 %v864_v6, 0.0 }
 0x338   :  { %v782_v8 = vpop.f32.mrf.mxu0  ;;  %v735_v32 = vpop.f32.mrf.mxu3 }
 0x339   :  { %v783_v9 = vadd.f32 %v782_v8, %v729_v4  ;;  %3122 = vmatmul.msk.f32.gmra.mxu2 %vm687_vm4, %v870_v7 }
 0x33b   :  { %v855_v10 = vadd.f32 %v841_v3, %v783_v9 }
 0x33d   :  { %v865_v21 = vadd.f32 %v3339_v61, %v855_v10 }
 0x33f   :  { %v871_v22 = vmax.f32 %v865_v21, 0.0 }
 0x340   :  { %v785_v27 = vpop.f32.mrf.mxu0  ;;  %v738_v52 = vpop.f32.mrf.mxu3 }
 0x341   :  { %v786_v28 = vadd.f32 %v785_v27, %v732_v20  ;;  %3123 = vmatmul.msk.f32.gmra.mxu2 %vm687_vm4, %v871_v22 }
 0x343   :  { %v856_v29 = vadd.f32 %v844_v11, %v786_v28 }
 0x345   :  { %v866_v30 = vadd.f32 %v3339_v61, %v856_v29 }
 0x347   :  { %v872_v42 = vmax.f32 %v866_v30, 0.0 }
 0x348   :  { %v788_v45 = vpop.f32.mrf.mxu0 }
 0x349   :  { %v789_v47 = vadd.f32 %v788_v45, %v735_v32  ;;  %3124 = vmatmul.msk.f32.gmra.mxu2 %vm687_vm4, %v872_v42 }
 0x34b   :  { %v857_v48 = vadd.f32 %v847_v31, %v789_v47 }
 0x34d   :  { %v867_v49 = vadd.f32 %v3339_v61, %v857_v48 }
 0x34f   :  { %v873_v50 = vmax.f32 %v867_v49, 0.0 }
 0x350   :  { %v791_v53 = vpop.f32.mrf.mxu0 }
 0x351   :  { %v792_v54 = vadd.f32 %v791_v53, %v738_v52  ;;  %3125 = vmatmul.msk.f32.gmra.mxu2 %vm687_vm4, %v873_v50  ;;  %v4091_v50 = vmov 0  }
 0x352   :  { %3335 = vset.pattern.permute.xlu0 %v4091_v50  ;;  %3336 = vset.pattern.permute.xlu1 %v4091_v50 }
 0x353   :  { %v858_v55 = vadd.f32 %v850_v51, %v792_v54  ;;  %3337 = vset.pattern.permute.xlu2 %v4091_v50  ;;  %v3342_v51 = vld [vmem:[#allocation2] ss:$0 sm:$0xff] }
 0x355   :  { %v868_v56 = vadd.f32 %v3339_v61, %v858_v55 }
 0x357   :  { %v874_v57 = vmax.f32 %v868_v56, 0.0 }
 0x359   :  { %3126 = vmatmul.msk.f32.gmra.mxu2 %vm687_vm4, %v874_v57 }
 0x3b4   :  { %v918_v59 = vpop.f32.mrf.mxu2 }
 0x3b5   :  { %v919_v60 = vadd.f32 %v3340_v58, %v918_v59 }
 0x3b7   :  { %v936_v63 = vmax.f32 %v919_v60, 0.0 }
 0x3b9   :  { %v946_v0 = vmul.f32 %v3341_v62, %v936_v63 }
 0x3bb   :  { %v952_v1 = vsel %vm687_vm4, %v946_v0, 0.0 }
 0x3bc   :  { %953 = vadd.xlane.f32.xlu0 %v952_v1  ;;  %v921_v2 = vpop.f32.mrf.mxu2 }
 0x3bd   :  { %v922_v3 = vadd.f32 %v3340_v58, %v921_v2 }
 0x3bf   :  { %v937_v4 = vmax.f32 %v922_v3, 0.0 }
 0x3c1   :  { %v947_v5 = vmul.f32 %v3341_v62, %v937_v4 }
 0x3c3   :  { %v955_v6 = vsel %vm687_vm4, %v947_v5, 0.0 }
 0x3c4   :  { %956 = vadd.xlane.f32.xlu0 %v955_v6  ;;  %v924_v61 = vpop.f32.mrf.mxu2 }
 0x3c5   :  { %v925_v7 = vadd.f32 %v3340_v58, %v924_v61 }
 0x3c7   :  { %v938_v8 = vmax.f32 %v925_v7, 0.0 }
 0x3c9   :  { %v948_v9 = vmul.f32 %v3341_v62, %v938_v8 }
 0x3cb   :  { %v958_v10 = vsel %vm687_vm4, %v948_v9, 0.0 }
 0x3cc   :  { %959 = vadd.xlane.f32.xlu2 %v958_v10  ;;  %v927_v11 = vpop.f32.mrf.mxu2 }
 0x3cd   :  { %v928_v20 = vadd.f32 %v3340_v58, %v927_v11 }
 0x3cf   :  { %v939_v21 = vmax.f32 %v928_v20, 0.0 }
 0x3d1   :  { %v949_v22 = vmul.f32 %v3341_v62, %v939_v21 }
 0x3d3   :  { %v961_v27 = vsel %vm687_vm4, %v949_v22, 0.0 }
 0x3d4   :  { %962 = vadd.xlane.f32.xlu2 %v961_v27  ;;  %v930_v28 = vpop.f32.mrf.mxu2 }
 0x3d5   :  { %v931_v29 = vadd.f32 %v3340_v58, %v930_v28 }
 0x3d7   :  { %v940_v30 = vmax.f32 %v931_v29, 0.0 }
 0x3d9   :  { %v950_v31 = vmul.f32 %v3341_v62, %v940_v30 }
 0x3db   :  { %v964_v32 = vsel %vm687_vm4, %v950_v31, 0.0 }
 0x3dc   :  { %965 = vadd.xlane.f32.xlu1 %v964_v32  ;;  %v933_v42 = vpop.f32.mrf.mxu2 }
 0x3dd   :  { %v934_v45 = vadd.f32 %v3340_v58, %v933_v42 }
 0x3df   :  { %v941_v47 = vmax.f32 %v934_v45, 0.0 }
 0x3e1   :  { %v951_v48 = vmul.f32 %v3341_v62, %v941_v47 }
 0x3e3   :  { %v967_v49 = vsel %vm687_vm4, %v951_v48, 0.0 }
 0x3e4   :  { %968 = vadd.xlane.f32.xlu1 %v967_v49 }
 0x42f   :  { %v954_v52 = vpop.xlane.xlu0 %953 }
 0x430   :  { %v974_v53 = vadd.f32 %v3342_v51, %v954_v52 }
 0x432   :  { %v986_v54 = vmul.f32 0.2, %v974_v53  ;;  %vm980_vm5 = vcmp.gt.f32.partialorder %v974_v53, 0.0 }
 0x434   :  { %v4560_v55 = vsel %vm980_vm5, %v974_v53, %v986_v54  ;;  %vm1125_vm5 = vcmask 392192  }
 0x435   :  { %1000 = vperm.xlu0 %3335, %v4560_v55  }
 0x437   :  { %v957_v56 = vpop.xlane.xlu0 %956 }
 0x438   :  { %v975_v57 = vadd.f32 %v3342_v51, %v957_v56 }
 0x43a   :  { %v987_v58 = vmul.f32 0.2, %v975_v57  ;;  %vm981_vm6 = vcmp.gt.f32.partialorder %v975_v57, 0.0 }
 0x43c   :  { %v4563_v59 = vsel %vm981_vm6, %v975_v57, %v987_v58 }
 0x43d   :  { %1005 = vperm.xlu1 %3336, %v4563_v59  }
 0x43f   :  { %v960_v60 = vpop.xlane.xlu2 %959 }
 0x440   :  { %v976_v62 = vadd.f32 %v3342_v51, %v960_v60 }
 0x442   :  { %v988_v63 = vmul.f32 0.2, %v976_v62  ;;  %vm982_vm7 = vcmp.gt.f32.partialorder %v976_v62, 0.0 }
 0x444   :  { %v4566_v0 = vsel %vm982_vm7, %v976_v62, %v988_v63 }
 0x445   :  { %1010 = vperm.xlu1 %3336, %v4566_v0  }
 0x447   :  { %v963_v61 = vpop.xlane.xlu2 %962 }
 0x448   :  { %v977_v8 = vadd.f32 %v3342_v51, %v963_v61 }
 0x44a   :  { %v989_v10 = vmul.f32 0.2, %v977_v8  ;;  %vm983_vm10 = vcmp.gt.f32.partialorder %v977_v8, 0.0 }
 0x44c   :  { %v4575_v11 = vsel %vm983_vm10, %v977_v8, %v989_v10 }
 0x44f   :  { %v966_v1 = vpop.xlane.xlu1 %965 }
 0x450   :  { %v978_v2 = vadd.f32 %v3342_v51, %v966_v1 }
 0x452   :  { %v990_v3 = vmul.f32 0.2, %v978_v2  ;;  %vm984_vm8 = vcmp.gt.f32.partialorder %v978_v2, 0.0 }
 0x454   :  { %v4569_v4 = vsel %vm984_vm8, %v978_v2, %v990_v3 }
 0x455   :  { %1020 = vperm.xlu2 %3337, %v4569_v4  }
 0x457   :  { %v969_v5 = vpop.xlane.xlu1 %968 }
 0x458   :  { %v979_v6 = vadd.f32 %v3342_v51, %v969_v5 }
 0x45a   :  { %v991_v7 = vmul.f32 0.2, %v979_v6  ;;  %vm985_vm9 = vcmp.gt.f32.partialorder %v979_v6, 0.0 }
 0x45c   :  { %v4572_v9 = vsel %vm985_vm9, %v979_v6, %v991_v7 }
 0x45d   :  { %1025 = vperm.xlu2 %3337, %v4572_v9  }
 0x465   :  { %1015 = vperm.xlu2 %3337, %v4575_v11  }
 0x4a7   :  { %v1001_v28 = vpop.permute.xlu0 %1000 }
 0x4a8   :  { %v1028_v42 = vsel %vm529_vm14, %v1001_v28, -1e+30 }
 0x4a9   :  { %v1034_v50 = vsel %vm572_vm1, %v1028_v42, -inf }
 0x4af   :  { %v1021_v20 = vpop.permute.xlu2 %1020  ;;  %v1006_v21 = vpop.permute.xlu1 %1005 }
 0x4b0   :  { %v1032_v29 = vsel %vm533_vm12, %v1021_v20, -1e+30  ;;  %v1029_v30 = vsel %vm530_vm13, %v1006_v21, -1e+30 }
 0x4b1   :  { %v1038_v45 = vsel %vm572_vm1, %v1032_v29, -inf  ;;  %v1035_v47 = vsel %vm572_vm1, %v1029_v30, -inf }
 0x4b2   :  { %v1039_v52 = vmax.f32 %v1034_v50, %v1038_v45 }
 0x4b7   :  { %v1026_v22 = vpop.permute.xlu2 %1025  ;;  %v1011_v32 = vpop.permute.xlu1 %1010 }
 0x4b8   :  { %v1033_v27 = vsel %vm534_vm11, %v1026_v22, -1e+30  ;;  %v1030_v49 = vsel %vm531_vm15, %v1011_v32, -1e+30 }
 0x4b9   :  { %v1040_v31 = vsel %vm572_vm1, %v1033_v27, -inf  ;;  %v1036_v54 = vsel %vm572_vm1, %v1030_v49, -inf }
 0x4ba   :  { %v1041_v48 = vmax.f32 %v1035_v47, %v1040_v31 }
 0x4bc   :  { %v1042_v57 = vmax.f32 %v1039_v52, %v1041_v48 }
 0x4bf   :  { %v1016_v51 = vpop.permute.xlu2 %1015 }
 0x4c0   :  { %v1031_v53 = vsel %vm532_vm0, %v1016_v51, -1e+30 }
 0x4c1   :  { %v1037_v56 = vsel %vm572_vm1, %v1031_v53, -inf }
 0x4c2   :  { %v1043_v58 = vmax.f32 %v1036_v54, %v1037_v56 }
 0x4c4   :  { %v1044_v60 = vmax.f32 %v1042_v57, %v1043_v58 }
 0x4c6   :  { %v1045_v62 = vrot.slane %v1044_v60, 4 }
 0x4c8   :  { %v1046_v63 = vmax.f32 %v1044_v60, %v1045_v62 }
 0x4ca   :  { %v1047_v1 = vrot.slane %v1046_v63, 2 }
 0x4cc   :  { %v1048_v2 = vmax.f32 %v1046_v63, %v1047_v1 }
 0x4ce   :  { %v1049_v3 = vrot.slane %v1048_v2, 1 }
 0x4d0   :  { %v1050_v5 = vmax.f32 %v1048_v2, %v1049_v3 }
 0x4d2   :  { %v1056_v6 = vmul.f32 %v1050_v5, %v4473_v26  ;;  %v1055_v61 = vmul.f32 %v1050_v5, %v4468_v25  ;;  %v1054_v7 = vmul.f32 %v1050_v5, %v4463_v24  ;;  %v1053_v21 = vmul.f32 %v1050_v5, %v4458_v23 }
 0x4d3   :  { %v1051_v22 = vmul.f32 %v1050_v5, %v4438_v17  ;;  %v1052_v27 = vmul.f32 %v1050_v5, %v4448_v19 }
 0x4d4   :  { %v1072_v8 = vsel %vm572_vm1, %v1056_v6, 0.0  ;;  %v1069_v10 = vsel %vm572_vm1, %v1055_v61, 0.0  ;;  %v1066_v20 = vsel %vm572_vm1, %v1054_v7, 0.0  ;;  %v1063_v28 = vsel %vm572_vm1, %v1053_v21, 0.0 }
 0x4d5   :  { %1073 = vadd.xlane.f32.xlu1 %v1072_v8  ;;  %1070 = vadd.xlane.f32.xlu0 %v1069_v10  ;;  %v1057_v29 = vsel %vm572_vm1, %v1051_v22, 0.0  ;;  %v1060_v30 = vsel %vm572_vm1, %v1052_v27, 0.0 }
 0x4d6   :  { %1067 = vadd.xlane.f32.xlu2 %v1066_v20 }
 0x4dd   :  { %1064 = vadd.xlane.f32.xlu1 %v1063_v28  ;;  %1058 = vadd.xlane.f32.xlu0 %v1057_v29  ;;  %v1233_v29 = vld [vmem:[%s5232_s3 + $0x18] sm:$0xff] }
 0x4de   :  { %1061 = vadd.xlane.f32.xlu2 %v1060_v30  ;;  %v1232_v30 = vld [vmem:[%s5232_s3 + $0x10] sm:$0xff] }
 0x517   :  { %1093 = vxpose.xlu1.b32.start [1/6] (short) (narrow) %v4438_v17, 16 }
 0x51f   :  { %1094 = vxpose.xlu1.b32.cont [2/6] (short) (narrow) %v4448_v19, 16 }
 0x527   :  { %1095 = vxpose.xlu1.b32.cont [3/6] (short) (narrow) %v4458_v23, 16 }
 0x52f   :  { %1096 = vxpose.xlu1.b32.cont [4/6] (short) (narrow) %v4463_v24, 16 }
 0x537   :  { %1097 = vxpose.xlu1.b32.cont [5/6] (short) (narrow) %v4468_v25, 16 }
 0x53f   :  { %1098 = vxpose.xlu1.b32.end [6/6] (short) (narrow) %v4473_v26, 16 }
 0x548   :  { %v1074_v31 = vpop.xlane.xlu1 %1073  ;;  %v1071_v32 = vpop.xlane.xlu0 %1070 }
 0x549   :  { %v1080_v42 = vsub.f32 %v4572_v9, %v1074_v31  ;;  %v1079_v45 = vsub.f32 %v4569_v4, %v1071_v32  ;;  %v1068_v47 = vpop.xlane.xlu2 %1067  ;;  %v1231_v31 = vld [vmem:[%s5232_s3 + $0x8] sm:$0xff]  ;;  %v1230_v32 = vld [vmem:[%s5232_s3] sm:$0xff] }
 0x54a   :  { %v1078_v48 = vsub.f32 %v4575_v11, %v1068_v47 }
 0x54b   :  { %v1091_v49 = vmul.f32 1.442695, %v1080_v42  ;;  %v1089_v50 = vmul.f32 1.442695, %v1079_v45 }
 0x54c   :  { %v1087_v51 = vmul.f32 1.442695, %v1078_v48 }
 0x54d   :  { %3358 = vpow2.f32 %v1091_v49 }
 0x54e   :  { %3360 = vpow2.f32 %v1089_v50 }
 0x54f   :  { %3362 = vpow2.f32 %v1087_v51 }
 0x550   :  { %v1065_v52 = vpop.xlane.xlu1 %1064  ;;  %v1059_v53 = vpop.xlane.xlu0 %1058 }
 0x551   :  { %v1077_v54 = vsub.f32 %v4566_v0, %v1065_v52  ;;  %v1062_v56 = vpop.xlane.xlu2 %1061  ;;  %v1075_v57 = vsub.f32 %v4560_v55, %v1059_v53  ;;  %v3343_v52 = vld [vmem:[#allocation11] ss:$0 sm:$0xff] }
 0x552   :  { %v1076_v9 = vsub.f32 %v4563_v59, %v1062_v56 }
 0x553   :  { %v3359_v58 = vpop.eup %3358  ;;  %v1085_v4 = vmul.f32 1.442695, %v1077_v54  ;;  %v1081_v11 = vmul.f32 1.442695, %v1075_v57  ;;  %v1340_v57 = vld [vmem:[%s5233_s13 + $0x18] sm:$0xff] }
 0x554   :  { %v3361_v60 = vpop.eup %3360  ;;  %v1083_v62 = vmul.f32 1.442695, %v1076_v9  ;;  %1142 = vmatpush.msrb.mxu3 %v3359_v58  ;;  %1186 = vperm.xlu2 %3337, %v3359_v58   ;;  %v1339_v9 = vld [vmem:[%s5233_s13 + $0x10] sm:$0xff]  ;;  %v1338_v58 = vld [vmem:[%s5233_s13 + $0x8] sm:$0xff] }
 0x555   :  { %3364 = vpow2.f32 %v1085_v4  ;;  %1181 = vperm.xlu0 %3335, %v3361_v60   ;;  %v3363_v63 = vpop.eup %3362  ;;  %1428 = vmatpush.msrb.mxu2 %v1340_v57  ;;  %v1342_v4 = vld [vmem:[%s5234_s16 + $0x8] sm:$0xff] }
 0x556   :  { %1143 = vmatpush.msrb.mxu3 %v3361_v60  ;;  %3366 = vpow2.f32 %v1083_v62  ;;  %v1451_v60 = vld [vmem:[#allocation13] sm:$0x1] }
 0x557   :  { %3368 = vpow2.f32 %v1081_v11  ;;  %1429 = vmatpush.msrb.mxu2 %v1339_v9 }
 0x558   :  { %1144 = vmatpush.msrb.mxu3 %v3363_v63 }
 0x559   :  { %1430 = vmatpush.msrb.mxu2 %v1338_v58 }
 0x55b   :  { %v3365_v0 = vpop.eup %3364 }
 0x55c   :  { %1145 = vmatpush.msrb.mxu3 %v3365_v0  ;;  %1171 = vperm.xlu2 %3337, %v3365_v0   ;;  %v3367_v55 = vpop.eup %3366 }
 0x55d   :  { %1176 = vperm.xlu0 %3335, %v3363_v63   ;;  %v3369_v59 = vpop.eup %3368 }
 0x55e   :  { %1146 = vmatpush.msrb.mxu3 %v3367_v55 }
 0x560   :  { %1147 = vmatpush.msrb.mxu3 %v3369_v59 }
 0x562   :  { %1256 = vmatpush.msra.mxu3 %v1233_v29 }
 0x564   :  { %1161 = vperm.xlu2 %3337, %v3369_v59   ;;  %1257 = vmatpush.msra.mxu3 %v1232_v30  ;;  %v1514_v59 = vld [vmem:[#allocation16 + $0x10] sm:$0xff] }
 0x565   :  { %1166 = vperm.xlu0 %3335, %v3367_v55   ;;  %v1515_v55 = vld [vmem:[#allocation16 + $0x18] sm:$0xff] }
 0x566   :  { %1258 = vmatpush.msra.mxu3 %v1231_v31 }
 0x568   :  { %1259 = vmatpush.msra.mxu3 %v1230_v32 }
 0x5ae   :  { %v1187_v1 = vpop.permute.xlu2 %1186 }
 0x5af   :  { %v1194_v2 = vmul.f32 %v1187_v1, %v4509_v39  ;;  %v1513_v1 = vld [vmem:[#allocation16 + $0x8] sm:$0xff] }
 0x5b1   :  { %1205 = vmatpush.msra.mxu0 %v1194_v2  ;;  %v1512_v2 = vld [vmem:[#allocation16] sm:$0xff] }
 0x5b6   :  { %v1172_v7 = vpop.permute.xlu2 %1171 }
 0x5b7   :  { %v1191_v10 = vmul.f32 %v1172_v7, %v4514_v41 }
 0x5bb   :  { %v4627_v3 = vpop.trf.xlu1 }
 0x5bc   :  { %3127 = vmatmul.msk.f32.vlgmr.msrb.gmra.mxu3 %vm1125_vm5, %v4627_v3 }
 0x5be   :  { %v1162_v20 = vpop.permute.xlu2 %1161 }
 0x5bf   :  { %v1189_v27 = vmul.f32 %v1162_v20, %v4489_v34  ;;  %v3344_v20 = vld [vmem:[#allocation14] ss:$0 sm:$0xff] }
 0x5c3   :  { %v4631_v5 = vpop.trf.xlu1 }
 0x5c4   :  { %3128 = vmatmul.msk.f32.gmra.mxu3 %vm1125_vm5, %v4631_v5 }
 0x5c7   :  { %v1182_v6 = vpop.permute.xlu0 %1181 }
 0x5c8   :  { %v1193_v61 = vmul.f32 %v1182_v6, %v4498_v36 }
 0x5ca   :  { %1206 = vmatpush.msra.mxu0 %v1193_v61 }
 0x5cf   :  { %v1177_v8 = vpop.permute.xlu0 %1176 }
 0x5d0   :  { %v1192_v39 = vmul.f32 %v1177_v8, %v4524_v44 }
 0x5d2   :  { %1207 = vmatpush.msra.mxu0 %v1192_v39 }
 0x5d4   :  { %1208 = vmatpush.msra.mxu0 %v1191_v10 }
 0x5d7   :  { %v1167_v21 = vpop.permute.xlu0 %1166 }
 0x5d8   :  { %v1190_v22 = vmul.f32 %v1167_v21, %v4500_v37 }
 0x5da   :  { %1209 = vmatpush.msra.mxu0 %v1190_v22 }
 0x5dc   :  { %1210 = vmatpush.msra.mxu0 %v1189_v27 }
 0x5dd   :  { %3129 = vmatmul.msk.f32.vlgmr.msra.gmra.mxu0 %vm1125_vm5, %v4627_v3 }
 0x5e5   :  { %3130 = vmatmul.msk.f32.gmra.mxu0 %vm1125_vm5, %v4631_v5 }
 0x63f   :  { %v1149_v36 = vpop.f32.mrf.mxu3 }
 0x640   :  { %v1155_v41 = vmax.f32 %v1149_v36, 1e-16 }
 0x642   :  { %3370 = vrcp.f32 %v1155_v41 }
 0x647   :  { %v1152_v44 = vpop.f32.mrf.mxu3 }
 0x648   :  { %v3371_v28 = vpop.eup %3370  ;;  %v1156_v37 = vmax.f32 %v1152_v44, 1e-16 }
 0x649   :  { %1220 = vperm.xlu0 %3335, %v3371_v28  }
 0x64a   :  { %3372 = vrcp.f32 %v1156_v37 }
 0x650   :  { %v3373_v34 = vpop.eup %3372 }
 0x651   :  { %1225 = vperm.xlu2 %3337, %v3373_v34  }
 0x65a   :  { %v1212_v42 = vpop.f32.mrf.mxu0 }
 0x662   :  { %v1215_v49 = vpop.f32.mrf.mxu0 }
 0x6ab   :  { %v1226_v48 = vpop.permute.xlu2 %1225 }
 0x6ac   :  { %v1229_v50 = vmul.f32 %v1226_v48, %v1215_v49 }
 0x6bb   :  { %v1221_v45 = vpop.permute.xlu0 %1220 }
 0x6bc   :  { %v1228_v47 = vmul.f32 %v1221_v45, %v1212_v42 }
 0x6be   :  { %3131 = vmatmul.msk.f32.vlgmr.msra.gmra.mxu3 %vm687_vm4, %v1228_v47 }
 0x6c6   :  { %3132 = vmatmul.msk.f32.gmra.mxu3 %vm687_vm4, %v1229_v50 }
 0x741   :  { %v1261_v51 = vpop.f32.mrf.mxu3 }
 0x742   :  { %v1262_v56 = vadd.f32 %v3343_v52, %v1261_v51 }
 0x749   :  { %v1264_v53 = vpop.f32.mrf.mxu3 }
 0x74a   :  { %v1265_v54 = vadd.f32 %v3343_v52, %v1264_v53 }
 0x74c   :  { %1281 = vmatpush.msrb.mxu0 %v1265_v54  ;;  %1316 = vmatpush.msrb.mxu3 %v1265_v54 }
 0x74e   :  { %1282 = vmatpush.msrb.mxu0 %v1262_v56  ;;  %1317 = vmatpush.msrb.mxu3 %v1262_v56 }
 0x74f   :  { %3139 = vmatmul.msk.f32.vlgmr.msrb.gmra.mxu3 %vm572_vm1, %v4438_v17  ;;  %3133 = vmatmul.msk.f32.vlgmr.msrb.gmra.mxu0 %vm572_vm1, %v4415_v12  ;;  %v1344_v12 = vld [vmem:[%s5234_s16 + $0x18] sm:$0xff] }
 0x750   :  { %1375 = vmatpush.msra.mxu1 %v1344_v12  ;;  %3157 = vmatpush.msk.msra.mxu0 %vm814_vm2, %v1451_v60 }
 0x751   :  { %1550 = vmatpush.msra.mxu3 %v1515_v55  ;;  %v3346_v55 = vld [vmem:[#allocation19] ss:$0 sm:$0xff] }
 0x753   :  { %1551 = vmatpush.msra.mxu3 %v1514_v59 }
 0x755   :  { %1552 = vmatpush.msra.mxu3 %v1513_v1 }
 0x757   :  { %3140 = vmatmul.msk.f32.gmra.mxu3 %vm572_vm1, %v4448_v19  ;;  %3134 = vmatmul.msk.f32.gmra.mxu0 %vm572_vm1, %v4425_v14  ;;  %v1337_v14 = vld [vmem:[%s5233_s13] sm:$0xff] }
 0x758   :  { %1431 = vmatpush.msrb.mxu2 %v1337_v14  ;;  %1553 = vmatpush.msra.mxu3 %v1512_v2 }
 0x75f   :  { %3141 = vmatmul.msk.f32.gmra.mxu3 %vm572_vm1, %v4458_v23  ;;  %3135 = vmatmul.msk.f32.gmra.mxu0 %vm572_vm1, %v4435_v16  ;;  %v1343_v16 = vld [vmem:[%s5234_s16 + $0x10] sm:$0xff] }
 0x760   :  { %1376 = vmatpush.msra.mxu1 %v1343_v16 }
 0x762   :  { %1377 = vmatpush.msra.mxu1 %v1342_v4 }
 0x767   :  { %3142 = vmatmul.msk.f32.gmra.mxu3 %vm572_vm1, %v4463_v24  ;;  %3136 = vmatmul.msk.f32.gmra.mxu0 %vm572_vm1, %v4445_v18  ;;  %v1341_v18 = vld [vmem:[%s5234_s16] sm:$0xff] }
 0x768   :  { %1378 = vmatpush.msra.mxu1 %v1341_v18 }
 0x76f   :  { %3143 = vmatmul.msk.f32.gmra.mxu3 %vm572_vm1, %v4468_v25  ;;  %3137 = vmatmul.msk.f32.gmra.mxu0 %vm572_vm1, %v4418_v13 }
 0x777   :  { %3144 = vmatmul.msk.f32.gmra.mxu3 %vm572_vm1, %v4473_v26  ;;  %3138 = vmatmul.msk.f32.gmra.mxu0 %vm572_vm1, %v4428_v15 }
 0x77f   :  { %3158 = vmatmul.msk.f32.vlgmr.msra.gmra.mxu0 %vm795_vm3, %v4485_v33 }
 0x787   :  { %3159 = vmatmul.msk.f32.gmra.mxu0 %vm795_vm3, %v4494_v35 }
 0x78f   :  { %3160 = vmatmul.msk.f32.gmra.mxu0 %vm795_vm3, %v4505_v38 }
 0x797   :  { %3161 = vmatmul.msk.f32.gmra.mxu0 %vm795_vm3, %v4512_v40 }
 0x79f   :  { %3162 = vmatmul.msk.f32.gmra.mxu0 %vm795_vm3, %v4522_v43 }
 0x7a7   :  { %3163 = vmatmul.msk.f32.gmra.mxu0 %vm795_vm3, %v4532_v46 }
 0x7cc   :  { %v4689_v13 = vpop.f32.mrf.mxu0 }
 0x7cd   :  { %3145 = vmatmul.msk.f32.vlgmr.msra.gmra.mxu1 %vm687_vm4, %v4689_v13 }
 0x7d2   :  { %v1319_v15 = vpop.f32.mrf.mxu3 }
 0x7d3   :  { %3151 = vmatmul.msk.f32.vlgmr.msrb.gmra.mxu2 %vm687_vm4, %v1319_v15 }
 0x7d4   :  { %v4696_v33 = vpop.f32.mrf.mxu0 }
 0x7d5   :  { %3146 = vmatmul.msk.f32.gmra.mxu1 %vm687_vm4, %v4696_v33 }
 0x7da   :  { %v1322_v35 = vpop.f32.mrf.mxu3 }
 0x7db   :  { %3152 = vmatmul.msk.f32.gmra.mxu2 %vm687_vm4, %v1322_v35 }
 0x7dc   :  { %v4703_v38 = vpop.f32.mrf.mxu0 }
 0x7dd   :  { %3147 = vmatmul.msk.f32.gmra.mxu1 %vm687_vm4, %v4703_v38 }
 0x7e2   :  { %v1325_v40 = vpop.f32.mrf.mxu3 }
 0x7e3   :  { %3153 = vmatmul.msk.f32.gmra.mxu2 %vm687_vm4, %v1325_v40 }
 0x7e4   :  { %v4710_v62 = vpop.f32.mrf.mxu0 }
 0x7e5   :  { %3148 = vmatmul.msk.f32.gmra.mxu1 %vm687_vm4, %v4710_v62 }
 0x7ea   :  { %v1328_v43 = vpop.f32.mrf.mxu3 }
 0x7eb   :  { %3154 = vmatmul.msk.f32.gmra.mxu2 %vm687_vm4, %v1328_v43  ;;  %v3345_v43 = vld [vmem:[#allocation17] ss:$0 sm:$0xff] }
 0x7ec   :  { %v4715_v11 = vpop.f32.mrf.mxu0 }
 0x7ed   :  { %3149 = vmatmul.msk.f32.gmra.mxu1 %vm687_vm4, %v4715_v11 }
 0x7f2   :  { %v1331_v63 = vpop.f32.mrf.mxu3 }
 0x7f3   :  { %3155 = vmatmul.msk.f32.gmra.mxu2 %vm687_vm4, %v1331_v63 }
 0x7f4   :  { %v4720_v46 = vpop.f32.mrf.mxu0 }
 0x7f5   :  { %3150 = vmatmul.msk.f32.gmra.mxu1 %vm687_vm4, %v4720_v46 }
 0x7fa   :  { %v1334_v0 = vpop.f32.mrf.mxu3 }
 0x7fb   :  { %3156 = vmatmul.msk.f32.gmra.mxu2 %vm687_vm4, %v1334_v0 }
 0x7fc   :  { %v1472_v61 = vpop.f32.mrf.mxu0 }
 0x804   :  { %v1475_v39 = vpop.f32.mrf.mxu0 }
 0x80c   :  { %v1478_v28 = vpop.f32.mrf.mxu0 }
 0x814   :  { %v1481_v45 = vpop.f32.mrf.mxu0 }
 0x81c   :  { %v1484_v54 = vpop.f32.mrf.mxu0 }
 0x824   :  { %v1487_v60 = vpop.f32.mrf.mxu0 }
 0x84a   :  { %v1380_v6 = vpop.f32.mrf.mxu1 }
 0x852   :  { %v1383_v7 = vpop.f32.mrf.mxu1 }
 0x856   :  { %v1433_v8 = vpop.f32.mrf.mxu2 }
 0x857   :  { %v1434_v10 = vadd.f32 %v1433_v8, %v1380_v6 }
 0x859   :  { %v1490_v21 = vadd.f32 %v1472_v61, %v1434_v10 }
 0x85a   :  { %v1386_v41 = vpop.f32.mrf.mxu1 }
 0x85b   :  { %v1500_v22 = vadd.f32 %v3344_v20, %v1490_v21 }
 0x85d   :  { %v1506_v27 = vmax.f32 %v1500_v22, 0.0 }
 0x85e   :  { %v1436_v36 = vpop.f32.mrf.mxu2 }
 0x85f   :  { %v1437_v44 = vadd.f32 %v1436_v36, %v1383_v7  ;;  %3164 = vmatmul.msk.f32.vlgmr.msra.gmra.mxu3 %vm687_vm4, %v1506_v27 }
 0x861   :  { %v1491_v37 = vadd.f32 %v1475_v39, %v1437_v44 }
 0x862   :  { %v1389_v32 = vpop.f32.mrf.mxu1 }
 0x863   :  { %v1501_v34 = vadd.f32 %v3344_v20, %v1491_v37 }
 0x865   :  { %v1507_v29 = vmax.f32 %v1501_v34, 0.0 }
 0x866   :  { %v1439_v30 = vpop.f32.mrf.mxu2 }
 0x867   :  { %v1440_v31 = vadd.f32 %v1439_v30, %v1386_v41  ;;  %3165 = vmatmul.msk.f32.gmra.mxu3 %vm687_vm4, %v1507_v29 }
 0x869   :  { %v1492_v42 = vadd.f32 %v1478_v28, %v1440_v31 }
 0x86a   :  { %v1392_v52 = vpop.f32.mrf.mxu1 }
 0x86b   :  { %v1502_v47 = vadd.f32 %v3344_v20, %v1492_v42 }
 0x86d   :  { %v1508_v48 = vmax.f32 %v1502_v47, 0.0 }
 0x86e   :  { %v1442_v49 = vpop.f32.mrf.mxu2 }
 0x86f   :  { %v1443_v50 = vadd.f32 %v1442_v49, %v1389_v32  ;;  %3166 = vmatmul.msk.f32.gmra.mxu3 %vm687_vm4, %v1508_v48 }
 0x871   :  { %v1493_v51 = vadd.f32 %v1481_v45, %v1443_v50  ;;  %v3347_v50 = vld [vmem:[#allocation3] ss:$0 sm:$0xff] }
 0x872   :  { %v1395_v14 = vpop.f32.mrf.mxu1 }
 0x873   :  { %v1503_v53 = vadd.f32 %v3344_v20, %v1493_v51 }
 0x875   :  { %v1509_v56 = vmax.f32 %v1503_v53, 0.0 }
 0x876   :  { %v1445_v57 = vpop.f32.mrf.mxu2 }
 0x877   :  { %v1446_v9 = vadd.f32 %v1445_v57, %v1392_v52  ;;  %3167 = vmatmul.msk.f32.gmra.mxu3 %vm687_vm4, %v1509_v56 }
 0x879   :  { %v1494_v58 = vadd.f32 %v1484_v54, %v1446_v9 }
 0x87b   :  { %v1504_v12 = vadd.f32 %v3344_v20, %v1494_v58 }
 0x87d   :  { %v1510_v16 = vmax.f32 %v1504_v12, 0.0 }
 0x87e   :  { %v1448_v4 = vpop.f32.mrf.mxu2 }
 0x87f   :  { %v1449_v18 = vadd.f32 %v1448_v4, %v1395_v14  ;;  %3168 = vmatmul.msk.f32.gmra.mxu3 %vm687_vm4, %v1510_v16 }
 0x881   :  { %v1495_v15 = vadd.f32 %v1487_v60, %v1449_v18 }
 0x883   :  { %v1505_v35 = vadd.f32 %v3344_v20, %v1495_v15 }
 0x885   :  { %v1511_v40 = vmax.f32 %v1505_v35, 0.0 }
 0x887   :  { %3169 = vmatmul.msk.f32.gmra.mxu3 %vm687_vm4, %v1511_v40 }
 0x8e2   :  { %v1555_v63 = vpop.f32.mrf.mxu3 }
 0x8e3   :  { %v1556_v0 = vadd.f32 %v3345_v43, %v1555_v63 }
 0x8e5   :  { %v1573_v59 = vmax.f32 %v1556_v0, 0.0 }
 0x8e7   :  { %v1583_v1 = vmul.f32 %v3346_v55, %v1573_v59 }
 0x8e9   :  { %v1589_v2 = vsel %vm687_vm4, %v1583_v1, 0.0 }
 0x8ea   :  { %1590 = vadd.xlane.f32.xlu0 %v1589_v2  ;;  %v1558_v6 = vpop.f32.mrf.mxu3 }
 0x8eb   :  { %v1559_v61 = vadd.f32 %v3345_v43, %v1558_v6 }
 0x8ed   :  { %v1574_v7 = vmax.f32 %v1559_v61, 0.0 }
 0x8ef   :  { %v1584_v8 = vmul.f32 %v3346_v55, %v1574_v7 }
 0x8f1   :  { %v1592_v39 = vsel %vm687_vm4, %v1584_v8, 0.0 }
 0x8f2   :  { %1593 = vadd.xlane.f32.xlu2 %v1592_v39  ;;  %v1561_v10 = vpop.f32.mrf.mxu3 }
 0x8f3   :  { %v1562_v20 = vadd.f32 %v3345_v43, %v1561_v10 }
 0x8f5   :  { %v1575_v21 = vmax.f32 %v1562_v20, 0.0 }
 0x8f7   :  { %v1585_v22 = vmul.f32 %v3346_v55, %v1575_v21 }
 0x8f9   :  { %v1595_v27 = vsel %vm687_vm4, %v1585_v22, 0.0 }
 0x8fa   :  { %1596 = vadd.xlane.f32.xlu1 %v1595_v27  ;;  %v1564_v36 = vpop.f32.mrf.mxu3 }
 0x8fb   :  { %v1565_v41 = vadd.f32 %v3345_v43, %v1564_v36 }
 0x8fd   :  { %v1576_v44 = vmax.f32 %v1565_v41, 0.0 }
 0x8ff   :  { %v1586_v28 = vmul.f32 %v3346_v55, %v1576_v44 }
 0x901   :  { %v1598_v37 = vsel %vm687_vm4, %v1586_v28, 0.0 }
 0x902   :  { %1599 = vadd.xlane.f32.xlu0 %v1598_v37  ;;  %v1567_v34 = vpop.f32.mrf.mxu3 }
 0x903   :  { %v1568_v29 = vadd.f32 %v3345_v43, %v1567_v34 }
 0x905   :  { %v1577_v30 = vmax.f32 %v1568_v29, 0.0 }
 0x907   :  { %v1587_v31 = vmul.f32 %v3346_v55, %v1577_v30 }
 0x909   :  { %v1601_v32 = vsel %vm687_vm4, %v1587_v31, 0.0 }
 0x90a   :  { %1602 = vadd.xlane.f32.xlu0 %v1601_v32  ;;  %v1570_v42 = vpop.f32.mrf.mxu3 }
 0x90b   :  { %v1571_v45 = vadd.f32 %v3345_v43, %v1570_v42 }
 0x90d   :  { %v1578_v47 = vmax.f32 %v1571_v45, 0.0 }
 0x90f   :  { %v1588_v48 = vmul.f32 %v3346_v55, %v1578_v47 }
 0x911   :  { %v1604_v49 = vsel %vm687_vm4, %v1588_v48, 0.0 }
 0x912   :  { %1605 = vadd.xlane.f32.xlu2 %v1604_v49 }
 0x95d   :  { %v1591_v51 = vpop.xlane.xlu0 %1590 }
 0x95e   :  { %v1611_v52 = vadd.f32 %v3347_v50, %v1591_v51 }
 0x960   :  { %v1623_v53 = vmul.f32 0.2, %v1611_v52  ;;  %vm1617_vm6 = vcmp.gt.f32.partialorder %v1611_v52, 0.0 }
 0x962   :  { %v4737_v54 = vsel %vm1617_vm6, %v1611_v52, %v1623_v53 }
 0x963   :  { %1637 = vperm.xlu2 %3337, %v4737_v54  }
 0x965   :  { %v1594_v56 = vpop.xlane.xlu2 %1593 }
 0x966   :  { %v1612_v57 = vadd.f32 %v3347_v50, %v1594_v56  ;;  %v4774_v56 = vld [vmem:[%s5226_s6 + $0x28] sm:$0xff] }
 0x968   :  { %v1624_v9 = vmul.f32 0.2, %v1612_v57  ;;  %vm1618_vm7 = vcmp.gt.f32.partialorder %v1612_v57, 0.0 }
 0x96a   :  { %v4740_v58 = vsel %vm1618_vm7, %v1612_v57, %v1624_v9  ;;  %v4778_v9 = vld [vmem:[%s5226_s6 + $0x20] sm:$0xff] }
 0x96b   :  { %1642 = vperm.xlu0 %3335, %v4740_v58  }
 0x96d   :  { %v1597_v4 = vpop.xlane.xlu1 %1596 }
 0x96e   :  { %v1613_v18 = vadd.f32 %v3347_v50, %v1597_v4 }
 0x970   :  { %v1625_v40 = vmul.f32 0.2, %v1613_v18  ;;  %vm1619_vm9 = vcmp.gt.f32.partialorder %v1613_v18, 0.0 }
 0x972   :  { %v4746_v55 = vsel %vm1619_vm9, %v1613_v18, %v1625_v40 }
 0x975   :  { %v1600_v12 = vpop.xlane.xlu0 %1599 }
 0x976   :  { %v1614_v0 = vadd.f32 %v3347_v50, %v1600_v12 }
 0x978   :  { %v1626_v1 = vmul.f32 0.2, %v1614_v0  ;;  %vm1620_vm6 = vcmp.gt.f32.partialorder %v1614_v0, 0.0 }
 0x97a   :  { %v4752_v2 = vsel %vm1620_vm6, %v1614_v0, %v1626_v1 }
 0x97d   :  { %v1603_v14 = vpop.xlane.xlu0 %1602 }
 0x97e   :  { %v1615_v16 = vadd.f32 %v3347_v50, %v1603_v14  ;;  %v4782_v14 = vld [vmem:[%s5226_s6] sm:$0xff] }
 0x980   :  { %v1627_v60 = vmul.f32 0.2, %v1615_v16  ;;  %vm1621_vm8 = vcmp.gt.f32.partialorder %v1615_v16, 0.0 }
 0x982   :  { %v4743_v15 = vsel %vm1621_vm8, %v1615_v16, %v1627_v60 }
 0x983   :  { %1657 = vperm.xlu2 %3337, %v4743_v15  }
 0x985   :  { %v1606_v35 = vpop.xlane.xlu2 %1605 }
 0x986   :  { %v1616_v43 = vadd.f32 %v3347_v50, %v1606_v35  ;;  %v4789_v35 = vld [vmem:[%s5226_s6 + $0x18] sm:$0xff] }
 0x988   :  { %v1628_v63 = vmul.f32 0.2, %v1616_v43  ;;  %vm1622_vm10 = vcmp.gt.f32.partialorder %v1616_v43, 0.0 }
 0x98a   :  { %v4748_v59 = vsel %vm1622_vm10, %v1616_v43, %v1628_v63  ;;  %v4793_v43 = vld [vmem:[%s5226_s6 + $0x10] sm:$0xff] }
 0x98b   :  { %1647 = vperm.xlu2 %3337, %v4746_v55   ;;  %1662 = vperm.xlu0 %3335, %v4748_v59  }
 0x993   :  { %1652 = vperm.xlu0 %3335, %v4752_v2  }
 0x9bd   :  { %v1638_v6 = vpop.permute.xlu2 %1637 }
 0x9be   :  { %v1665_v27 = vsel %vm529_vm14, %v1638_v6, -1e+30  ;;  %v4799_v6 = vld [vmem:[%s5226_s6 + $0x8] sm:$0xff] }
 0x9bf   :  { %v1671_v37 = vsel %vm572_vm1, %v1665_v27, -inf }
 0x9dd   :  { %v1643_v61 = vpop.permute.xlu0 %1642  ;;  %v1658_v7 = vpop.permute.xlu2 %1657 }
 0x9de   :  { %v1666_v10 = vsel %vm530_vm13, %v1643_v61, -1e+30  ;;  %v1669_v20 = vsel %vm533_vm12, %v1658_v7, -1e+30 }
 0x9df   :  { %v1672_v36 = vsel %vm572_vm1, %v1666_v10, -inf  ;;  %v1675_v41 = vsel %vm572_vm1, %v1669_v20, -inf }
 0x9e0   :  { %v1676_v29 = vmax.f32 %v1671_v37, %v1675_v41 }
 0x9e5   :  { %v1648_v21 = vpop.permute.xlu2 %1647 }
 0x9e6   :  { %v1667_v44 = vsel %vm531_vm15, %v1648_v21, -1e+30 }
 0x9e7   :  { %v1673_v31 = vsel %vm572_vm1, %v1667_v44, -inf }
 0x9fd   :  { %v1663_v8 = vpop.permute.xlu0 %1662 }
 0x9fe   :  { %v1670_v39 = vsel %vm534_vm11, %v1663_v8, -1e+30 }
 0x9ff   :  { %v1677_v22 = vsel %vm572_vm1, %v1670_v39, -inf }
 0xa00   :  { %v1678_v28 = vmax.f32 %v1672_v36, %v1677_v22 }
 0xa02   :  { %v1679_v42 = vmax.f32 %v1676_v29, %v1678_v28 }
 0xa05   :  { %v1653_v34 = vpop.permute.xlu0 %1652 }
 0xa06   :  { %v1668_v30 = vsel %vm532_vm0, %v1653_v34, -1e+30 }
 0xa07   :  { %v1674_v32 = vsel %vm572_vm1, %v1668_v30, -inf }
 0xa08   :  { %v1680_v45 = vmax.f32 %v1673_v31, %v1674_v32 }
 0xa0a   :  { %v1681_v47 = vmax.f32 %v1679_v42, %v1680_v45 }
 0xa0c   :  { %v1682_v48 = vrot.slane %v1681_v47, 4 }
 0xa0e   :  { %v1683_v49 = vmax.f32 %v1681_v47, %v1682_v48 }
 0xa10   :  { %v1684_v50 = vrot.slane %v1683_v49, 2 }
 0xa12   :  { %v1685_v51 = vmax.f32 %v1683_v49, %v1684_v50 }
 0xa14   :  { %v1686_v52 = vrot.slane %v1685_v51, 1 }
 0xa16   :  { %v1687_v53 = vmax.f32 %v1685_v51, %v1686_v52 }
 0xa18   :  { %v1693_v57 = vmul.f32 %v4774_v56, %v1687_v53  ;;  %v1692_v12 = vmul.f32 %v4778_v9, %v1687_v53  ;;  %v1688_v16 = vmul.f32 %v4782_v14, %v1687_v53  ;;  %v1691_v40 = vmul.f32 %v4789_v35, %v1687_v53 }
 0xa19   :  { %v1690_v63 = vmul.f32 %v4793_v43, %v1687_v53  ;;  %v1689_v61 = vmul.f32 %v4799_v6, %v1687_v53 }
 0xa1a   :  { %v1709_v4 = vsel %vm572_vm1, %v1693_v57, 0.0  ;;  %v1706_v60 = vsel %vm572_vm1, %v1692_v12, 0.0  ;;  %v1694_v18 = vsel %vm572_vm1, %v1688_v16, 0.0  ;;  %v1703_v0 = vsel %vm572_vm1, %v1691_v40, 0.0  ;;  %v1831_v57 = vld [vmem:[#allocation20 + $0x18] sm:$0xff]  ;;  %v1830_v12 = vld [vmem:[#allocation20 + $0x10] sm:$0xff] }
 0xa1b   :  { %1710 = vadd.xlane.f32.xlu2 %v1709_v4  ;;  %1707 = vadd.xlane.f32.xlu0 %v1706_v60  ;;  %v1700_v1 = vsel %vm572_vm1, %v1690_v63, 0.0  ;;  %v1697_v7 = vsel %vm572_vm1, %v1689_v61, 0.0  ;;  %v1829_v63 = vld [vmem:[#allocation20 + $0x8] sm:$0xff] }
 0xa1c   :  { %1695 = vadd.xlane.f32.xlu1 %v1694_v18 }
 0xa23   :  { %1704 = vadd.xlane.f32.xlu2 %v1703_v0  ;;  %1701 = vadd.xlane.f32.xlu0 %v1700_v1 }
 0xa2b   :  { %1698 = vadd.xlane.f32.xlu2 %v1697_v7 }
 0xa8e   :  { %v1711_v8 = vpop.xlane.xlu2 %1710  ;;  %v1708_v39 = vpop.xlane.xlu0 %1707 }
 0xa8f   :  { %v1717_v10 = vsub.f32 %v4748_v59, %v1711_v8  ;;  %v1716_v20 = vsub.f32 %v4743_v15, %v1708_v39  ;;  %v1696_v21 = vpop.xlane.xlu1 %1695 }
 0xa90   :  { %v1712_v36 = vsub.f32 %v4737_v54, %v1696_v21 }
 0xa91   :  { %v1728_v22 = vmul.f32 1.442695, %v1717_v10  ;;  %v1726_v27 = vmul.f32 1.442695, %v1716_v20  ;;  %v3348_v20 = vld [vmem:[#allocation22] ss:$0 sm:$0xff] }
 0xa92   :  { %v1718_v41 = vmul.f32 1.442695, %v1712_v36  ;;  %v4826_v36 = vld [vmem:[%s5225_s19] sm:$0xff] }
 0xa93   :  { %3374 = vpow2.f32 %v1728_v22 }
 0xa94   :  { %3376 = vpow2.f32 %v1726_v27 }
 0xa95   :  { %3378 = vpow2.f32 %v1718_v41  ;;  %v4833_v41 = vld [vmem:[%s5225_s19 + $0x8] sm:$0xff] }
 0xa96   :  { %v1705_v44 = vpop.xlane.xlu2 %1704  ;;  %v1702_v28 = vpop.xlane.xlu0 %1701 }
 0xa97   :  { %v1715_v37 = vsub.f32 %v4752_v2, %v1705_v44  ;;  %v1714_v34 = vsub.f32 %v4746_v55, %v1702_v28  ;;  %v1938_v44 = vld [vmem:[#allocation23 + $0x18] sm:$0xff]  ;;  %v1937_v28 = vld [vmem:[#allocation23 + $0x10] sm:$0xff] }
 0xa98   :  { %2026 = vmatpush.msrb.mxu3 %v1938_v44 }
 0xa99   :  { %v3375_v29 = vpop.eup %3374  ;;  %v1724_v30 = vmul.f32 1.442695, %v1715_v37  ;;  %v1722_v31 = vmul.f32 1.442695, %v1714_v34  ;;  %v1936_v37 = vld [vmem:[#allocation23 + $0x8] sm:$0xff]  ;;  %v4840_v34 = vld [vmem:[%s5225_s19 + $0x10] sm:$0xff] }
 0xa9a   :  { %v3377_v59 = vpop.eup %3376  ;;  %1740 = vmatpush.msrb.mxu1 %v3375_v29  ;;  %1784 = vperm.xlu0 %3335, %v3375_v29   ;;  %v4847_v29 = vld [vmem:[%s5225_s19 + $0x18] sm:$0xff] }
 0xa9b   :  { %3380 = vpow2.f32 %v1724_v30  ;;  %1779 = vperm.xlu2 %3337, %v3377_v59   ;;  %v3379_v32 = vpop.eup %3378  ;;  %2027 = vmatpush.msrb.mxu3 %v1937_v28  ;;  %v4854_v30 = vld [vmem:[%s5225_s19 + $0x20] sm:$0xff] }
 0xa9c   :  { %3382 = vpow2.f32 %v1722_v31  ;;  %1741 = vmatpush.msrb.mxu1 %v3377_v59  ;;  %v4861_v31 = vld [vmem:[%s5225_s19 + $0x28] sm:$0xff] }
 0xa9d   :  { %2028 = vmatpush.msrb.mxu3 %v1936_v37  ;;  %v1942_v59 = vld [vmem:[#allocation25 + $0x18] sm:$0xff] }
 0xa9e   :  { %v1699_v54 = vpop.xlane.xlu2 %1698 }
 0xa9f   :  { %v1713_v15 = vsub.f32 %v4740_v58, %v1699_v54  ;;  %v1935_v54 = vld [vmem:[#allocation23] sm:$0xff] }
 0xaa0   :  { %2029 = vmatpush.msrb.mxu3 %v1935_v54 }
 0xaa1   :  { %v3381_v42 = vpop.eup %3380  ;;  %v1720_v45 = vmul.f32 1.442695, %v1713_v15  ;;  %v2049_v15 = vld [vmem:[#allocation26] sm:$0x1] }
 0xaa2   :  { %v3383_v2 = vpop.eup %3382  ;;  %1742 = vmatpush.msrb.mxu1 %v3381_v42  ;;  %1774 = vperm.xlu1 %3336, %v3381_v42   ;;  %v1940_v42 = vld [vmem:[#allocation25 + $0x8] sm:$0xff] }
 0xaa3   :  { %3384 = vpow2.f32 %v1720_v45  ;;  %1769 = vperm.xlu0 %3335, %v3383_v2   ;;  %1759 = vperm.xlu2 %3337, %v3379_v32   ;;  %v4869_v45 = vld [vmem:[%s5230_s10] sm:$0xff] }
 0xaa4   :  { %1743 = vmatpush.msrb.mxu1 %v3383_v2  ;;  %v1939_v2 = vld [vmem:[#allocation25] sm:$0xff] }
 0xaa9   :  { %v3385_v55 = vpop.eup %3384 }
 0xaaa   :  { %1744 = vmatpush.msrb.mxu1 %v3385_v55 }
 0xaab   :  { %1764 = vperm.xlu0 %3335, %v3385_v55   ;;  %v4874_v55 = vld [vmem:[%s5230_s10 + $0x8] sm:$0xff] }
 0xaac   :  { %1745 = vmatpush.msrb.mxu1 %v3379_v32  ;;  %v1941_v32 = vld [vmem:[#allocation25 + $0x10] sm:$0xff] }
 0xaad   :  { %3170 = vmatmul.msk.f32.vlgmr.msrb.gmra.mxu1 %vm1125_vm5, %v4627_v3 }
 0xaae   :  { %1854 = vmatpush.msra.mxu1 %v1831_v57 }
 0xab0   :  { %1855 = vmatpush.msra.mxu1 %v1830_v12 }
 0xab2   :  { %1856 = vmatpush.msra.mxu1 %v1829_v63 }
 0xab5   :  { %3171 = vmatmul.msk.f32.gmra.mxu1 %vm1125_vm5, %v4631_v5 }
 0xaf5   :  { %v1780_v58 = vpop.permute.xlu2 %1779 }
 0xaf6   :  { %v1791_v49 = vmul.f32 %v1780_v58, %v4715_v11  ;;  %v4879_v58 = vld [vmem:[%s5230_s10 + $0x10] sm:$0xff] }
 0xafd   :  { %v1760_v16 = vpop.permute.xlu2 %1759 }
 0xafe   :  { %v1787_v11 = vmul.f32 %v1760_v16, %v4689_v13  ;;  %v1828_v13 = vld [vmem:[#allocation20] sm:$0xff] }
 0xaff   :  { %1857 = vmatpush.msra.mxu1 %v1828_v13 }
 0xb01   :  { %1973 = vmatpush.msrb.mxu1 %v1942_v59 }
 0xb03   :  { %1974 = vmatpush.msrb.mxu1 %v1941_v32 }
 0xb05   :  { %1975 = vmatpush.msrb.mxu1 %v1940_v42 }
 0xb07   :  { %1976 = vmatpush.msrb.mxu1 %v1939_v2 }
 0xb0c   :  { %v1785_v47 = vpop.permute.xlu0 %1784 }
 0xb0d   :  { %v1792_v48 = vmul.f32 %v1785_v47, %v4720_v46  ;;  %v4884_v47 = vld [vmem:[%s5230_s10 + $0x18] sm:$0xff] }
 0xb0f   :  { %1803 = vmatpush.msra.mxu2 %v1792_v48 }
 0xb11   :  { %1804 = vmatpush.msra.mxu2 %v1791_v49  ;;  %v4890_v49 = vld [vmem:[%s5230_s10 + $0x20] sm:$0xff] }
 0xb14   :  { %v1775_v50 = vpop.permute.xlu1 %1774 }
 0xb15   :  { %v1770_v51 = vpop.permute.xlu0 %1769  ;;  %v1790_v52 = vmul.f32 %v1775_v50, %v4710_v62 }
 0xb16   :  { %v1789_v53 = vmul.f32 %v1770_v51, %v4703_v38 }
 0xb17   :  { %1805 = vmatpush.msra.mxu2 %v1790_v52  ;;  %v4900_v52 = vld [vmem:[%s5230_s10 + $0x28] sm:$0xff] }
 0xb19   :  { %1806 = vmatpush.msra.mxu2 %v1789_v53 }
 0xb1d   :  { %v1765_v4 = vpop.permute.xlu0 %1764 }
 0xb1e   :  { %v1788_v60 = vmul.f32 %v1765_v4, %v4696_v33 }
 0xb20   :  { %1807 = vmatpush.msra.mxu2 %v1788_v60 }
 0xb22   :  { %1808 = vmatpush.msra.mxu2 %v1787_v11 }
 0xb23   :  { %3172 = vmatmul.msk.f32.vlgmr.msra.gmra.mxu2 %vm1125_vm5, %v4627_v3 }
 0xb2a   :  { %v1747_v62 = vpop.f32.mrf.mxu1 }
 0xb2b   :  { %v1753_v46 = vmax.f32 %v1747_v62, 1e-16  ;;  %3173 = vmatmul.msk.f32.gmra.mxu2 %vm1125_vm5, %v4631_v5 }
 0xb2d   :  { %3386 = vrcp.f32 %v1753_v46 }
 0xb32   :  { %v1750_v38 = vpop.f32.mrf.mxu1 }
 0xb33   :  { %v3387_v18 = vpop.eup %3386  ;;  %v1754_v40 = vmax.f32 %v1750_v38, 1e-16  ;;  %v2113_v38 = vld [vmem:[#allocation29 + $0x18] sm:$0xff] }
 0xb34   :  { %1818 = vperm.xlu1 %3336, %v3387_v18   ;;  %v2112_v18 = vld [vmem:[#allocation29 + $0x10] sm:$0xff] }
 0xb35   :  { %3388 = vrcp.f32 %v1754_v40  ;;  %v2111_v40 = vld [vmem:[#allocation29 + $0x8] sm:$0xff] }
 0xb3b   :  { %v3389_v33 = vpop.eup %3388 }
 0xb3c   :  { %1823 = vperm.xlu0 %3335, %v3389_v33   ;;  %v2110_v33 = vld [vmem:[#allocation29] sm:$0xff] }
 0xba6   :  { %v1810_v0 = vpop.f32.mrf.mxu2  ;;  %v1819_v1 = vpop.permute.xlu1 %1818 }
 0xba7   :  { %v1826_v61 = vmul.f32 %v1819_v1, %v1810_v0 }
 0xba9   :  { %3174 = vmatmul.msk.f32.vlgmr.msra.gmra.mxu1 %vm687_vm4, %v1826_v61 }
 0xbae   :  { %v1813_v7 = vpop.f32.mrf.mxu2  ;;  %v1824_v8 = vpop.permute.xlu0 %1823 }
 0xbaf   :  { %v1827_v39 = vmul.f32 %v1824_v8, %v1813_v7  ;;  %v3349_v7 = vld [vmem:[#allocation28] ss:$0 sm:$0xff] }
 0xbb1   :  { %3175 = vmatmul.msk.f32.gmra.mxu1 %vm687_vm4, %v1827_v39 }
 0xc26   :  { %v1859_v10 = vpop.f32.mrf.mxu1 }
 0xc27   :  { %v1860_v27 = vadd.f32 %v3348_v20, %v1859_v10 }
 0xc2e   :  { %v1862_v21 = vpop.f32.mrf.mxu1 }
 0xc2f   :  { %v1863_v22 = vadd.f32 %v3348_v20, %v1862_v21 }
 0xc31   :  { %1879 = vmatpush.msrb.mxu2 %v1863_v22  ;;  %1914 = vmatpush.msrb.mxu0 %v1863_v22 }
 0xc33   :  { %1880 = vmatpush.msrb.mxu2 %v1860_v27  ;;  %1915 = vmatpush.msrb.mxu0 %v1860_v27 }
 0xc34   :  { %3176 = vmatmul.msk.f32.vlgmr.msrb.gmra.mxu2 %vm572_vm1, %v4826_v36  ;;  %3182 = vmatmul.msk.f32.vlgmr.msrb.gmra.mxu0 %vm572_vm1, %v4782_v14 }
 0xc35   :  { %3200 = vmatpush.msk.msra.mxu2 %vm814_vm2, %v2049_v15  ;;  %2148 = vmatpush.msra.mxu0 %v2113_v38 }
 0xc37   :  { %2149 = vmatpush.msra.mxu0 %v2112_v18 }
 0xc39   :  { %2150 = vmatpush.msra.mxu0 %v2111_v40 }
 0xc3b   :  { %2151 = vmatpush.msra.mxu0 %v2110_v33 }
 0xc3c   :  { %3177 = vmatmul.msk.f32.gmra.mxu2 %vm572_vm1, %v4833_v41  ;;  %3183 = vmatmul.msk.f32.gmra.mxu0 %vm572_vm1, %v4799_v6 }
 0xc44   :  { %3178 = vmatmul.msk.f32.gmra.mxu2 %vm572_vm1, %v4840_v34  ;;  %3184 = vmatmul.msk.f32.gmra.mxu0 %vm572_vm1, %v4793_v43 }
 0xc4c   :  { %3179 = vmatmul.msk.f32.gmra.mxu2 %vm572_vm1, %v4847_v29  ;;  %3185 = vmatmul.msk.f32.gmra.mxu0 %vm572_vm1, %v4789_v35 }
 0xc54   :  { %3180 = vmatmul.msk.f32.gmra.mxu2 %vm572_vm1, %v4854_v30  ;;  %3186 = vmatmul.msk.f32.gmra.mxu0 %vm572_vm1, %v4778_v9 }
 0xc5c   :  { %3181 = vmatmul.msk.f32.gmra.mxu2 %vm572_vm1, %v4861_v31  ;;  %3187 = vmatmul.msk.f32.gmra.mxu0 %vm572_vm1, %v4774_v56 }
 0xc64   :  { %3201 = vmatmul.msk.f32.vlgmr.msra.gmra.mxu2 %vm795_vm3, %v4869_v45 }
 0xc6c   :  { %3202 = vmatmul.msk.f32.gmra.mxu2 %vm795_vm3, %v4874_v55 }
 0xc74   :  { %3203 = vmatmul.msk.f32.gmra.mxu2 %vm795_vm3, %v4879_v58 }
 0xc7c   :  { %3204 = vmatmul.msk.f32.gmra.mxu2 %vm795_vm3, %v4884_v47 }
 0xc84   :  { %3205 = vmatmul.msk.f32.gmra.mxu2 %vm795_vm3, %v4890_v49 }
 0xc8c   :  { %3206 = vmatmul.msk.f32.gmra.mxu2 %vm795_vm3, %v4900_v52 }
 0xcb1   :  { %v1917_v48 = vpop.f32.mrf.mxu0 }
 0xcb2   :  { %3194 = vmatmul.msk.f32.vlgmr.msrb.gmra.mxu3 %vm687_vm4, %v1917_v48 }
 0xcb7   :  { %v4894_v50 = vpop.f32.mrf.mxu2 }
 0xcb8   :  { %3188 = vmatmul.msk.f32.vlgmr.msrb.gmra.mxu1 %vm687_vm4, %v4894_v50 }
 0xcb9   :  { %v1920_v51 = vpop.f32.mrf.mxu0 }
 0xcba   :  { %3195 = vmatmul.msk.f32.gmra.mxu3 %vm687_vm4, %v1920_v51 }
 0xcbf   :  { %v4904_v53 = vpop.f32.mrf.mxu2 }
 0xcc0   :  { %3189 = vmatmul.msk.f32.gmra.mxu1 %vm687_vm4, %v4904_v53 }
 0xcc1   :  { %v1923_v57 = vpop.f32.mrf.mxu0 }
 0xcc2   :  { %3196 = vmatmul.msk.f32.gmra.mxu3 %vm687_vm4, %v1923_v57 }
 0xcc7   :  { %v4909_v12 = vpop.f32.mrf.mxu2 }
 0xcc8   :  { %3190 = vmatmul.msk.f32.gmra.mxu1 %vm687_vm4, %v4909_v12 }
 0xcc9   :  { %v1926_v16 = vpop.f32.mrf.mxu0 }
 0xcca   :  { %3197 = vmatmul.msk.f32.gmra.mxu3 %vm687_vm4, %v1926_v16 }
 0xccf   :  { %v4914_v4 = vpop.f32.mrf.mxu2 }
 0xcd0   :  { %3191 = vmatmul.msk.f32.gmra.mxu1 %vm687_vm4, %v4914_v4 }
 0xcd1   :  { %v1929_v60 = vpop.f32.mrf.mxu0 }
 0xcd2   :  { %3198 = vmatmul.msk.f32.gmra.mxu3 %vm687_vm4, %v1929_v60 }
 0xcd7   :  { %v4919_v11 = vpop.f32.mrf.mxu2 }
 0xcd8   :  { %3192 = vmatmul.msk.f32.gmra.mxu1 %vm687_vm4, %v4919_v11 }
 0xcd9   :  { %v1932_v62 = vpop.f32.mrf.mxu0 }
 0xcda   :  { %3199 = vmatmul.msk.f32.gmra.mxu3 %vm687_vm4, %v1932_v62 }
 0xcdf   :  { %v4924_v46 = vpop.f32.mrf.mxu2 }
 0xce0   :  { %3193 = vmatmul.msk.f32.gmra.mxu1 %vm687_vm4, %v4924_v46 }
 0xce7   :  { %v2070_v63 = vpop.f32.mrf.mxu2 }
 0xcef   :  { %v2073_v13 = vpop.f32.mrf.mxu2 }
 0xcf7   :  { %v2076_v27 = vpop.f32.mrf.mxu2 }
 0xcff   :  { %v2079_v42 = vpop.f32.mrf.mxu2 }
 0xd07   :  { %v2082_v38 = vpop.f32.mrf.mxu2 }
 0xd35   :  { %v1978_v0 = vpop.f32.mrf.mxu1  ;;  %v2031_v1 = vpop.f32.mrf.mxu3 }
 0xd36   :  { %v2032_v61 = vadd.f32 %v2031_v1, %v1978_v0 }
 0xd38   :  { %v2088_v8 = vadd.f32 %v2070_v63, %v2032_v61  ;;  %v2085_v61 = vpop.f32.mrf.mxu2 }
 0xd3a   :  { %v2098_v39 = vadd.f32 %v3349_v7, %v2088_v8 }
 0xd3c   :  { %v2104_v10 = vmax.f32 %v2098_v39, 0.0 }
 0xd3d   :  { %v1981_v20 = vpop.f32.mrf.mxu1  ;;  %v2034_v21 = vpop.f32.mrf.mxu3 }
 0xd3e   :  { %v2035_v22 = vadd.f32 %v2034_v21, %v1981_v20  ;;  %3207 = vmatmul.msk.f32.vlgmr.msra.gmra.mxu0 %vm687_vm4, %v2104_v10 }
 0xd40   :  { %v2089_v44 = vadd.f32 %v2073_v13, %v2035_v22 }
 0xd42   :  { %v2099_v28 = vadd.f32 %v3349_v7, %v2089_v44 }
 0xd44   :  { %v2105_v37 = vmax.f32 %v2099_v28, 0.0 }
 0xd45   :  { %v1984_v59 = vpop.f32.mrf.mxu1  ;;  %v2037_v54 = vpop.f32.mrf.mxu3 }
 0xd46   :  { %v2038_v15 = vadd.f32 %v2037_v54, %v1984_v59  ;;  %3208 = vmatmul.msk.f32.gmra.mxu0 %vm687_vm4, %v2105_v37  ;;  %v3351_v37 = vld [vmem:[#allocation32] ss:$0 sm:$0xff] }
 0xd48   :  { %v2090_v32 = vadd.f32 %v2076_v27, %v2038_v15  ;;  %v3350_v27 = vld [vmem:[#allocation31] ss:$0 sm:$0xff] }
 0xd4a   :  { %v2100_v2 = vadd.f32 %v3349_v7, %v2090_v32 }
 0xd4c   :  { %v2106_v48 = vmax.f32 %v2100_v2, 0.0 }
 0xd4d   :  { %v1987_v51 = vpop.f32.mrf.mxu1  ;;  %v2040_v57 = vpop.f32.mrf.mxu3 }
 0xd4e   :  { %v2041_v16 = vadd.f32 %v2040_v57, %v1987_v51  ;;  %3209 = vmatmul.msk.f32.gmra.mxu0 %vm687_vm4, %v2106_v48 }
 0xd50   :  { %v2091_v60 = vadd.f32 %v2079_v42, %v2041_v16 }
 0xd52   :  { %v2101_v62 = vadd.f32 %v3349_v7, %v2091_v60 }
 0xd54   :  { %v2107_v18 = vmax.f32 %v2101_v62, 0.0 }
 0xd55   :  { %v1990_v40 = vpop.f32.mrf.mxu1  ;;  %v2043_v33 = vpop.f32.mrf.mxu3 }
 0xd56   :  { %v2044_v63 = vadd.f32 %v2043_v33, %v1990_v40  ;;  %3210 = vmatmul.msk.f32.gmra.mxu0 %vm687_vm4, %v2107_v18 }
 0xd58   :  { %v2092_v13 = vadd.f32 %v2082_v38, %v2044_v63 }
 0xd5a   :  { %v2102_v0 = vadd.f32 %v3349_v7, %v2092_v13 }
 0xd5c   :  { %v2108_v1 = vmax.f32 %v2102_v0, 0.0 }
 0xd5d   :  { %v1993_v8 = vpop.f32.mrf.mxu1  ;;  %v2046_v39 = vpop.f32.mrf.mxu3 }
 0xd5e   :  { %v2047_v10 = vadd.f32 %v2046_v39, %v1993_v8  ;;  %3211 = vmatmul.msk.f32.gmra.mxu0 %vm687_vm4, %v2108_v1 }
 0xd60   :  { %v2093_v20 = vadd.f32 %v2085_v61, %v2047_v10 }
 0xd62   :  { %v2103_v21 = vadd.f32 %v3349_v7, %v2093_v20 }
 0xd64   :  { %v2109_v22 = vmax.f32 %v2103_v21, 0.0 }
 0xd66   :  { %3212 = vmatmul.msk.f32.gmra.mxu0 %vm687_vm4, %v2109_v22 }
 0xdbb   :  { %v2153_v44 = vpop.f32.mrf.mxu0 }
 0xdbc   :  { %v2154_v28 = vadd.f32 %v3350_v27, %v2153_v44  ;;  %v3352_v44 = vld [vmem:[#allocation4] ss:$0 sm:$0xff] }
 0xdbe   :  { %v2171_v59 = vmax.f32 %v2154_v28, 0.0 }
 0xdc0   :  { %v2181_v54 = vmul.f32 %v3351_v37, %v2171_v59 }
 0xdc2   :  { %v2187_v15 = vsel %vm687_vm4, %v2181_v54, 0.0 }
 0xdc3   :  { %2188 = vadd.xlane.f32.xlu2 %v2187_v15  ;;  %v2156_v32 = vpop.f32.mrf.mxu0 }
 0xdc4   :  { %v2157_v42 = vadd.f32 %v3350_v27, %v2156_v32 }
 0xdc6   :  { %v2172_v2 = vmax.f32 %v2157_v42, 0.0 }
 0xdc8   :  { %v2182_v48 = vmul.f32 %v3351_v37, %v2172_v2 }
 0xdca   :  { %v2190_v51 = vsel %vm687_vm4, %v2182_v48, 0.0 }
 0xdcb   :  { %2191 = vadd.xlane.f32.xlu1 %v2190_v51  ;;  %v2159_v7 = vpop.f32.mrf.mxu0 }
 0xdcc   :  { %v2160_v57 = vadd.f32 %v3350_v27, %v2159_v7 }
 0xdce   :  { %v2173_v16 = vmax.f32 %v2160_v57, 0.0 }
 0xdd0   :  { %v2183_v60 = vmul.f32 %v3351_v37, %v2173_v16 }
 0xdd2   :  { %v2193_v62 = vsel %vm687_vm4, %v2183_v60, 0.0 }
 0xdd3   :  { %v2162_v38 = vpop.f32.mrf.mxu0  ;;  %2194 = vadd.xlane.f32.xlu1 %v2193_v62 }
 0xdd4   :  { %v2163_v18 = vadd.f32 %v3350_v27, %v2162_v38 }
 0xdd6   :  { %v2174_v40 = vmax.f32 %v2163_v18, 0.0 }
 0xdd8   :  { %v2184_v33 = vmul.f32 %v3351_v37, %v2174_v40 }
 0xdda   :  { %v2196_v63 = vsel %vm687_vm4, %v2184_v33, 0.0 }
 0xddb   :  { %2197 = vadd.xlane.f32.xlu0 %v2196_v63  ;;  %v2165_v13 = vpop.f32.mrf.mxu0 }
 0xddc   :  { %v2166_v0 = vadd.f32 %v3350_v27, %v2165_v13 }
 0xdde   :  { %v2175_v1 = vmax.f32 %v2166_v0, 0.0 }
 0xde0   :  { %v2185_v61 = vmul.f32 %v3351_v37, %v2175_v1 }
 0xde2   :  { %v2199_v8 = vsel %vm687_vm4, %v2185_v61, 0.0 }
 0xde3   :  { %2200 = vadd.xlane.f32.xlu0 %v2199_v8  ;;  %v2168_v39 = vpop.f32.mrf.mxu0 }
 0xde4   :  { %v2169_v10 = vadd.f32 %v3350_v27, %v2168_v39 }
 0xde6   :  { %v2176_v20 = vmax.f32 %v2169_v10, 0.0 }
 0xde8   :  { %v2186_v21 = vmul.f32 %v3351_v37, %v2176_v20 }
 0xdea   :  { %v2202_v22 = vsel %vm687_vm4, %v2186_v21, 0.0 }
 0xdeb   :  { %2203 = vadd.xlane.f32.xlu2 %v2202_v22 }
 0xe36   :  { %v2189_v28 = vpop.xlane.xlu2 %2188 }
 0xe37   :  { %v2209_v59 = vadd.f32 %v3352_v44, %v2189_v28 }
 0xe39   :  { %v2221_v54 = vmul.f32 0.2, %v2209_v59  ;;  %vm2215_vm7 = vcmp.gt.f32.partialorder %v2209_v59, 0.0 }
 0xe3b   :  { %v4940_v15 = vsel %vm2215_vm7, %v2209_v59, %v2221_v54 }
 0xe3c   :  { %2235 = vperm.xlu2 %3337, %v4940_v15  }
 0xe3e   :  { %v2192_v32 = vpop.xlane.xlu1 %2191 }
 0xe3f   :  { %v2210_v42 = vadd.f32 %v3352_v44, %v2192_v32 }
 0xe41   :  { %v2222_v2 = vmul.f32 0.2, %v2210_v42  ;;  %vm2216_vm8 = vcmp.gt.f32.partialorder %v2210_v42, 0.0 }
 0xe43   :  { %v4943_v48 = vsel %vm2216_vm8, %v2210_v42, %v2222_v2  ;;  %vm2554_vm8 = vcmask 1043456  }
 0xe44   :  { %2240 = vperm.xlu1 %3336, %v4943_v48  }
 0xe46   :  { %v2195_v60 = vpop.xlane.xlu1 %2194 }
 0xe47   :  { %v2211_v38 = vadd.f32 %v3352_v44, %v2195_v60 }
 0xe49   :  { %v2223_v33 = vmul.f32 0.2, %v2211_v38  ;;  %vm2217_vm6 = vcmp.gt.f32.partialorder %v2211_v38, 0.0 }
 0xe4b   :  { %v4952_v0 = vsel %vm2217_vm6, %v2211_v38, %v2223_v33 }
 0xe4e   :  { %v2198_v27 = vpop.xlane.xlu0 %2197 }
 0xe4f   :  { %v2212_v37 = vadd.f32 %v3352_v44, %v2198_v27 }
 0xe51   :  { %v2224_v51 = vmul.f32 0.2, %v2212_v37  ;;  %vm2218_vm9 = vcmp.gt.f32.partialorder %v2212_v37, 0.0 }
 0xe53   :  { %v4946_v7 = vsel %vm2218_vm9, %v2212_v37, %v2224_v51  ;;  %vm2535_vm9 = vcmask 31744  }
 0xe54   :  { %2250 = vperm.xlu1 %3336, %v4946_v7  }
 0xe56   :  { %v2201_v57 = vpop.xlane.xlu0 %2200 }
 0xe57   :  { %v2213_v16 = vadd.f32 %v3352_v44, %v2201_v57 }
 0xe59   :  { %v2225_v62 = vmul.f32 0.2, %v2213_v16  ;;  %vm2219_vm10 = vcmp.gt.f32.partialorder %v2213_v16, 0.0 }
 0xe5b   :  { %v4949_v18 = vsel %vm2219_vm10, %v2213_v16, %v2225_v62 }
 0xe5c   :  { %2255 = vperm.xlu0 %3335, %v4949_v18  }
 0xe5e   :  { %v2204_v40 = vpop.xlane.xlu2 %2203 }
 0xe5f   :  { %v2214_v63 = vadd.f32 %v3352_v44, %v2204_v40 }
 0xe61   :  { %v2226_v13 = vmul.f32 0.2, %v2214_v63  ;;  %vm2220_vm7 = vcmp.gt.f32.partialorder %v2214_v63, 0.0 }
 0xe63   :  { %v2232_v1 = vsel %vm2220_vm7, %v2214_v63, %v2226_v13 }
 0xe64   :  { %2245 = vperm.xlu0 %3335, %v4952_v0   ;;  %2260 = vperm.xlu2 %3337, %v2232_v1  }
 0xe96   :  { %v2236_v61 = vpop.permute.xlu2 %2235 }
 0xe97   :  { %v2263_v21 = vsel %vm529_vm14, %v2236_v61, -1e+30 }
 0xe98   :  { %v2269_v54 = vsel %vm572_vm1, %v2263_v21, -inf }
 0xeb6   :  { %v2241_v8 = vpop.permute.xlu1 %2240 }
 0xeb7   :  { %v2264_v59 = vsel %vm530_vm13, %v2241_v8, -1e+30 }
 0xeb8   :  { %v2270_v27 = vsel %vm572_vm1, %v2264_v59, -inf }
 0xebe   :  { %v2261_v39 = vpop.permute.xlu2 %2260 }
 0xebf   :  { %v2268_v22 = vsel %vm534_vm11, %v2261_v39, -1e+30 }
 0xec0   :  { %v2275_v32 = vsel %vm572_vm1, %v2268_v22, -inf }
 0xec1   :  { %v2276_v51 = vmax.f32 %v2270_v27, %v2275_v32 }
 0xec6   :  { %v2251_v44 = vpop.permute.xlu1 %2250 }
 0xec7   :  { %v2266_v42 = vsel %vm532_vm0, %v2251_v44, -1e+30 }
 0xec8   :  { %v2272_v16 = vsel %vm572_vm1, %v2266_v42, -inf }
 0xece   :  { %v2256_v10 = vpop.permute.xlu0 %2255 }
 0xecf   :  { %v2267_v20 = vsel %vm533_vm12, %v2256_v10, -1e+30 }
 0xed0   :  { %v2273_v28 = vsel %vm572_vm1, %v2267_v20, -inf }
 0xed1   :  { %v2274_v2 = vmax.f32 %v2269_v54, %v2273_v28 }
 0xed3   :  { %v2277_v62 = vmax.f32 %v2274_v2, %v2276_v51 }
 0xed6   :  { %v2246_v37 = vpop.permute.xlu0 %2245 }
 0xed7   :  { %v2265_v57 = vsel %vm531_vm15, %v2246_v37, -1e+30 }
 0xed8   :  { %v2271_v60 = vsel %vm572_vm1, %v2265_v57, -inf }
 0xed9   :  { %v2278_v38 = vmax.f32 %v2271_v60, %v2272_v16 }
 0xedb   :  { %v2279_v40 = vmax.f32 %v2277_v62, %v2278_v38 }
 0xedd   :  { %v2280_v33 = vrot.slane %v2279_v40, 4 }
 0xedf   :  { %v2281_v63 = vmax.f32 %v2279_v40, %v2280_v33 }
 0xee1   :  { %v2282_v13 = vrot.slane %v2281_v63, 2 }
 0xee3   :  { %v2283_v61 = vmax.f32 %v2281_v63, %v2282_v13 }
 0xee5   :  { %v2284_v8 = vrot.slane %v2283_v61, 1 }
 0xee7   :  { %v2285_v39 = vmax.f32 %v2283_v61, %v2284_v8 }
 0xee9   :  { %v2291_v10 = vmul.f32 %v4774_v56, %v2285_v39  ;;  %v2290_v20 = vmul.f32 %v4778_v9, %v2285_v39  ;;  %v2289_v21 = vmul.f32 %v4789_v35, %v2285_v39  ;;  %v2288_v59 = vmul.f32 %v4793_v43, %v2285_v39 }
 0xeea   :  { %v2287_v54 = vmul.f32 %v4799_v6, %v2285_v39  ;;  %v2286_v32 = vmul.f32 %v4782_v14, %v2285_v39 }
 0xeeb   :  { %v2307_v22 = vsel %vm572_vm1, %v2291_v10, 0.0  ;;  %v2304_v44 = vsel %vm572_vm1, %v2290_v20, 0.0  ;;  %v2301_v28 = vsel %vm572_vm1, %v2289_v21, 0.0  ;;  %v2298_v42 = vsel %vm572_vm1, %v2288_v59, 0.0 }
 0xeec   :  { %2308 = vadd.xlane.f32.xlu2 %v2307_v22  ;;  %2305 = vadd.xlane.f32.xlu0 %v2304_v44  ;;  %v2295_v2 = vsel %vm572_vm1, %v2287_v54, 0.0  ;;  %v2292_v27 = vsel %vm572_vm1, %v2286_v32, 0.0 }
 0xeed   :  { %2302 = vadd.xlane.f32.xlu1 %v2301_v28 }
 0xef4   :  { %2299 = vadd.xlane.f32.xlu2 %v2298_v42  ;;  %2296 = vadd.xlane.f32.xlu0 %v2295_v2 }
 0xef5   :  { %2293 = vadd.xlane.f32.xlu1 %v2292_v27 }
 0xf5f   :  { %v2309_v37 = vpop.xlane.xlu2 %2308  ;;  %v2306_v51 = vpop.xlane.xlu0 %2305 }
 0xf60   :  { %v2315_v57 = vsub.f32 %v2232_v1, %v2309_v37  ;;  %v2314_v16 = vsub.f32 %v4949_v18, %v2306_v51  ;;  %v2303_v60 = vpop.xlane.xlu1 %2302 }
 0xf61   :  { %v2313_v62 = vsub.f32 %v4946_v7, %v2303_v60  ;;  %v2429_v60 = vld [vmem:[%s5235_s7 + $0x18] sm:$0xff] }
 0xf62   :  { %v2326_v38 = vmul.f32 1.442695, %v2315_v57  ;;  %v2324_v40 = vmul.f32 1.442695, %v2314_v16 }
 0xf63   :  { %v2322_v33 = vmul.f32 1.442695, %v2313_v62  ;;  %v2428_v62 = vld [vmem:[%s5235_s7 + $0x10] sm:$0xff] }
 0xf64   :  { %3390 = vpow2.f32 %v2326_v38  ;;  %v2427_v38 = vld [vmem:[%s5235_s7 + $0x8] sm:$0xff] }
 0xf65   :  { %3392 = vpow2.f32 %v2324_v40  ;;  %v2426_v40 = vld [vmem:[%s5235_s7] sm:$0xff] }
 0xf66   :  { %3394 = vpow2.f32 %v2322_v33 }
 0xf67   :  { %v2300_v63 = vpop.xlane.xlu2 %2299  ;;  %v2297_v13 = vpop.xlane.xlu0 %2296 }
 0xf68   :  { %v2312_v61 = vsub.f32 %v4952_v0, %v2300_v63  ;;  %v2311_v8 = vsub.f32 %v4943_v48, %v2297_v13  ;;  %v2294_v39 = vpop.xlane.xlu1 %2293 }
 0xf69   :  { %v2310_v1 = vsub.f32 %v4940_v15, %v2294_v39 }
 0xf6a   :  { %v3391_v10 = vpop.eup %3390  ;;  %v2320_v18 = vmul.f32 1.442695, %v2312_v61  ;;  %v2318_v20 = vmul.f32 1.442695, %v2311_v8 }
 0xf6b   :  { %v3393_v21 = vpop.eup %3392  ;;  %v2316_v7 = vmul.f32 1.442695, %v2310_v1  ;;  %2338 = vmatpush.msra.mxu1 %v3391_v10  ;;  %2382 = vperm.xlu2 %3337, %v3391_v10   ;;  %v3353_v10 = vld [vmem:[#allocation34] ss:$0 sm:$0xff] }
 0xf6c   :  { %v3395_v22 = vpop.eup %3394  ;;  %3396 = vpow2.f32 %v2320_v18  ;;  %2377 = vperm.xlu0 %3335, %v3393_v21  }
 0xf6d   :  { %3398 = vpow2.f32 %v2318_v20  ;;  %2372 = vperm.xlu1 %3336, %v3395_v22   ;;  %2339 = vmatpush.msra.mxu1 %v3393_v21 }
 0xf6e   :  { %3400 = vpow2.f32 %v2316_v7  ;;  %v2534_v7 = vld [vmem:[#allocation37] sm:$0xf] }
 0xf6f   :  { %2340 = vmatpush.msra.mxu1 %v3395_v22  ;;  %3231 = vmatpush.msk.msrb.mxu2 %vm2554_vm8, %v2534_v7 }
 0xf72   :  { %v3397_v0 = vpop.eup %3396 }
 0xf73   :  { %v3399_v48 = vpop.eup %3398  ;;  %2367 = vperm.xlu2 %3337, %v3397_v0   ;;  %2341 = vmatpush.msra.mxu1 %v3397_v0 }
 0xf74   :  { %v3401_v15 = vpop.eup %3400  ;;  %2362 = vperm.xlu0 %3335, %v3399_v48  }
 0xf75   :  { %2357 = vperm.xlu1 %3336, %v3401_v15   ;;  %2342 = vmatpush.msra.mxu1 %v3399_v48 }
 0xf77   :  { %2343 = vmatpush.msra.mxu1 %v3401_v15 }
 0xf78   :  { %3213 = vmatmul.msk.f32.vlgmr.msra.gmra.mxu1 %vm1125_vm5, %v4627_v3 }
 0xf79   :  { %2452 = vmatpush.msrb.mxu1 %v2429_v60 }
 0xf7b   :  { %2453 = vmatpush.msrb.mxu1 %v2428_v62 }
 0xf7d   :  { %2454 = vmatpush.msrb.mxu1 %v2427_v38 }
 0xf7f   :  { %2455 = vmatpush.msrb.mxu1 %v2426_v40 }
 0xf80   :  { %3214 = vmatmul.msk.f32.gmra.mxu1 %vm1125_vm5, %v4631_v5 }
 0xfc5   :  { %v2383_v44 = vpop.permute.xlu2 %2382 }
 0xfc6   :  { %v2390_v28 = vmul.f32 %v2383_v44, %v4924_v46 }
 0xfc8   :  { %2401 = vmatpush.msra.mxu3 %v2390_v28 }
 0xfcd   :  { %v2368_v42 = vpop.permute.xlu2 %2367 }
 0xfce   :  { %v2387_v27 = vmul.f32 %v2368_v42, %v4909_v12 }
 0xfde   :  { %v2378_v59 = vpop.permute.xlu0 %2377 }
 0xfdf   :  { %v2389_v54 = vmul.f32 %v2378_v59, %v4919_v11  ;;  %v2373_v32 = vpop.permute.xlu1 %2372  ;;  %v3354_v59 = vld [vmem:[#allocation38] ss:$0 sm:$0xff] }
 0xfe0   :  { %v2388_v2 = vmul.f32 %v2373_v32, %v4914_v4 }
 0xfe1   :  { %2402 = vmatpush.msra.mxu3 %v2389_v54 }
 0xfe3   :  { %2403 = vmatpush.msra.mxu3 %v2388_v2 }
 0xfe5   :  { %2404 = vmatpush.msra.mxu3 %v2387_v27 }
 0xfe6   :  { %v2363_v37 = vpop.permute.xlu0 %2362 }
 0xfe7   :  { %v2386_v51 = vmul.f32 %v2363_v37, %v4904_v53  ;;  %v2358_v57 = vpop.permute.xlu1 %2357 }
 0xfe8   :  { %v2385_v46 = vmul.f32 %v2358_v57, %v4894_v50 }
 0xfe9   :  { %2405 = vmatpush.msra.mxu3 %v2386_v51 }
 0xfeb   :  { %2406 = vmatpush.msra.mxu3 %v2385_v46 }
 0xfec   :  { %3215 = vmatmul.msk.f32.vlgmr.msra.gmra.mxu3 %vm1125_vm5, %v4627_v3 }
 0xff4   :  { %3216 = vmatmul.msk.f32.gmra.mxu3 %vm1125_vm5, %v4631_v5 }
 0xff5   :  { %v2345_v12 = vpop.f32.mrf.mxu1 }
 0xff6   :  { %v2351_v4 = vmax.f32 %v2345_v12, 1e-16 }
 0xff8   :  { %3402 = vrcp.f32 %v2351_v4 }
 0xffd   :  { %v2348_v11 = vpop.f32.mrf.mxu1 }
 0xffe   :  { %v3403_v53 = vpop.eup %3402  ;;  %v2352_v16 = vmax.f32 %v2348_v11, 1e-16 }
 0xfff   :  { %2416 = vperm.xlu2 %3337, %v3403_v53  }
0x1000   :  { %3404 = vrcp.f32 %v2352_v16 }
0x1006   :  { %v3405_v50 = vpop.eup %3404 }
0x1007   :  { %2421 = vperm.xlu0 %3335, %v3405_v50  }
0x1059   :  { %v2417_v33 = vpop.permute.xlu2 %2416 }
0x106f   :  { %v2408_v63 = vpop.f32.mrf.mxu3 }
0x1070   :  { %v2424_v13 = vmul.f32 %v2417_v33, %v2408_v63 }
0x1072   :  { %3217 = vmatmul.msk.f32.vlgmr.msrb.gmra.mxu1 %vm687_vm4, %v2424_v13 }
0x1077   :  { %v2411_v61 = vpop.f32.mrf.mxu3 }
0x1079   :  { %v2422_v8 = vpop.permute.xlu0 %2421 }
0x107a   :  { %v2425_v39 = vmul.f32 %v2422_v8, %v2411_v61 }
0x107c   :  { %3218 = vmatmul.msk.f32.gmra.mxu1 %vm687_vm4, %v2425_v39 }
0x10ef   :  { %v2457_v1 = vpop.f32.mrf.mxu1 }
0x10f0   :  { %v2458_v21 = vadd.f32 %v3353_v10, %v2457_v1 }
0x10f9   :  { %v2460_v18 = vpop.f32.mrf.mxu1 }
0x10fa   :  { %v2461_v20 = vadd.f32 %v3353_v10, %v2460_v18 }
0x10fc   :  { %2477 = vmatpush.msrb.mxu3 %v2461_v20  ;;  %2512 = vmatpush.msra.mxu1 %v2461_v20 }
0x10fe   :  { %2478 = vmatpush.msrb.mxu3 %v2458_v21  ;;  %2513 = vmatpush.msra.mxu1 %v2458_v21 }
0x10ff   :  { %3219 = vmatmul.msk.f32.vlgmr.msrb.gmra.mxu3 %vm572_vm1, %v4826_v36  ;;  %3225 = vmatmul.msk.f32.vlgmr.msra.gmra.mxu1 %vm572_vm1, %v4782_v14  ;;  %v2649_v14 = vld [vmem:[%s5236_s24] sm:$0x1] }
0x1100   :  { %3245 = vmatpush.msk.msra.mxu3 %vm814_vm2, %v2649_v14 }
0x1107   :  { %3220 = vmatmul.msk.f32.gmra.mxu3 %vm572_vm1, %v4833_v41  ;;  %3226 = vmatmul.msk.f32.gmra.mxu1 %vm572_vm1, %v4799_v6 }
0x110f   :  { %3221 = vmatmul.msk.f32.gmra.mxu3 %vm572_vm1, %v4840_v34  ;;  %3227 = vmatmul.msk.f32.gmra.mxu1 %vm572_vm1, %v4793_v43  ;;  %v2533_v43 = vld [vmem:[#allocation35] sm:$0xf] }
0x1110   :  { %3238 = vmatpush.msk.msrb.mxu0 %vm2554_vm8, %v2533_v43 }
0x1117   :  { %3222 = vmatmul.msk.f32.gmra.mxu3 %vm572_vm1, %v4847_v29  ;;  %3228 = vmatmul.msk.f32.gmra.mxu1 %vm572_vm1, %v4789_v35 }
0x111f   :  { %3223 = vmatmul.msk.f32.gmra.mxu3 %vm572_vm1, %v4854_v30  ;;  %3229 = vmatmul.msk.f32.gmra.mxu1 %vm572_vm1, %v4778_v9 }
0x1127   :  { %3224 = vmatmul.msk.f32.gmra.mxu3 %vm572_vm1, %v4861_v31  ;;  %3230 = vmatmul.msk.f32.gmra.mxu1 %vm572_vm1, %v4774_v56 }
0x112f   :  { %3246 = vmatmul.msk.f32.vlgmr.msra.gmra.mxu3 %vm795_vm3, %v4869_v45 }
0x1137   :  { %3247 = vmatmul.msk.f32.gmra.mxu3 %vm795_vm3, %v4874_v55 }
0x113f   :  { %3248 = vmatmul.msk.f32.gmra.mxu3 %vm795_vm3, %v4879_v58  ;;  %v2713_v58 = vld [vmem:[%s5237_s25 + $0x18] sm:$0xff] }
0x1140   :  { %2748 = vmatpush.msrb.mxu1 %v2713_v58  ;;  %v3356_v58 = vld [vmem:[%s4298_s9] ss:$0 sm:$0xff] }
0x1147   :  { %3249 = vmatmul.msk.f32.gmra.mxu3 %vm795_vm3, %v4884_v47  ;;  %v2712_v47 = vld [vmem:[%s5237_s25 + $0x10] sm:$0xff] }
0x1148   :  { %2749 = vmatpush.msrb.mxu1 %v2712_v47 }
0x114f   :  { %3250 = vmatmul.msk.f32.gmra.mxu3 %vm795_vm3, %v4890_v49  ;;  %v2711_v49 = vld [vmem:[%s5237_s25 + $0x8] sm:$0xff] }
0x1150   :  { %2750 = vmatpush.msrb.mxu1 %v2711_v49 }
0x1157   :  { %3251 = vmatmul.msk.f32.gmra.mxu3 %vm795_vm3, %v4900_v52  ;;  %v2710_v52 = vld [vmem:[%s5237_s25] sm:$0xff] }
0x1158   :  { %2751 = vmatpush.msrb.mxu1 %v2710_v52 }
0x117c   :  { %v2515_v9 = vpop.f32.mrf.mxu1 }
0x117d   :  { %3239 = vmatmul.msk.f32.vlgmr.msrb.gmra.mxu0 %vm2535_vm9, %v2515_v9 }
0x1182   :  { %v5045_v56 = vpop.f32.mrf.mxu3 }
0x1183   :  { %3232 = vmatmul.msk.f32.vlgmr.msrb.gmra.mxu2 %vm2535_vm9, %v5045_v56 }
0x1184   :  { %v2518_v35 = vpop.f32.mrf.mxu1 }
0x1185   :  { %3240 = vmatmul.msk.f32.gmra.mxu0 %vm2535_vm9, %v2518_v35 }
0x118a   :  { %v5052_v6 = vpop.f32.mrf.mxu3 }
0x118b   :  { %3233 = vmatmul.msk.f32.gmra.mxu2 %vm2535_vm9, %v5052_v6 }
0x118c   :  { %v2521_v36 = vpop.f32.mrf.mxu1 }
0x118d   :  { %3241 = vmatmul.msk.f32.gmra.mxu0 %vm2535_vm9, %v2521_v36 }
0x1192   :  { %v5059_v41 = vpop.f32.mrf.mxu3 }
0x1193   :  { %3234 = vmatmul.msk.f32.gmra.mxu2 %vm2535_vm9, %v5059_v41 }
0x1194   :  { %v2524_v34 = vpop.f32.mrf.mxu1 }
0x1195   :  { %3242 = vmatmul.msk.f32.gmra.mxu0 %vm2535_vm9, %v2524_v34  ;;  %v3355_v34 = vld [vmem:[#allocation40] ss:$0 sm:$0xff] }
0x119a   :  { %v5064_v29 = vpop.f32.mrf.mxu3 }
0x119b   :  { %3235 = vmatmul.msk.f32.gmra.mxu2 %vm2535_vm9, %v5064_v29 }
0x119c   :  { %v2527_v30 = vpop.f32.mrf.mxu1 }
0x119d   :  { %3243 = vmatmul.msk.f32.gmra.mxu0 %vm2535_vm9, %v2527_v30 }
0x11a2   :  { %v5069_v31 = vpop.f32.mrf.mxu3 }
0x11a3   :  { %3236 = vmatmul.msk.f32.gmra.mxu2 %vm2535_vm9, %v5069_v31 }
0x11a4   :  { %v2530_v45 = vpop.f32.mrf.mxu1 }
0x11a5   :  { %3244 = vmatmul.msk.f32.gmra.mxu0 %vm2535_vm9, %v2530_v45 }
0x11aa   :  { %v5074_v55 = vpop.f32.mrf.mxu3 }
0x11ab   :  { %3237 = vmatmul.msk.f32.gmra.mxu2 %vm2535_vm9, %v5074_v55 }
0x11b2   :  { %v2670_v0 = vpop.f32.mrf.mxu3 }
0x11ba   :  { %v2673_v44 = vpop.f32.mrf.mxu3 }
0x11c2   :  { %v2676_v51 = vpop.f32.mrf.mxu3 }
0x11ca   :  { %v2679_v50 = vpop.f32.mrf.mxu3 }
0x11d2   :  { %v2682_v61 = vpop.f32.mrf.mxu3 }
0x11da   :  { %v2685_v14 = vpop.f32.mrf.mxu3 }
0x11fa   :  { %v2631_v22 = vpop.f32.mrf.mxu0 }
0x1202   :  { %v2634_v48 = vpop.f32.mrf.mxu0 }
0x1206   :  { %v2575_v15 = vpop.f32.mrf.mxu2 }
0x1207   :  { %v2632_v28 = vadd.f32 %v2631_v22, %v2575_v15 }
0x1209   :  { %v2688_v54 = vadd.f32 %v2670_v0, %v2632_v28 }
0x120a   :  { %v2637_v27 = vpop.f32.mrf.mxu0 }
0x120b   :  { %v2698_v32 = vadd.f32 %v3354_v59, %v2688_v54 }
0x120d   :  { %v2704_v42 = vmax.f32 %v2698_v32, 0.0 }
0x120e   :  { %v2578_v2 = vpop.f32.mrf.mxu2 }
0x120f   :  { %v2635_v37 = vadd.f32 %v2634_v48, %v2578_v2  ;;  %3252 = vmatmul.msk.f32.vlgmr.msrb.gmra.mxu1 %vm687_vm4, %v2704_v42 }
0x1211   :  { %v2689_v57 = vadd.f32 %v2673_v44, %v2635_v37 }
0x1212   :  { %v2640_v53 = vpop.f32.mrf.mxu0 }
0x1213   :  { %v2699_v46 = vadd.f32 %v3354_v59, %v2689_v57 }
0x1215   :  { %v2705_v12 = vmax.f32 %v2699_v46, 0.0 }
0x1216   :  { %v2581_v4 = vpop.f32.mrf.mxu2 }
0x1217   :  { %v2638_v11 = vadd.f32 %v2637_v27, %v2581_v4  ;;  %3253 = vmatmul.msk.f32.gmra.mxu1 %vm687_vm4, %v2705_v12 }
0x1219   :  { %v2690_v16 = vadd.f32 %v2676_v51, %v2638_v11 }
0x121a   :  { %v2643_v63 = vpop.f32.mrf.mxu0 }
0x121b   :  { %v2700_v60 = vadd.f32 %v3354_v59, %v2690_v16 }
0x121d   :  { %v2706_v62 = vmax.f32 %v2700_v60, 0.0 }
0x121e   :  { %v2584_v38 = vpop.f32.mrf.mxu2 }
0x121f   :  { %v2641_v40 = vadd.f32 %v2640_v53, %v2584_v38  ;;  %3254 = vmatmul.msk.f32.gmra.mxu1 %vm687_vm4, %v2706_v62 }
0x1221   :  { %v2691_v33 = vadd.f32 %v2679_v50, %v2641_v40  ;;  %v3357_v40 = vld [vmem:[#allocation5] ss:$0 sm:$0xff] }
0x1222   :  { %v2646_v20 = vpop.f32.mrf.mxu0 }
0x1223   :  { %v2701_v13 = vadd.f32 %v3354_v59, %v2691_v33 }
0x1225   :  { %v2707_v8 = vmax.f32 %v2701_v13, 0.0 }
0x1226   :  { %v2587_v39 = vpop.f32.mrf.mxu2 }
0x1227   :  { %v2644_v1 = vadd.f32 %v2643_v63, %v2587_v39  ;;  %3255 = vmatmul.msk.f32.gmra.mxu1 %vm687_vm4, %v2707_v8 }
0x1229   :  { %v2692_v10 = vadd.f32 %v2682_v61, %v2644_v1 }
0x122b   :  { %v2702_v18 = vadd.f32 %v3354_v59, %v2692_v10 }
0x122d   :  { %v2708_v21 = vmax.f32 %v2702_v18, 0.0 }
0x122e   :  { %v2590_v7 = vpop.f32.mrf.mxu2 }
0x122f   :  { %v2647_v43 = vadd.f32 %v2646_v20, %v2590_v7  ;;  %3256 = vmatmul.msk.f32.gmra.mxu1 %vm687_vm4, %v2708_v21 }
0x1231   :  { %v2693_v9 = vadd.f32 %v2685_v14, %v2647_v43 }
0x1233   :  { %v2703_v35 = vadd.f32 %v3354_v59, %v2693_v9 }
0x1235   :  { %v2709_v36 = vmax.f32 %v2703_v35, 0.0 }
0x1237   :  { %3257 = vmatmul.msk.f32.gmra.mxu1 %vm687_vm4, %v2709_v36 }
0x128c   :  { %v2753_v30 = vpop.f32.mrf.mxu1 }
0x128d   :  { %v2754_v45 = vadd.f32 %v3355_v34, %v2753_v30 }
0x128f   :  { %v2771_v47 = vmax.f32 %v2754_v45, 0.0 }
0x1291   :  { %v2781_v49 = vmul.f32 %v3356_v58, %v2771_v47 }
0x1293   :  { %v2787_v52 = vsel %vm687_vm4, %v2781_v49, 0.0 }
0x1294   :  { %2788 = vadd.xlane.f32.xlu1 %v2787_v52  ;;  %v2756_v22 = vpop.f32.mrf.mxu1 }
0x1295   :  { %v2757_v0 = vadd.f32 %v3355_v34, %v2756_v22 }
0x1297   :  { %v2772_v48 = vmax.f32 %v2757_v0, 0.0 }
0x1299   :  { %v2782_v15 = vmul.f32 %v3356_v58, %v2772_v48 }
0x129b   :  { %v2790_v44 = vsel %vm687_vm4, %v2782_v15, 0.0 }
0x129c   :  { %2791 = vadd.xlane.f32.xlu2 %v2790_v44  ;;  %v2759_v28 = vpop.f32.mrf.mxu1 }
0x129d   :  { %v2760_v59 = vadd.f32 %v3355_v34, %v2759_v28 }
0x129f   :  { %v2773_v54 = vmax.f32 %v2760_v59, 0.0 }
0x12a1   :  { %v2783_v32 = vmul.f32 %v3356_v58, %v2773_v54 }
0x12a3   :  { %v2793_v42 = vsel %vm687_vm4, %v2783_v32, 0.0 }
0x12a4   :  { %2794 = vadd.xlane.f32.xlu2 %v2793_v42  ;;  %v2762_v2 = vpop.f32.mrf.mxu1 }
0x12a5   :  { %v2763_v27 = vadd.f32 %v3355_v34, %v2762_v2 }
0x12a7   :  { %v2774_v37 = vmax.f32 %v2763_v27, 0.0 }
0x12a9   :  { %v2784_v51 = vmul.f32 %v3356_v58, %v2774_v37 }
0x12ab   :  { %v2796_v57 = vsel %vm687_vm4, %v2784_v51, 0.0 }
0x12ac   :  { %2797 = vadd.xlane.f32.xlu0 %v2796_v57  ;;  %v2765_v46 = vpop.f32.mrf.mxu1 }
0x12ad   :  { %v2766_v12 = vadd.f32 %v3355_v34, %v2765_v46 }
0x12af   :  { %v2775_v4 = vmax.f32 %v2766_v12, 0.0 }
0x12b1   :  { %v2785_v11 = vmul.f32 %v3356_v58, %v2775_v4 }
0x12b3   :  { %v2799_v53 = vsel %vm687_vm4, %v2785_v11, 0.0 }
0x12b4   :  { %2800 = vadd.xlane.f32.xlu0 %v2799_v53  ;;  %v2768_v16 = vpop.f32.mrf.mxu1 }
0x12b5   :  { %v2769_v50 = vadd.f32 %v3355_v34, %v2768_v16 }
0x12b7   :  { %v2776_v60 = vmax.f32 %v2769_v50, 0.0 }
0x12b9   :  { %v2786_v62 = vmul.f32 %v3356_v58, %v2776_v60 }
0x12bb   :  { %v2802_v38 = vsel %vm687_vm4, %v2786_v62, 0.0  ;;  %v3440_v62 = vld [vmem:[%s5226_s6 + $0x28] sm:$0xff] }
0x12bc   :  { %2803 = vadd.xlane.f32.xlu1 %v2802_v38 }
0x1307   :  { %v2789_v33 = vpop.xlane.xlu1 %2788 }
0x1308   :  { %v2809_v63 = vadd.f32 %v3357_v40, %v2789_v33 }
0x130a   :  { %v2821_v13 = vmul.f32 0.2, %v2809_v63  ;;  %vm2815_vm2 = vcmp.gt.f32.partialorder %v2809_v63, 0.0 }
0x130c   :  { %v5095_v61 = vsel %vm2815_vm2, %v2809_v63, %v2821_v13  ;;  %v3442_v63 = vld [vmem:[%s5226_s6 + $0x18] sm:$0xff] }
0x130d   :  { %2835 = vperm.xlu1 %3336, %v5095_v61  }
0x130f   :  { %v2792_v8 = vpop.xlane.xlu2 %2791 }
0x1310   :  { %v2810_v39 = vadd.f32 %v3357_v40, %v2792_v8 }
0x1312   :  { %v2822_v1 = vmul.f32 0.2, %v2810_v39  ;;  %vm2816_vm3 = vcmp.gt.f32.partialorder %v2810_v39, 0.0 }
0x1314   :  { %v5098_v10 = vsel %vm2816_vm3, %v2810_v39, %v2822_v1 }
0x1315   :  { %2840 = vperm.xlu2 %3337, %v5098_v10  }
0x1317   :  { %v2795_v18 = vpop.xlane.xlu2 %2794 }
0x1318   :  { %v2811_v20 = vadd.f32 %v3357_v40, %v2795_v18  ;;  %v3443_v18 = vld [vmem:[%s5226_s6 + $0x10] sm:$0xff] }
0x131a   :  { %v2823_v21 = vmul.f32 0.2, %v2811_v20  ;;  %vm2817_vm4 = vcmp.gt.f32.partialorder %v2811_v20, 0.0 }
0x131c   :  { %v5101_v7 = vsel %vm2817_vm4, %v2811_v20, %v2823_v21  ;;  %v3444_v21 = vld [vmem:[%s5226_s6 + $0x8] sm:$0xff] }
0x131d   :  { %2845 = vperm.xlu2 %3337, %v5101_v7  }
0x131f   :  { %v2798_v14 = vpop.xlane.xlu0 %2797 }
0x1320   :  { %v2812_v43 = vadd.f32 %v3357_v40, %v2798_v14 }
0x1322   :  { %v2824_v9 = vmul.f32 0.2, %v2812_v43  ;;  %vm2818_vm10 = vcmp.gt.f32.partialorder %v2812_v43, 0.0 }
0x1324   :  { %v5104_v35 = vsel %vm2818_vm10, %v2812_v43, %v2824_v9  ;;  %v3445_v43 = vld [vmem:[%s5226_s6] sm:$0xff] }
0x1325   :  { %2850 = vperm.xlu1 %3336, %v5104_v35  }
0x1327   :  { %v2801_v36 = vpop.xlane.xlu0 %2800 }
0x1328   :  { %v2813_v34 = vadd.f32 %v3357_v40, %v2801_v36 }
0x132a   :  { %v2825_v30 = vmul.f32 0.2, %v2813_v34  ;;  %vm2819_vm6 = vcmp.gt.f32.partialorder %v2813_v34, 0.0 }
0x132c   :  { %v5107_v45 = vsel %vm2819_vm6, %v2813_v34, %v2825_v30 }
0x132d   :  { %2855 = vperm.xlu0 %3335, %v5107_v45  }
0x132f   :  { %v2804_v58 = vpop.xlane.xlu1 %2803 }
0x1330   :  { %v2814_v47 = vadd.f32 %v3357_v40, %v2804_v58  ;;  %v3441_v40 = vld [vmem:[%s5226_s6 + $0x20] sm:$0xff] }
0x1332   :  { %v2826_v49 = vmul.f32 0.2, %v2814_v47  ;;  %vm2820_vm7 = vcmp.gt.f32.partialorder %v2814_v47, 0.0 }
0x1334   :  { %v2832_v52 = vsel %vm2820_vm7, %v2814_v47, %v2826_v49 }
0x1335   :  { %2860 = vperm.xlu0 %3335, %v2832_v52  }
0x136f   :  { %v2841_v22 = vpop.permute.xlu2 %2840 }
0x1370   :  { %v2864_v59 = vsel %vm530_vm13, %v2841_v22, -1e+30 }
0x1371   :  { %v2870_v37 = vsel %vm572_vm1, %v2864_v59, -inf }
0x1377   :  { %v2846_v28 = vpop.permute.xlu2 %2845 }
0x1378   :  { %v2865_v27 = vsel %vm531_vm15, %v2846_v28, -1e+30 }
0x1379   :  { %v2871_v46 = vsel %vm572_vm1, %v2865_v27, -inf }
0x137f   :  { %v2836_v0 = vpop.permute.xlu1 %2835 }
0x1380   :  { %v2863_v54 = vsel %vm529_vm14, %v2836_v0, -1e+30 }
0x1381   :  { %v2869_v19 = vsel %vm572_vm1, %v2863_v54, -inf }
0x1397   :  { %v2851_v15 = vpop.permute.xlu1 %2850 }
0x1398   :  { %v2866_v32 = vsel %vm532_vm0, %v2851_v15, -1e+30 }
0x1399   :  { %v2872_v17 = vsel %vm572_vm1, %v2866_v32, -inf }
0x139a   :  { %v2878_v23 = vmax.f32 %v2871_v46, %v2872_v17 }
0x139f   :  { %v2856_v48 = vpop.permute.xlu0 %2855 }
0x13a0   :  { %v2867_v44 = vsel %vm533_vm12, %v2856_v48, -1e+30 }
0x13a1   :  { %v2873_v42 = vsel %vm572_vm1, %v2867_v44, -inf }
0x13a2   :  { %v2874_v51 = vmax.f32 %v2869_v19, %v2873_v42 }
0x13a7   :  { %v2861_v2 = vpop.permute.xlu0 %2860 }
0x13a8   :  { %v2868_v25 = vsel %vm534_vm11, %v2861_v2, -1e+30 }
0x13a9   :  { %v2875_v24 = vsel %vm572_vm1, %v2868_v25, -inf }
0x13aa   :  { %v2876_v57 = vmax.f32 %v2870_v37, %v2875_v24 }
0x13ac   :  { %v2877_v12 = vmax.f32 %v2874_v51, %v2876_v57 }
0x13ae   :  { %v2879_v4 = vmax.f32 %v2877_v12, %v2878_v23 }
0x13b0   :  { %v2880_v26 = vrot.slane %v2879_v4, 4 }
0x13b2   :  { %v2881_v11 = vmax.f32 %v2879_v4, %v2880_v26 }
0x13b4   :  { %v2882_v53 = vrot.slane %v2881_v11, 2 }
0x13b6   :  { %v2883_v16 = vmax.f32 %v2881_v11, %v2882_v53 }
0x13b8   :  { %v2884_v50 = vrot.slane %v2883_v16, 1 }
0x13ba   :  { %v2885_v60 = vmax.f32 %v2883_v16, %v2884_v50 }
0x13bc   :  { %v2891_v38 = vmul.f32 %v3440_v62, %v2885_v60  ;;  %v2890_v33 = vmul.f32 %v3441_v40, %v2885_v60  ;;  %v2889_v13 = vmul.f32 %v3442_v63, %v2885_v60  ;;  %v2888_v20 = vmul.f32 %v3443_v18, %v2885_v60 }
0x13bd   :  { %v2887_v14 = vmul.f32 %v3444_v21, %v2885_v60  ;;  %v2886_v9 = vmul.f32 %v3445_v43, %v2885_v60 }
0x13be   :  { %v2907_v8 = vsel %vm572_vm1, %v2891_v38, 0.0  ;;  %v2904_v39 = vsel %vm572_vm1, %v2890_v33, 0.0  ;;  %v2901_v1 = vsel %vm572_vm1, %v2889_v13, 0.0  ;;  %v2898_v36 = vsel %vm572_vm1, %v2888_v20, 0.0 }
0x13bf   :  { %2908 = vadd.xlane.f32.xlu0 %v2907_v8  ;;  %2905 = vadd.xlane.f32.xlu2 %v2904_v39  ;;  %v2895_v34 = vsel %vm572_vm1, %v2887_v14, 0.0  ;;  %v2892_v30 = vsel %vm572_vm1, %v2886_v9, 0.0 }
0x13c0   :  { %2902 = vadd.xlane.f32.xlu1 %v2901_v1 }
0x13c7   :  { %2899 = vadd.xlane.f32.xlu0 %v2898_v36  ;;  %2896 = vadd.xlane.f32.xlu2 %v2895_v34 }
0x13c8   :  { %2893 = vadd.xlane.f32.xlu1 %v2892_v30 }
0x1432   :  { %v2909_v58 = vpop.xlane.xlu0 %2908  ;;  %v2906_v47 = vpop.xlane.xlu2 %2905 }
0x1433   :  { %v2915_v49 = vsub.f32 %v2832_v52, %v2909_v58  ;;  %v2914_v22 = vsub.f32 %v5107_v45, %v2906_v47  ;;  %v2903_v0 = vpop.xlane.xlu1 %2902 }
0x1434   :  { %v2913_v48 = vsub.f32 %v5104_v35, %v2903_v0 }
0x1435   :  { %v2926_v15 = vmul.f32 1.442695, %v2915_v49  ;;  %v2924_v44 = vmul.f32 1.442695, %v2914_v22 }
0x1436   :  { %v2922_v28 = vmul.f32 1.442695, %v2913_v48 }
0x1437   :  { %3406 = vpow2.f32 %v2926_v15 }
0x1438   :  { %3408 = vpow2.f32 %v2924_v44 }
0x1439   :  { %3410 = vpow2.f32 %v2922_v28 }
0x143a   :  { %v2900_v59 = vpop.xlane.xlu0 %2899  ;;  %v2897_v54 = vpop.xlane.xlu2 %2896 }
0x143b   :  { %v2912_v32 = vsub.f32 %v5101_v7, %v2900_v59  ;;  %v2911_v42 = vsub.f32 %v5098_v10, %v2897_v54  ;;  %v2894_v2 = vpop.xlane.xlu1 %2893 }
0x143c   :  { %v2910_v52 = vsub.f32 %v5095_v61, %v2894_v2 }
0x143d   :  { %v3407_v27 = vpop.eup %3406  ;;  %v2920_v45 = vmul.f32 1.442695, %v2912_v32  ;;  %v2918_v25 = vmul.f32 1.442695, %v2911_v42 }
0x143e   :  { %v3409_v37 = vpop.eup %3408  ;;  %2938 = vmatpush.msra.mxu2 %v3407_v27  ;;  %2982 = vperm.xlu0 %3335, %v3407_v27   ;;  %v2916_v19 = vmul.f32 1.442695, %v2910_v52 }
0x143f   :  { %v3411_v35 = vpop.eup %3410  ;;  %3412 = vpow2.f32 %v2920_v45  ;;  %2977 = vperm.xlu2 %3337, %v3409_v37  }
0x1440   :  { %3414 = vpow2.f32 %v2918_v25  ;;  %2972 = vperm.xlu1 %3336, %v3411_v35   ;;  %2939 = vmatpush.msra.mxu2 %v3409_v37 }
0x1441   :  { %3416 = vpow2.f32 %v2916_v19 }
0x1442   :  { %2940 = vmatpush.msra.mxu2 %v3411_v35 }
0x1445   :  { %v3413_v7 = vpop.eup %3412 }
0x1446   :  { %v3415_v10 = vpop.eup %3414  ;;  %2967 = vperm.xlu0 %3335, %v3413_v7   ;;  %2941 = vmatpush.msra.mxu2 %v3413_v7 }
0x1447   :  { %2962 = vperm.xlu2 %3337, %v3415_v10   ;;  %v3417_v61 = vpop.eup %3416 }
0x1448   :  { %2942 = vmatpush.msra.mxu2 %v3415_v10 }
0x144a   :  { %2943 = vmatpush.msra.mxu2 %v3417_v61 }
0x144b   :  { %3258 = vmatmul.msk.f32.vlgmr.msra.gmra.mxu2 %vm1125_vm5, %v4627_v3 }
0x144e   :  { %2957 = vperm.xlu0 %3335, %v3417_v61  }
0x1453   :  { %3259 = vmatmul.msk.f32.gmra.mxu2 %vm1125_vm5, %v4631_v5 }
0x1499   :  { %v2978_v17 = vpop.permute.xlu2 %2977 }
0x149a   :  { %v2989_v46 = vmul.f32 %v2978_v17, %v5069_v31 }
0x14a1   :  { %v2963_v12 = vpop.permute.xlu2 %2962 }
0x14a2   :  { %v2986_v11 = vmul.f32 %v2963_v12, %v5052_v6 }
0x14b0   :  { %v2983_v24 = vpop.permute.xlu0 %2982 }
0x14b1   :  { %v2990_v51 = vmul.f32 %v2983_v24, %v5074_v55 }
0x14b2   :  { %v2973_v57 = vpop.permute.xlu1 %2972 }
0x14b3   :  { %3001 = vmatpush.msra.mxu0 %v2990_v51  ;;  %v2988_v23 = vmul.f32 %v2973_v57, %v5064_v29 }
0x14b5   :  { %3002 = vmatpush.msra.mxu0 %v2989_v46 }
0x14b7   :  { %3003 = vmatpush.msra.mxu0 %v2988_v23 }
0x14b8   :  { %v2968_v4 = vpop.permute.xlu0 %2967 }
0x14b9   :  { %v2987_v26 = vmul.f32 %v2968_v4, %v5059_v41 }
0x14bb   :  { %3004 = vmatpush.msra.mxu0 %v2987_v26 }
0x14bd   :  { %3005 = vmatpush.msra.mxu0 %v2986_v11 }
0x14c0   :  { %v2958_v53 = vpop.permute.xlu0 %2957 }
0x14c1   :  { %v2985_v16 = vmul.f32 %v2958_v53, %v5045_v56 }
0x14c3   :  { %3006 = vmatpush.msra.mxu0 %v2985_v16 }
0x14c4   :  { %3260 = vmatmul.msk.f32.vlgmr.msra.gmra.mxu0 %vm1125_vm5, %v4627_v3 }
0x14cc   :  { %3261 = vmatmul.msk.f32.gmra.mxu0 %vm1125_vm5, %v4631_v5 }
0x14ce   :  { %v2945_v29 = vpop.f32.mrf.mxu2 }
0x14cf   :  { %v2951_v31 = vmax.f32 %v2945_v29, 1e-16 }
0x14d1   :  { %3418 = vrcp.f32 %v2951_v31 }
0x14d6   :  { %v2948_v41 = vpop.f32.mrf.mxu2 }
0x14d7   :  { %v3419_v55 = vpop.eup %3418  ;;  %v2952_v6 = vmax.f32 %v2948_v41, 1e-16 }
0x14d8   :  { %3016 = vperm.xlu1 %3336, %v3419_v55  }
0x14d9   :  { %3420 = vrcp.f32 %v2952_v6 }
0x14df   :  { %v3421_v50 = vpop.eup %3420 }
0x14e0   :  { %3021 = vperm.xlu2 %3337, %v3421_v50  }
0x153a   :  { %v3022_v60 = vpop.permute.xlu2 %3021 }
0x1541   :  { %v3008_v56 = vpop.f32.mrf.mxu0 }
0x1549   :  { %v3011_v62 = vpop.f32.mrf.mxu0 }
0x154a   :  { %v3025_v38 = vmul.f32 %v3022_v60, %v3011_v62  ;;  %v3017_v3 = vpop.permute.xlu1 %3016 }
0x154b   :  { %v3024_v40 = vmul.f32 %v3017_v3, %v3008_v56 }
0x154c   :  { %3027 = vst.msk [vmem:[%s4303_s1 + $0x8] sm:$0xff] %vm2535_vm9, %v3025_v38 }
0x154d   :  { %3026 = vst.msk [vmem:[%s4303_s1] sm:$0xff] %vm2535_vm9, %v3024_v40 }
0x154e   :  { %3032 = vsyncpa [#allocation7], 1 }
0x154f   :  { %3033 = vsyncpa [#allocation9], 1 }
0x1550   :  { %3034 = vsyncpa [#allocation12], 1 }
0x1551   :  { %3035 = vsyncpa [#allocation15], 1 }
0x1552   :  { %3036 = vsyncpa [#allocation18], 1 }
0x1553   :  { %3037 = vsyncpa [#allocation21], 1 }
0x1554   :  { %3038 = vsyncpa [#allocation24], 1 }
0x1555   :  { %3039 = vsyncpa [#allocation27], 1 }
0x1556   :  { %3040 = vsyncpa [#allocation30], 1 }
0x1557   :  { %3041 = vsyncpa [#allocation33], 1 }
0x1558   :  { %3042 = vsyncpa [#allocation36], 1 }
0x1559   :  { %3043 = vsyncpa [#allocation39], 1 }

</bundles_post_ra>
